<compile_context>
chip_gen: v7x
topology: tpu7x:2x2x1
jax: 0.10.0
libtpu: 0.0.40
codegen_flags: <defaults>
</compile_context>

<pallas_src>
import functools

import jax
import jax.numpy as jnp
from jax import lax
from jax.experimental import pallas as pl
from jax.experimental.pallas import tpu as pltpu

_EPS = 1e-5
_LANE = 128


def _round_up(x, m):
    return (x + m - 1) // m * m


def _vmem_limit_bytes():
    """Generation-aware scoped-VMEM limit (~half of physical VMEM, clamped)."""
    try:
        cap = getattr(pltpu.get_tpu_info(), "vmem_capacity_bytes", None)
    except Exception:
        cap = None
    if not cap:
        cap = 64 * 1024 * 1024            # conservative: v7x physical VMEM
    return int(min(max(cap // 2, 32 * 1024 * 1024), 96 * 1024 * 1024))


def _compiler_params(semantics):
    return pltpu.CompilerParams(dimension_semantics=semantics,
                                vmem_limit_bytes=_vmem_limit_bytes())


def _largest_divisor_at_most(n, cap):
    cap = max(1, min(n, cap))
    for d in range(cap, 0, -1):
        if n % d == 0:
            return d
    return 1


def _pick_row_tile(m, cap):
    for t in (2048, 1024, 512, 256, 128, 64, 32, 16, 8):
        if t <= cap and m % t == 0:
            return t
    # TODO(synk): pad M to a multiple of 512 instead of degrading to a full-M tile.
    return m


def _bn_scale_shift(stats, gamma, beta, inv_count, eps):
    """Per-channel affine (scale, shift) from accumulated [sum; sum_sq] (biased var)."""
    mean = stats[0:1, :] * inv_count
    # TODO(synk): E[x^2]-E[x]^2 can lose precision when |mean| >> std; clamp keeps it safe.
    var = jnp.maximum(stats[1:2, :] * inv_count - mean * mean, 0.0)
    scale = gamma * lax.rsqrt(var + eps)
    shift = beta - mean * scale
    return scale, shift


# --------------------------------------------------------------------------- conv kernel

def _conv3x3_kernel(*refs, stride, th, wo, apply_bn_in, fuse_skip, inv_count, eps):
    """Row-tiled 3x3 'same' conv (+ optional fused BN+ReLU on its input, + optional
    fused 1x1 skip conv) with per-image BN partial statistics in the epilogue.

    Grid: (N, Ho // th) -- ("parallel", "arbitrary").
    """
    it = iter(refs)
    x_main = next(it)                       # (1, th*stride, W_in, Cin_p)
    x_top = next(it)                        # (1, 1, W_in, Cin_p) halo row above
    x_bot = next(it)                        # (1, 1, W_in, Cin_p) halo row below
    w_ref = next(it)                        # (3, 3, Cin_p, Cout_p)
    if apply_bn_in:
        stats_in, g_in, b_in = next(it), next(it), next(it)
    if fuse_skip:
        ws_ref = next(it)                   # (Cin_p, Cout_p)
    y_ref = next(it)                        # (1, th, wo, Cout_p)
    stats_ref = next(it)                    # (1, 2, Cout_p) resident per image
    if fuse_skip:
        ysk_ref, stats_s_ref = next(it), next(it)
    xbuf = next(it)                         # VMEM (th*stride + 2, W_in + 2, Cin_p)

    rt = pl.program_id(1)
    last = pl.num_programs(1) - 1
    w_in = x_main.shape[2]
    cin = x_main.shape[3]
    cout = y_ref.shape[3]
    hmain = th * stride

    if apply_bn_in:
        scale, shift = _bn_scale_shift(stats_in[...], g_in[...], b_in[...],
                                       inv_count, eps)

    def prep(ref, keep=None):
        v = ref[0].astype(jnp.float32)
        if apply_bn_in:                     # fused BN1 + ReLU on the conv input
            v = jnp.maximum(v * scale + shift, 0.0)
        if keep is not None:                # zero the halo row at image borders
            v = v * keep
        return v.astype(xbuf.dtype)

    # Assemble the zero-padded input tile in VMEM: rows 0 / hmain+1 hold the halo
    # rows from neighbouring tiles (zeroed at image borders), columns 0 / W_in+1
    # are the conv's zero padding.
    xbuf[...] = jnp.zeros_like(xbuf)
    xbuf[1:1 + hmain, 1:1 + w_in, :] = prep(x_main)
    xbuf[0:1, 1:1 + w_in, :] = prep(x_top, jnp.where(rt > 0, 1.0, 0.0))
    xbuf[hmain + 1:hmain + 2, 1:1 + w_in, :] = prep(
        x_bot, jnp.where(rt < last, 1.0, 0.0))
    padded = xbuf[...]

    if stride == 1:
        def tap(dy, dx):
            return padded[dy:dy + th, dx:dx + wo, :]
    else:
        # Parity-decimated sub-arrays: 4 strided copies instead of 9.
        sub = [[padded[i::stride, j::stride, :] for j in range(stride)]
               for i in range(stride)]

        def tap(dy, dx):
            return sub[dy % stride][dx % stride][
                dy // stride:dy // stride + th, dx // stride:dx // stride + wo, :]

    acc = jnp.zeros((th * wo, cout), jnp.float32)
    for dy in range(3):
        for dx in range(3):
            acc = acc + jnp.dot(tap(dy, dx).reshape(th * wo, cin), w_ref[dy, dx],
                                preferred_element_type=jnp.float32)

    y_ref[0] = acc.reshape(th, wo, cout).astype(y_ref.dtype)

    def accumulate_stats(ref, a):
        st = jnp.concatenate([jnp.sum(a, axis=0, keepdims=True),
                              jnp.sum(a * a, axis=0, keepdims=True)], axis=0)

        @pl.when(rt == 0)
        def _():
            ref[0] = st

        @pl.when(rt > 0)
        def _():
            ref[0] += st

    accumulate_stats(stats_ref, acc)

    if fuse_skip:
        # The strided 1x1 skip conv's input is exactly the centre tap.
        sacc = jnp.dot(tap(1, 1).reshape(th * wo, cin), ws_ref[...],
                       preferred_element_type=jnp.float32)
        ysk_ref[0] = sacc.reshape(th, wo, cout).astype(ysk_ref.dtype)
        accumulate_stats(stats_s_ref, sacc)


def conv3x3(x, w, *, stride, th, bn_in=None, skip_w=None, out_dtype):
    """Row-tiled 3x3 'same' conv with fused BN-stats epilogue.

    x: (N, H, W, Cin_p) in the matmul dtype; w: (3, 3, Cin_p, Cout_p).
    Returns (y, stats_per_image[, y_skip, skip_stats_per_image]):
      y      : (N, Ho, Wo, Cout_p) in out_dtype
      stats  : (N, 2, Cout_p) f32 per-image [sum; sum_sq] (reduce over axis 0).
    """
    N, H, W, Cin_p = x.shape
    Cout_p = w.shape[-1]
    assert H % stride == 0 and W % stride == 0   # TODO(synk): odd spatial dims
    Ho, Wo = H // stride, W // stride
    assert Ho % th == 0
    n_rt = Ho // th
    hmain = th * stride
    M = N * Ho * Wo

    apply_bn_in = bn_in is not None
    fuse_skip = skip_w is not None

    in_specs = [
        pl.BlockSpec((1, hmain, W, Cin_p), lambda n, r: (n, r, 0, 0)),
        pl.BlockSpec((1, 1, W, Cin_p),
                     lambda n, r: (n, jnp.maximum(r * hmain - 1, 0), 0, 0)),
        pl.BlockSpec((1, 1, W, Cin_p),
                     lambda n, r: (n, jnp.minimum(r * hmain + hmain, H - 1), 0, 0)),
        pl.BlockSpec((3, 3, Cin_p, Cout_p), lambda n, r: (0, 0, 0, 0)),
    ]
    inputs = [x, x, x, w]
    if apply_bn_in:
        stats_in, g_in, b_in = bn_in
        in_specs += [pl.BlockSpec((2, Cin_p), lambda n, r: (0, 0)),
                     pl.BlockSpec((1, Cin_p), lambda n, r: (0, 0)),
                     pl.BlockSpec((1, Cin_p), lambda n, r: (0, 0))]
        inputs += [stats_in, g_in, b_in]
    if fuse_skip:
        in_specs += [pl.BlockSpec((Cin_p, Cout_p), lambda n, r: (0, 0))]
        inputs += [skip_w]

    out_specs = [pl.BlockSpec((1, th, Wo, Cout_p), lambda n, r: (n, r, 0, 0)),
                 pl.BlockSpec((1, 2, Cout_p), lambda n, r: (n, 0, 0))]
    out_shape = [jax.ShapeDtypeStruct((N, Ho, Wo, Cout_p), out_dtype),
                 jax.ShapeDtypeStruct((N, 2, Cout_p), jnp.float32)]
    if fuse_skip:
        out_specs += [pl.BlockSpec((1, th, Wo, Cout_p), lambda n, r: (n, r, 0, 0)),
                      pl.BlockSpec((1, 2, Cout_p), lambda n, r: (n, 0, 0))]
        out_shape += [jax.ShapeDtypeStruct((N, Ho, Wo, Cout_p), out_dtype),
                      jax.ShapeDtypeStruct((N, 2, Cout_p), jnp.float32)]

    flops = 2 * M * 9 * Cin_p * Cout_p + (2 * M * Cin_p * Cout_p if fuse_skip else 0)
    bytes_accessed = (x.size * x.dtype.itemsize + w.size * w.dtype.itemsize
                      + (2 if fuse_skip else 1) * M * Cout_p
                      * jnp.dtype(out_dtype).itemsize + 4 * N * 2 * Cout_p)

    kern = functools.partial(_conv3x3_kernel, stride=stride, th=th, wo=Wo,
                             apply_bn_in=apply_bn_in, fuse_skip=fuse_skip,
                             inv_count=1.0 / M, eps=_EPS)
    return pl.pallas_call(
        kern,
        grid=(N, n_rt),
        in_specs=in_specs,
        out_specs=tuple(out_specs),
        out_shape=tuple(out_shape),
        scratch_shapes=[pltpu.VMEM((hmain + 2, W + 2, Cin_p), x.dtype)],
        compiler_params=_compiler_params(("parallel", "arbitrary")),
        cost_estimate=pl.CostEstimate(flops=int(flops), transcendentals=0,
                                      bytes_accessed=int(bytes_accessed)),
    )(*inputs)


# --------------------------------------------------------------------------- BN apply

def _bn_add_relu_kernel(y_ref, r_ref, stats_ref, g_ref, b_ref, o_ref,
                        *, inv_count, eps):
    """out = relu(BN(y) + identity_skip)."""
    scale, shift = _bn_scale_shift(stats_ref[...], g_ref[...], b_ref[...],
                                   inv_count, eps)
    out = (y_ref[...].astype(jnp.float32) * scale + shift
           + r_ref[...].astype(jnp.float32))
    o_ref[...] = jnp.maximum(out, 0.0).astype(o_ref.dtype)


def _bn_add_bn_relu_kernel(y_ref, ys_ref, stats_ref, stats_s_ref,
                           g_ref, b_ref, gs_ref, bs_ref, o_ref, *, inv_count, eps):
    """out = relu(BN2(y) + BN_skip(skip_conv)) -- both BN applies fused."""
    scale, shift = _bn_scale_shift(stats_ref[...], g_ref[...], b_ref[...],
                                   inv_count, eps)
    sscale, sshift = _bn_scale_shift(stats_s_ref[...], gs_ref[...], bs_ref[...],
                                     inv_count, eps)
    out = (y_ref[...].astype(jnp.float32) * scale + shift
           + ys_ref[...].astype(jnp.float32) * sscale + sshift)
    o_ref[...] = jnp.maximum(out, 0.0).astype(o_ref.dtype)


def bn_apply(y2, stats, gamma, beta, *, inv_count, residual,
             residual_stats=None, residual_gamma=None, residual_beta=None,
             out_dtype=jnp.float32, row_cap=1024):
    """Tiled BN apply fused with the residual add (+ optional skip BN) and ReLU."""
    M, Cp = y2.shape
    tm = _pick_row_tile(M, row_cap)
    row = pl.BlockSpec((tm, Cp), lambda i: (i, 0))
    chan2 = pl.BlockSpec((2, Cp), lambda i: (0, 0))
    chan1 = pl.BlockSpec((1, Cp), lambda i: (0, 0))
    common = dict(grid=(M // tm,),
                  out_specs=pl.BlockSpec((tm, Cp), lambda i: (i, 0)),
                  out_shape=jax.ShapeDtypeStruct((M, Cp), out_dtype),
                  compiler_params=_compiler_params(("parallel",)))
    if residual_stats is None:
        kern = functools.partial(_bn_add_relu_kernel, inv_count=inv_count, eps=_EPS)
        return pl.pallas_call(kern, in_specs=[row, row, chan2, chan1, chan1],
                              **common)(y2, residual, stats, gamma, beta)
    kern = functools.partial(_bn_add_bn_relu_kernel, inv_count=inv_count, eps=_EPS)
    return pl.pallas_call(
        kern,
        in_specs=[row, row, chan2, chan2, chan1, chan1, chan1, chan1],
        **common,
    )(y2, residual, stats, residual_stats, gamma, beta,
      residual_gamma, residual_beta)


# --------------------------------------------------------------------------- forward

def residual_layer_forward(x_nchw, params, stride=1, matmul_dtype=jnp.bfloat16,
                           conv_row_target=512, bn_row_cap=1024):
    """Forward pass of ResidualLayer.  Input/output are NCHW to match PyTorch."""
    x = jnp.transpose(x_nchw, (0, 2, 3, 1)).astype(jnp.float32)        # NCHW -> NHWC
    N, H, W, Cin = x.shape
    Cout = params["w1"].shape[-1]
    assert H % stride == 0 and W % stride == 0    # TODO(synk): odd spatial dims
    Cin_p = _round_up(Cin, _LANE)
    Cout_p = _round_up(Cout, _LANE)
    Ho, Wo = H // stride, W // stride
    M = N * Ho * Wo
    inv_count = 1.0 / M

    def pad_w(wt, ci_p, co_p):
        _, _, ci, co = wt.shape
        return jnp.pad(wt, ((0, 0), (0, 0), (0, ci_p - ci), (0, co_p - co))
                       ).astype(matmul_dtype)

    def pad_vec(v, c_p):
        return jnp.pad(v.astype(jnp.float32), (0, c_p - v.shape[0])).reshape(1, c_p)

    w1 = pad_w(params["w1"], Cin_p, Cout_p)
    w2 = pad_w(params["w2"], Cout_p, Cout_p)
    g1, b1 = pad_vec(params["g1"], Cout_p), pad_vec(params["b1"], Cout_p)
    g2, b2 = pad_vec(params["g2"], Cout_p), pad_vec(params["b2"], Cout_p)

    # Single XLA pass over the input: lane-dense channel pad + MXU dtype cast.
    # (The 3x3 halo is assembled inside the kernels from overlapping halo-row
    #  fetches -> no spatial-pad pass here nor between the convs.)
    x_cp = jnp.pad(x, ((0, 0), (0, 0), (0, 0), (0, Cin_p - Cin))).astype(matmul_dtype)

    th = _largest_divisor_at_most(Ho, max(1, conv_row_target // max(Wo, 1)))
    use_conv_skip = (stride != 1) or (Cin != Cout)

    # conv1 (strided, direct) + fused BN1 stats (+ fused 1x1 skip conv & its stats).
    if use_conv_skip:
        ws = pad_w(params["ws"], Cin_p, Cout_p)[0, 0]                  # (Cin_p, Cout_p)
        gs, bs = pad_vec(params["gs"], Cout_p), pad_vec(params["bs"], Cout_p)
        y1, stats1_n, ysk, stats_s_n = conv3x3(x_cp, w1, stride=stride, th=th,
                                               skip_w=ws, out_dtype=matmul_dtype)
        stats_s = jnp.sum(stats_s_n, axis=0)
    else:
        y1, stats1_n = conv3x3(x_cp, w1, stride=stride, th=th, out_dtype=matmul_dtype)
    stats1 = jnp.sum(stats1_n, axis=0)                                 # tiny (2, C) reduce

    # conv2 (stride 1): BN1 + ReLU fused onto the input tiles, BN2 stats fused.
    y2, stats2_n = conv3x3(y1, w2, stride=1, th=th, bn_in=(stats1, g1, b1),
                           out_dtype=matmul_dtype)
    stats2 = jnp.sum(stats2_n, axis=0)

    # final fused BN2 (+ skip-path BN) + residual add + ReLU.
    y2f = y2.reshape(M, Cout_p)
    if use_conv_skip:
        out = bn_apply(y2f, stats2, g2, b2, inv_count=inv_count,
                       residual=ysk.reshape(M, Cout_p), residual_stats=stats_s,
                       residual_gamma=gs, residual_beta=bs, row_cap=bn_row_cap)
    else:
        out = bn_apply(y2f, stats2, g2, b2, inv_count=inv_count,
                       residual=x_cp.reshape(M, Cout_p), row_cap=bn_row_cap)

    out = out.reshape(N, Ho, Wo, Cout_p)[..., :Cout]
    return jnp.transpose(out, (0, 3, 1, 2))                            # NHWC -> NCHW


# --------------------------------------------------------------------------- reference

def _ref_forward(x_nchw, params, stride=1):
    """Pure-f32 XLA reference (training-mode BN, biased variance)."""
    x = jnp.transpose(x_nchw, (0, 2, 3, 1)).astype(jnp.float32)
    Cin, Cout = x.shape[-1], params["w1"].shape[-1]

    def conv(v, w, s, pad):
        return lax.conv_general_dilated(v, w, (s, s), pad,
                                        dimension_numbers=("NHWC", "HWIO", "NHWC"))

    def bn(v, g, b):
        m = v.mean(axis=(0, 1, 2), keepdims=True)
        var = ((v - m) ** 2).mean(axis=(0, 1, 2), keepdims=True)
        return ((v - m) / jnp.sqrt(var + _EPS) * g.reshape(1, 1, 1, -1)
                + b.reshape(1, 1, 1, -1))

    y = jax.nn.relu(bn(conv(x, params["w1"], stride, ((1, 1), (1, 1))),
                       params["g1"], params["b1"]))
    y = bn(conv(y, params["w2"], 1, ((1, 1), (1, 1))), params["g2"], params["b2"])
    if stride != 1 or Cin != Cout:
        s_ = bn(conv(x, params["ws"], stride, ((0, 0), (0, 0))),
                params["gs"], params["bs"])
    else:
        s_ = x
    return jnp.transpose(jax.nn.relu(y + s_), (0, 3, 1, 2))


def init_params(key, in_channels, out_channels):
    ks = jax.random.split(key, 9)
    return {
        "w1": 0.1 * jax.random.normal(ks[0], (3, 3, in_channels, out_channels), jnp.float32),
        "w2": 0.1 * jax.random.normal(ks[1], (3, 3, out_channels, out_channels), jnp.float32),
        "ws": 0.1 * jax.random.normal(ks[2], (1, 1, in_channels, out_channels), jnp.float32),
        "g1": 1.0 + 0.1 * jax.random.normal(ks[3], (out_channels,), jnp.float32),
        "b1": 0.1 * jax.random.normal(ks[4], (out_channels,), jnp.float32),
        "g2": 1.0 + 0.1 * jax.random.normal(ks[5], (out_channels,), jnp.float32),
        "b2": 0.1 * jax.random.normal(ks[6], (out_channels,), jnp.float32),
        "gs": 1.0 + 0.1 * jax.random.normal(ks[7], (out_channels,), jnp.float32),
        "bs": 0.1 * jax.random.normal(ks[8], (out_channels,), jnp.float32),
    }


# --------------------------------------------------------------------------- main

if __name__ == "__main__":
    key = jax.random.PRNGKey(0)

    # (in_ch, out_ch, stride, conv_row_target) -- small row targets force
    # multi-tile grids so the halo / stats-accumulation paths are exercised.
    cases = [
        (4, 8, 1, 64),    # conv skip (channel change), 4 row tiles per image
        (4, 8, 2, 32),    # strided conv + fused strided 1x1 skip, 2 row tiles
        (8, 8, 1, 512),   # identity skip, single row tile per image
    ]
    for idx, (ci, co, s, rt_target) in enumerate(cases):
        kp, kx = jax.random.split(jax.random.fold_in(key, idx))
        params = init_params(kp, ci, co)
        x = jax.random.normal(kx, (2, ci, 16, 16), jnp.float32)        # NCHW
        ref = _ref_forward(x, params, stride=s)

        fwd = jax.jit(functools.partial(residual_layer_forward, stride=s,
                                        matmul_dtype=jnp.float32,
                                        conv_row_target=rt_target))
        out = jax.block_until_ready(fwd(x, params))
        assert out.shape == ref.shape, (out.shape, ref.shape)
        assert jnp.allclose(out, ref, atol=1e-3, rtol=1e-3), \
            (idx, float(jnp.max(jnp.abs(out - ref))))

    # bf16 matmul inputs + bf16 intermediates: the performance configuration.
    ci, co, s = 4, 8, 1
    kp, kx = jax.random.split(jax.random.fold_in(key, 100))
    params = init_params(kp, ci, co)
    x = jax.random.normal(kx, (2, ci, 16, 16), jnp.float32)
    ref = _ref_forward(x, params, stride=s)
    fwd = jax.jit(functools.partial(residual_layer_forward, stride=s,
                                    matmul_dtype=jnp.bfloat16))
    out = jax.block_until_ready(fwd(x, params))
    assert out.shape == ref.shape, (out.shape, ref.shape)
    assert jnp.allclose(out, ref, atol=6e-2, rtol=6e-2), \
        float(jnp.max(jnp.abs(out - ref)))

    print("KERNEL_OK")
</pallas_src>

<mosaic_0001>
module attributes {stable_mosaic.version = 11 : i64} {
  func.func @_bn_add_bn_relu_kernel(%arg0: i32, %arg1: memref<512x128xf32, #tpu.memory_space<vmem>>, %arg2: memref<512x128xf32, #tpu.memory_space<vmem>>, %arg3: memref<2x128xf32, #tpu.memory_space<vmem>>, %arg4: memref<2x128xf32, #tpu.memory_space<vmem>>, %arg5: memref<1x128xf32, #tpu.memory_space<vmem>>, %arg6: memref<1x128xf32, #tpu.memory_space<vmem>>, %arg7: memref<1x128xf32, #tpu.memory_space<vmem>>, %arg8: memref<1x128xf32, #tpu.memory_space<vmem>>, %arg9: memref<512x128xf32, #tpu.memory_space<vmem>>) attributes {dimension_semantics = [#tpu.dimension_semantics<parallel>], iteration_bounds = array<i64: 1>, scalar_prefetch = 0 : i64, scratch_operands = 0 : i64, tpu.core_type = #tpu.core_type<tc>, window_params = [{transform_indices = @transform_0, window_bounds = array<i64: 512, 128>}, {transform_indices = @transform_1, window_bounds = array<i64: 512, 128>}, {pipeline_mode = #tpu.pipeline_mode<synchronous>, transform_indices = @transform_2, window_bounds = array<i64: 2, 128>}, {pipeline_mode = #tpu.pipeline_mode<synchronous>, transform_indices = @transform_3, window_bounds = array<i64: 2, 128>}, {pipeline_mode = #tpu.pipeline_mode<synchronous>, transform_indices = @transform_4, window_bounds = array<i64: 1, 128>}, {pipeline_mode = #tpu.pipeline_mode<synchronous>, transform_indices = @transform_5, window_bounds = array<i64: 1, 128>}, {pipeline_mode = #tpu.pipeline_mode<synchronous>, transform_indices = @transform_6, window_bounds = array<i64: 1, 128>}, {pipeline_mode = #tpu.pipeline_mode<synchronous>, transform_indices = @transform_7, window_bounds = array<i64: 1, 128>}, {transform_indices = @transform_8, window_bounds = array<i64: 512, 128>}]} {
    %c0 = arith.constant 0 : index
    %c0_0 = arith.constant 0 : index
    %0 = vector.load %arg3[%c0, %c0_0] : memref<2x128xf32, #tpu.memory_space<vmem>>, vector<2x128xf32>
    %c0_1 = arith.constant 0 : index
    %c0_2 = arith.constant 0 : index
    %1 = vector.load %arg5[%c0_1, %c0_2] : memref<1x128xf32, #tpu.memory_space<vmem>>, vector<1x128xf32>
    %c0_3 = arith.constant 0 : index
    %c0_4 = arith.constant 0 : index
    %2 = vector.load %arg6[%c0_3, %c0_4] : memref<1x128xf32, #tpu.memory_space<vmem>>, vector<1x128xf32>
    %3 = vector.extract_strided_slice %0 {offsets = [0, 0], sizes = [1, 128], strides = [1, 1]} : vector<2x128xf32> to vector<1x128xf32>
    %cst = arith.constant 0.001953125 : f32
    %4 = vector.broadcast %cst : f32 to vector<1x128xf32>
    %5 = arith.mulf %3, %4 : vector<1x128xf32>
    %6 = vector.extract_strided_slice %0 {offsets = [1, 0], sizes = [1, 128], strides = [1, 1]} : vector<2x128xf32> to vector<1x128xf32>
    %cst_5 = arith.constant 0.001953125 : f32
    %7 = vector.broadcast %cst_5 : f32 to vector<1x128xf32>
    %8 = arith.mulf %6, %7 : vector<1x128xf32>
    %9 = arith.mulf %5, %5 : vector<1x128xf32>
    %10 = arith.subf %8, %9 : vector<1x128xf32>
    %cst_6 = arith.constant 0.000000e+00 : f32
    %11 = vector.broadcast %cst_6 : f32 to vector<1x128xf32>
    %12 = arith.maximumf %10, %11 : vector<1x128xf32>
    %cst_7 = arith.constant 9.99999974E-6 : f32
    %13 = vector.broadcast %cst_7 : f32 to vector<1x128xf32>
    %14 = arith.addf %12, %13 : vector<1x128xf32>
    %15 = math.rsqrt %14 : vector<1x128xf32>
    %16 = arith.mulf %1, %15 : vector<1x128xf32>
    %17 = arith.mulf %5, %16 : vector<1x128xf32>
    %18 = arith.subf %2, %17 : vector<1x128xf32>
    %c0_8 = arith.constant 0 : index
    %c0_9 = arith.constant 0 : index
    %19 = vector.load %arg4[%c0_8, %c0_9] : memref<2x128xf32, #tpu.memory_space<vmem>>, vector<2x128xf32>
    %c0_10 = arith.constant 0 : index
    %c0_11 = arith.constant 0 : index
    %20 = vector.load %arg7[%c0_10, %c0_11] : memref<1x128xf32, #tpu.memory_space<vmem>>, vector<1x128xf32>
    %c0_12 = arith.constant 0 : index
    %c0_13 = arith.constant 0 : index
    %21 = vector.load %arg8[%c0_12, %c0_13] : memref<1x128xf32, #tpu.memory_space<vmem>>, vector<1x128xf32>
    %22 = vector.extract_strided_slice %19 {offsets = [0, 0], sizes = [1, 128], strides = [1, 1]} : vector<2x128xf32> to vector<1x128xf32>
    %cst_14 = arith.constant 0.001953125 : f32
    %23 = vector.broadcast %cst_14 : f32 to vector<1x128xf32>
    %24 = arith.mulf %22, %23 : vector<1x128xf32>
    %25 = vector.extract_strided_slice %19 {offsets = [1, 0], sizes = [1, 128], strides = [1, 1]} : vector<2x128xf32> to vector<1x128xf32>
    %cst_15 = arith.constant 0.001953125 : f32
    %26 = vector.broadcast %cst_15 : f32 to vector<1x128xf32>
    %27 = arith.mulf %25, %26 : vector<1x128xf32>
    %28 = arith.mulf %24, %24 : vector<1x128xf32>
    %29 = arith.subf %27, %28 : vector<1x128xf32>
    %cst_16 = arith.constant 0.000000e+00 : f32
    %30 = vector.broadcast %cst_16 : f32 to vector<1x128xf32>
    %31 = arith.maximumf %29, %30 : vector<1x128xf32>
    %cst_17 = arith.constant 9.99999974E-6 : f32
    %32 = vector.broadcast %cst_17 : f32 to vector<1x128xf32>
    %33 = arith.addf %31, %32 : vector<1x128xf32>
    %34 = math.rsqrt %33 : vector<1x128xf32>
    %35 = arith.mulf %20, %34 : vector<1x128xf32>
    %36 = arith.mulf %24, %35 : vector<1x128xf32>
    %37 = arith.subf %21, %36 : vector<1x128xf32>
    %c0_18 = arith.constant 0 : index
    %c0_19 = arith.constant 0 : index
    %38 = vector.load %arg1[%c0_18, %c0_19] : memref<512x128xf32, #tpu.memory_space<vmem>>, vector<512x128xf32>
    %39 = vector.broadcast %16 : vector<1x128xf32> to vector<512x128xf32>
    %40 = arith.mulf %38, %39 : vector<512x128xf32>
    %41 = vector.broadcast %18 : vector<1x128xf32> to vector<512x128xf32>
    %42 = arith.addf %40, %41 : vector<512x128xf32>
    %c0_20 = arith.constant 0 : index
    %c0_21 = arith.constant 0 : index
    %43 = vector.load %arg2[%c0_20, %c0_21] : memref<512x128xf32, #tpu.memory_space<vmem>>, vector<512x128xf32>
    %44 = vector.broadcast %35 : vector<1x128xf32> to vector<512x128xf32>
    %45 = arith.mulf %43, %44 : vector<512x128xf32>
    %46 = arith.addf %42, %45 : vector<512x128xf32>
    %47 = vector.broadcast %37 : vector<1x128xf32> to vector<512x128xf32>
    %48 = arith.addf %46, %47 : vector<512x128xf32>
    %cst_22 = arith.constant 0.000000e+00 : f32
    %49 = vector.broadcast %cst_22 : f32 to vector<512x128xf32>
    %50 = arith.maximumf %48, %49 : vector<512x128xf32>
    %c0_23 = arith.constant 0 : index
    %c0_24 = arith.constant 0 : index
    %51 = vector.load %arg9[%c0_23, %c0_24] : memref<512x128xf32, #tpu.memory_space<vmem>>, vector<512x128xf32>
    tpu.vector_store %arg9[%c0_23, %c0_24], %50 {strides = array<i32>} : memref<512x128xf32, #tpu.memory_space<vmem>>, vector<512x128xf32>,
    return
  }
  func.func @transform_0(%arg0: i32) -> (i32, i32) {
    %c0_i32 = arith.constant 0 : i32
    %c0_i32_0 = arith.constant 0 : i32
    return %arg0, %c0_i32 : i32, i32
  }
  func.func @transform_1(%arg0: i32) -> (i32, i32) {
    %c0_i32 = arith.constant 0 : i32
    %c0_i32_0 = arith.constant 0 : i32
    return %arg0, %c0_i32 : i32, i32
  }
  func.func @transform_2(%arg0: i32) -> (i32, i32) {
    %c0_i32 = arith.constant 0 : i32
    %c0_i32_0 = arith.constant 0 : i32
    %c0_i32_1 = arith.constant 0 : i32
    return %c0_i32, %c0_i32_0 : i32, i32
  }
  func.func @transform_3(%arg0: i32) -> (i32, i32) {
    %c0_i32 = arith.constant 0 : i32
    %c0_i32_0 = arith.constant 0 : i32
    %c0_i32_1 = arith.constant 0 : i32
    return %c0_i32, %c0_i32_0 : i32, i32
  }
  func.func @transform_4(%arg0: i32) -> (i32, i32) {
    %c0_i32 = arith.constant 0 : i32
    %c0_i32_0 = arith.constant 0 : i32
    %c0_i32_1 = arith.constant 0 : i32
    return %c0_i32, %c0_i32_0 : i32, i32
  }
  func.func @transform_5(%arg0: i32) -> (i32, i32) {
    %c0_i32 = arith.constant 0 : i32
    %c0_i32_0 = arith.constant 0 : i32
    %c0_i32_1 = arith.constant 0 : i32
    return %c0_i32, %c0_i32_0 : i32, i32
  }
  func.func @transform_6(%arg0: i32) -> (i32, i32) {
    %c0_i32 = arith.constant 0 : i32
    %c0_i32_0 = arith.constant 0 : i32
    %c0_i32_1 = arith.constant 0 : i32
    return %c0_i32, %c0_i32_0 : i32, i32
  }
  func.func @transform_7(%arg0: i32) -> (i32, i32) {
    %c0_i32 = arith.constant 0 : i32
    %c0_i32_0 = arith.constant 0 : i32
    %c0_i32_1 = arith.constant 0 : i32
    return %c0_i32, %c0_i32_0 : i32, i32
  }
  func.func @transform_8(%arg0: i32) -> (i32, i32) {
    %c0_i32 = arith.constant 0 : i32
    %c0_i32_0 = arith.constant 0 : i32
    return %arg0, %c0_i32 : i32, i32
  }
}

module attributes {stable_mosaic.version = 11 : i64} {
  func.func @_conv3x3_kernel(%arg0: i32, %arg1: i32, %arg2: memref<1x4x16x128xf32, #tpu.memory_space<vmem>>, %arg3: memref<1x1x16x128xf32, #tpu.memory_space<vmem>>, %arg4: memref<1x1x16x128xf32, #tpu.memory_space<vmem>>, %arg5: memref<3x3x128x128xf32, #tpu.memory_space<vmem>>, %arg6: memref<128x128xf32, #tpu.memory_space<vmem>>, %arg7: memref<1x4x16x128xf32, #tpu.memory_space<vmem>>, %arg8: memref<1x2x128xf32, #tpu.memory_space<vmem>>, %arg9: memref<1x4x16x128xf32, #tpu.memory_space<vmem>>, %arg10: memref<1x2x128xf32, #tpu.memory_space<vmem>>, %arg11: memref<6x18x128xf32, #tpu.memory_space<vmem>>) attributes {dimension_semantics = [#tpu.dimension_semantics<parallel>, #tpu.dimension_semantics<arbitrary>], iteration_bounds = array<i64: 2, 4>, scalar_prefetch = 0 : i64, scratch_operands = 1 : i64, tpu.core_type = #tpu.core_type<tc>, window_params = [{transform_indices = @transform_0, window_bounds = array<i64: 1, 4, 16, 128>}, {transform_indices = @transform_1, window_bounds = array<i64: 1, 1, 16, 128>}, {transform_indices = @transform_2, window_bounds = array<i64: 1, 1, 16, 128>}, {pipeline_mode = #tpu.pipeline_mode<synchronous>, transform_indices = @transform_3, window_bounds = array<i64: 3, 3, 128, 128>}, {pipeline_mode = #tpu.pipeline_mode<synchronous>, transform_indices = @transform_4, window_bounds = array<i64: 128, 128>}, {transform_indices = @transform_5, window_bounds = array<i64: 1, 4, 16, 128>}, {transform_indices = @transform_6, window_bounds = array<i64: 1, 2, 128>}, {transform_indices = @transform_7, window_bounds = array<i64: 1, 4, 16, 128>}, {transform_indices = @transform_8, window_bounds = array<i64: 1, 2, 128>}]} {
    %cst = arith.constant 0.000000e+00 : f32
    %0 = vector.broadcast %cst : f32 to vector<6x18x128xf32>
    %c0 = arith.constant 0 : index
    %c0_0 = arith.constant 0 : index
    %c0_1 = arith.constant 0 : index
    %1 = vector.load %arg11[%c0, %c0_0, %c0_1] : memref<6x18x128xf32, #tpu.memory_space<vmem>>, vector<6x18x128xf32>
    tpu.vector_store %arg11[%c0, %c0_0, %c0_1], %0 {strides = array<i32>} : memref<6x18x128xf32, #tpu.memory_space<vmem>>, vector<6x18x128xf32>,
    %c0_2 = arith.constant 0 : index
    %c0_3 = arith.constant 0 : index
    %c0_4 = arith.constant 0 : index
    %c0_5 = arith.constant 0 : index
    %2 = vector.load %arg2[%c0_2, %c0_3, %c0_4, %c0_5] : memref<1x4x16x128xf32, #tpu.memory_space<vmem>>, vector<1x4x16x128xf32>
    %3 = vector.shape_cast %2 : vector<1x4x16x128xf32> to vector<4x16x128xf32>
    %c1 = arith.constant 1 : index
    %c1_6 = arith.constant 1 : index
    %c0_7 = arith.constant 0 : index
    %4 = vector.load %arg11[%c1, %c1_6, %c0_7] : memref<6x18x128xf32, #tpu.memory_space<vmem>>, vector<4x16x128xf32>
    tpu.vector_store %arg11[%c1, %c1_6, %c0_7], %3 {strides = array<i32>} : memref<6x18x128xf32, #tpu.memory_space<vmem>>, vector<4x16x128xf32>,
    %c0_i32 = arith.constant 0 : i32
    %5 = arith.cmpi sgt, %arg1, %c0_i32 : i32
    %cst_8 = arith.constant 1.000000e+00 : f32
    %cst_9 = arith.constant 0.000000e+00 : f32
    %6 = arith.select %5, %cst_8, %cst_9 : f32
    %c0_10 = arith.constant 0 : index
    %c0_11 = arith.constant 0 : index
    %c0_12 = arith.constant 0 : index
    %c0_13 = arith.constant 0 : index
    %7 = vector.load %arg3[%c0_10, %c0_11, %c0_12, %c0_13] : memref<1x1x16x128xf32, #tpu.memory_space<vmem>>, vector<1x1x16x128xf32>
    %8 = vector.shape_cast %7 : vector<1x1x16x128xf32> to vector<1x16x128xf32>
    %9 = vector.broadcast %6 : f32 to vector<1x16x128xf32>
    %10 = arith.mulf %8, %9 : vector<1x16x128xf32>
    %c0_14 = arith.constant 0 : index
    %c1_15 = arith.constant 1 : index
    %c0_16 = arith.constant 0 : index
    %11 = vector.load %arg11[%c0_14, %c1_15, %c0_16] : memref<6x18x128xf32, #tpu.memory_space<vmem>>, vector<1x16x128xf32>
    tpu.vector_store %arg11[%c0_14, %c1_15, %c0_16], %10 {strides = array<i32>} : memref<6x18x128xf32, #tpu.memory_space<vmem>>, vector<1x16x128xf32>,
    %c3_i32 = arith.constant 3 : i32
    %12 = arith.cmpi slt, %arg1, %c3_i32 : i32
    %cst_17 = arith.constant 1.000000e+00 : f32
    %cst_18 = arith.constant 0.000000e+00 : f32
    %13 = arith.select %12, %cst_17, %cst_18 : f32
    %c0_19 = arith.constant 0 : index
    %c0_20 = arith.constant 0 : index
    %c0_21 = arith.constant 0 : index
    %c0_22 = arith.constant 0 : index
    %14 = vector.load %arg4[%c0_19, %c0_20, %c0_21, %c0_22] : memref<1x1x16x128xf32, #tpu.memory_space<vmem>>, vector<1x1x16x128xf32>
    %15 = vector.shape_cast %14 : vector<1x1x16x128xf32> to vector<1x16x128xf32>
    %16 = vector.broadcast %13 : f32 to vector<1x16x128xf32>
    %17 = arith.mulf %15, %16 : vector<1x16x128xf32>
    %c5 = arith.constant 5 : index
    %c1_23 = arith.constant 1 : index
    %c0_24 = arith.constant 0 : index
    %18 = vector.load %arg11[%c5, %c1_23, %c0_24] : memref<6x18x128xf32, #tpu.memory_space<vmem>>, vector<1x16x128xf32>
    tpu.vector_store %arg11[%c5, %c1_23, %c0_24], %17 {strides = array<i32>} : memref<6x18x128xf32, #tpu.memory_space<vmem>>, vector<1x16x128xf32>,
    %c0_25 = arith.constant 0 : index
    %c0_26 = arith.constant 0 : index
    %c0_27 = arith.constant 0 : index
    %19 = vector.load %arg11[%c0_25, %c0_26, %c0_27] : memref<6x18x128xf32, #tpu.memory_space<vmem>>, vector<6x18x128xf32>
    %cst_28 = arith.constant 0.000000e+00 : f32
    %20 = vector.broadcast %cst_28 : f32 to vector<64x128xf32>
    %21 = vector.extract_strided_slice %19 {offsets = [0, 0, 0], sizes = [4, 16, 128], strides = [1, 1, 1]} : vector<6x18x128xf32> to vector<4x16x128xf32>
    %22 = vector.shape_cast %21 : vector<4x16x128xf32> to vector<64x128xf32>
    %c0_29 = arith.constant 0 : index
    %c0_30 = arith.constant 0 : index
    %c0_31 = arith.constant 0 : index
    %c0_32 = arith.constant 0 : index
    %23 = vector.load %arg5[%c0_29, %c0_30, %c0_31, %c0_32] : memref<3x3x128x128xf32, #tpu.memory_space<vmem>>, vector<1x1x128x128xf32>
    %24 = vector.shape_cast %23 : vector<1x1x128x128xf32> to vector<128x128xf32>
    %cst_33 = arith.constant dense<0.000000e+00> : vector<64x128xf32>
    %25 = tpu.matmul %22, %24, %cst_33 {dimension_numbers = #tpu.dot_dimension_numbers<[1], [0], [0], [1], [0, 0, 1, 1], [], []>} : vector<64x128xf32>, vector<128x128xf32>, vector<64x128xf32> -> vector<64x128xf32>
    %26 = arith.addf %20, %25 : vector<64x128xf32>
    %27 = vector.extract_strided_slice %19 {offsets = [0, 1, 0], sizes = [4, 16, 128], strides = [1, 1, 1]} : vector<6x18x128xf32> to vector<4x16x128xf32>
    %28 = vector.shape_cast %27 : vector<4x16x128xf32> to vector<64x128xf32>
    %c0_34 = arith.constant 0 : index
    %c1_35 = arith.constant 1 : index
    %c0_36 = arith.constant 0 : index
    %c0_37 = arith.constant 0 : index
    %29 = vector.load %arg5[%c0_34, %c1_35, %c0_36, %c0_37] : memref<3x3x128x128xf32, #tpu.memory_space<vmem>>, vector<1x1x128x128xf32>
    %30 = vector.shape_cast %29 : vector<1x1x128x128xf32> to vector<128x128xf32>
    %cst_38 = arith.constant dense<0.000000e+00> : vector<64x128xf32>
    %31 = tpu.matmul %28, %30, %cst_38 {dimension_numbers = #tpu.dot_dimension_numbers<[1], [0], [0], [1], [0, 0, 1, 1], [], []>} : vector<64x128xf32>, vector<128x128xf32>, vector<64x128xf32> -> vector<64x128xf32>
    %32 = arith.addf %26, %31 : vector<64x128xf32>
    %33 = vector.extract_strided_slice %19 {offsets = [0, 2, 0], sizes = [4, 16, 128], strides = [1, 1, 1]} : vector<6x18x128xf32> to vector<4x16x128xf32>
    %34 = vector.shape_cast %33 : vector<4x16x128xf32> to vector<64x128xf32>
    %c0_39 = arith.constant 0 : index
    %c2 = arith.constant 2 : index
    %c0_40 = arith.constant 0 : index
    %c0_41 = arith.constant 0 : index
    %35 = vector.load %arg5[%c0_39, %c2, %c0_40, %c0_41] : memref<3x3x128x128xf32, #tpu.memory_space<vmem>>, vector<1x1x128x128xf32>
    %36 = vector.shape_cast %35 : vector<1x1x128x128xf32> to vector<128x128xf32>
    %cst_42 = arith.constant dense<0.000000e+00> : vector<64x128xf32>
    %37 = tpu.matmul %34, %36, %cst_42 {dimension_numbers = #tpu.dot_dimension_numbers<[1], [0], [0], [1], [0, 0, 1, 1], [], []>} : vector<64x128xf32>, vector<128x128xf32>, vector<64x128xf32> -> vector<64x128xf32>
    %38 = arith.addf %32, %37 : vector<64x128xf32>
    %39 = vector.extract_strided_slice %19 {offsets = [1, 0, 0], sizes = [4, 16, 128], strides = [1, 1, 1]} : vector<6x18x128xf32> to vector<4x16x128xf32>
    %40 = vector.shape_cast %39 : vector<4x16x128xf32> to vector<64x128xf32>
    %c1_43 = arith.constant 1 : index
    %c0_44 = arith.constant 0 : index
    %c0_45 = arith.constant 0 : index
    %c0_46 = arith.constant 0 : index
    %41 = vector.load %arg5[%c1_43, %c0_44, %c0_45, %c0_46] : memref<3x3x128x128xf32, #tpu.memory_space<vmem>>, vector<1x1x128x128xf32>
    %42 = vector.shape_cast %41 : vector<1x1x128x128xf32> to vector<128x128xf32>
    %cst_47 = arith.constant dense<0.000000e+00> : vector<64x128xf32>
    %43 = tpu.matmul %40, %42, %cst_47 {dimension_numbers = #tpu.dot_dimension_numbers<[1], [0], [0], [1], [0, 0, 1, 1], [], []>} : vector<64x128xf32>, vector<128x128xf32>, vector<64x128xf32> -> vector<64x128xf32>
    %44 = arith.addf %38, %43 : vector<64x128xf32>
    %45 = vector.extract_strided_slice %19 {offsets = [1, 1, 0], sizes = [4, 16, 128], strides = [1, 1, 1]} : vector<6x18x128xf32> to vector<4x16x128xf32>
    %46 = vector.shape_cast %45 : vector<4x16x128xf32> to vector<64x128xf32>
    %c1_48 = arith.constant 1 : index
    %c1_49 = arith.constant 1 : index
    %c0_50 = arith.constant 0 : index
    %c0_51 = arith.constant 0 : index
    %47 = vector.load %arg5[%c1_48, %c1_49, %c0_50, %c0_51] : memref<3x3x128x128xf32, #tpu.memory_space<vmem>>, vector<1x1x128x128xf32>
    %48 = vector.shape_cast %47 : vector<1x1x128x128xf32> to vector<128x128xf32>
    %cst_52 = arith.constant dense<0.000000e+00> : vector<64x128xf32>
    %49 = tpu.matmul %46, %48, %cst_52 {dimension_numbers = #tpu.dot_dimension_numbers<[1], [0], [0], [1], [0, 0, 1, 1], [], []>} : vector<64x128xf32>, vector<128x128xf32>, vector<64x128xf32> -> vector<64x128xf32>
    %50 = arith.addf %44, %49 : vector<64x128xf32>
    %51 = vector.extract_strided_slice %19 {offsets = [1, 2, 0], sizes = [4, 16, 128], strides = [1, 1, 1]} : vector<6x18x128xf32> to vector<4x16x128xf32>
    %52 = vector.shape_cast %51 : vector<4x16x128xf32> to vector<64x128xf32>
    %c1_53 = arith.constant 1 : index
    %c2_54 = arith.constant 2 : index
    %c0_55 = arith.constant 0 : index
    %c0_56 = arith.constant 0 : index
    %53 = vector.load %arg5[%c1_53, %c2_54, %c0_55, %c0_56] : memref<3x3x128x128xf32, #tpu.memory_space<vmem>>, vector<1x1x128x128xf32>
    %54 = vector.shape_cast %53 : vector<1x1x128x128xf32> to vector<128x128xf32>
    %cst_57 = arith.constant dense<0.000000e+00> : vector<64x128xf32>
    %55 = tpu.matmul %52, %54, %cst_57 {dimension_numbers = #tpu.dot_dimension_numbers<[1], [0], [0], [1], [0, 0, 1, 1], [], []>} : vector<64x128xf32>, vector<128x128xf32>, vector<64x128xf32> -> vector<64x128xf32>
    %56 = arith.addf %50, %55 : vector<64x128xf32>
    %57 = vector.extract_strided_slice %19 {offsets = [2, 0, 0], sizes = [4, 16, 128], strides = [1, 1, 1]} : vector<6x18x128xf32> to vector<4x16x128xf32>
    %58 = vector.shape_cast %57 : vector<4x16x128xf32> to vector<64x128xf32>
    %c2_58 = arith.constant 2 : index
    %c0_59 = arith.constant 0 : index
    %c0_60 = arith.constant 0 : index
    %c0_61 = arith.constant 0 : index
    %59 = vector.load %arg5[%c2_58, %c0_59, %c0_60, %c0_61] : memref<3x3x128x128xf32, #tpu.memory_space<vmem>>, vector<1x1x128x128xf32>
    %60 = vector.shape_cast %59 : vector<1x1x128x128xf32> to vector<128x128xf32>
    %cst_62 = arith.constant dense<0.000000e+00> : vector<64x128xf32>
    %61 = tpu.matmul %58, %60, %cst_62 {dimension_numbers = #tpu.dot_dimension_numbers<[1], [0], [0], [1], [0, 0, 1, 1], [], []>} : vector<64x128xf32>, vector<128x128xf32>, vector<64x128xf32> -> vector<64x128xf32>
    %62 = arith.addf %56, %61 : vector<64x128xf32>
    %63 = vector.extract_strided_slice %19 {offsets = [2, 1, 0], sizes = [4, 16, 128], strides = [1, 1, 1]} : vector<6x18x128xf32> to vector<4x16x128xf32>
    %64 = vector.shape_cast %63 : vector<4x16x128xf32> to vector<64x128xf32>
    %c2_63 = arith.constant 2 : index
    %c1_64 = arith.constant 1 : index
    %c0_65 = arith.constant 0 : index
    %c0_66 = arith.constant 0 : index
    %65 = vector.load %arg5[%c2_63, %c1_64, %c0_65, %c0_66] : memref<3x3x128x128xf32, #tpu.memory_space<vmem>>, vector<1x1x128x128xf32>
    %66 = vector.shape_cast %65 : vector<1x1x128x128xf32> to vector<128x128xf32>
    %cst_67 = arith.constant dense<0.000000e+00> : vector<64x128xf32>
    %67 = tpu.matmul %64, %66, %cst_67 {dimension_numbers = #tpu.dot_dimension_numbers<[1], [0], [0], [1], [0, 0, 1, 1], [], []>} : vector<64x128xf32>, vector<128x128xf32>, vector<64x128xf32> -> vector<64x128xf32>
    %68 = arith.addf %62, %67 : vector<64x128xf32>
    %69 = vector.extract_strided_slice %19 {offsets = [2, 2, 0], sizes = [4, 16, 128], strides = [1, 1, 1]} : vector<6x18x128xf32> to vector<4x16x128xf32>
    %70 = vector.shape_cast %69 : vector<4x16x128xf32> to vector<64x128xf32>
    %c2_68 = arith.constant 2 : index
    %c2_69 = arith.constant 2 : index
    %c0_70 = arith.constant 0 : index
    %c0_71 = arith.constant 0 : index
    %71 = vector.load %arg5[%c2_68, %c2_69, %c0_70, %c0_71] : memref<3x3x128x128xf32, #tpu.memory_space<vmem>>, vector<1x1x128x128xf32>
    %72 = vector.shape_cast %71 : vector<1x1x128x128xf32> to vector<128x128xf32>
    %cst_72 = arith.constant dense<0.000000e+00> : vector<64x128xf32>
    %73 = tpu.matmul %70, %72, %cst_72 {dimension_numbers = #tpu.dot_dimension_numbers<[1], [0], [0], [1], [0, 0, 1, 1], [], []>} : vector<64x128xf32>, vector<128x128xf32>, vector<64x128xf32> -> vector<64x128xf32>
    %74 = arith.addf %68, %73 : vector<64x128xf32>
    %75 = vector.shape_cast %74 : vector<64x128xf32> to vector<4x16x128xf32>
    %c0_73 = arith.constant 0 : index
    %c0_74 = arith.constant 0 : index
    %c0_75 = arith.constant 0 : index
    %c0_76 = arith.constant 0 : index
    %76 = vector.load %arg7[%c0_73, %c0_74, %c0_75, %c0_76] : memref<1x4x16x128xf32, #tpu.memory_space<vmem>>, vector<1x4x16x128xf32>
    %77 = vector.shape_cast %76 : vector<1x4x16x128xf32> to vector<4x16x128xf32>
    %78 = vector.shape_cast %75 : vector<4x16x128xf32> to vector<1x4x16x128xf32>
    tpu.vector_store %arg7[%c0_73, %c0_74, %c0_75, %c0_76], %78 {strides = array<i32>} : memref<1x4x16x128xf32, #tpu.memory_space<vmem>>, vector<1x4x16x128xf32>,
    %cst_77 = arith.constant dense<0.000000e+00> : vector<128xf32>
    %79 = vector.multi_reduction <add>, %74, %cst_77 [0] : vector<64x128xf32> to vector<128xf32>
    %80 = vector.shape_cast %79 : vector<128xf32> to vector<1x128xf32>
    %81 = arith.mulf %74, %74 : vector<64x128xf32>
    %cst_78 = arith.constant dense<0.000000e+00> : vector<128xf32>
    %82 = vector.multi_reduction <add>, %81, %cst_78 [0] : vector<64x128xf32> to vector<128xf32>
    %83 = vector.shape_cast %82 : vector<128xf32> to vector<1x128xf32>
    %84 = tpu.concatenate %80, %83 in 0 : vector<1x128xf32>, vector<1x128xf32> -> vector<2x128xf32>
    %c0_i32_79 = arith.constant 0 : i32
    %85 = arith.cmpi eq, %arg1, %c0_i32_79 : i32
    %86 = arith.extui %85 : i1 to i32
    %c0_i32_80 = arith.constant 0 : i32
    %87 = arith.cmpi ne, %86, %c0_i32_80 : i32
    scf.if %87 {
      %c0_96 = arith.constant 0 : index
      %c0_97 = arith.constant 0 : index
      %c0_98 = arith.constant 0 : index
      %111 = vector.load %arg8[%c0_96, %c0_97, %c0_98] : memref<1x2x128xf32, #tpu.memory_space<vmem>>, vector<1x2x128xf32>
      %112 = vector.shape_cast %111 : vector<1x2x128xf32> to vector<2x128xf32>
      %113 = vector.shape_cast %84 : vector<2x128xf32> to vector<1x2x128xf32>
      tpu.vector_store %arg8[%c0_96, %c0_97, %c0_98], %113 {strides = array<i32>} : memref<1x2x128xf32, #tpu.memory_space<vmem>>, vector<1x2x128xf32>,
    } else {
    }
    %c0_i32_81 = arith.constant 0 : i32
    %88 = arith.cmpi sgt, %arg1, %c0_i32_81 : i32
    %89 = arith.extui %88 : i1 to i32
    %c0_i32_82 = arith.constant 0 : i32
    %90 = arith.cmpi ne, %89, %c0_i32_82 : i32
    scf.if %90 {
      %c0_96 = arith.constant 0 : index
      %c0_97 = arith.constant 0 : index
      %c0_98 = arith.constant 0 : index
      %111 = vector.load %arg8[%c0_96, %c0_97, %c0_98] : memref<1x2x128xf32, #tpu.memory_space<vmem>>, vector<1x2x128xf32>
      %112 = vector.shape_cast %111 : vector<1x2x128xf32> to vector<2x128xf32>
      %113 = arith.addf %112, %84 : vector<2x128xf32>
      %c0_99 = arith.constant 0 : index
      %c0_100 = arith.constant 0 : index
      %c0_101 = arith.constant 0 : index
      %114 = vector.load %arg8[%c0_99, %c0_100, %c0_101] : memref<1x2x128xf32, #tpu.memory_space<vmem>>, vector<1x2x128xf32>
      %115 = vector.shape_cast %114 : vector<1x2x128xf32> to vector<2x128xf32>
      %116 = vector.shape_cast %113 : vector<2x128xf32> to vector<1x2x128xf32>
      tpu.vector_store %arg8[%c0_99, %c0_100, %c0_101], %116 {strides = array<i32>} : memref<1x2x128xf32, #tpu.memory_space<vmem>>, vector<1x2x128xf32>,
    } else {
    }
    %91 = vector.extract_strided_slice %19 {offsets = [1, 1, 0], sizes = [4, 16, 128], strides = [1, 1, 1]} : vector<6x18x128xf32> to vector<4x16x128xf32>
    %92 = vector.shape_cast %91 : vector<4x16x128xf32> to vector<64x128xf32>
    %c0_83 = arith.constant 0 : index
    %c0_84 = arith.constant 0 : index
    %93 = vector.load %arg6[%c0_83, %c0_84] : memref<128x128xf32, #tpu.memory_space<vmem>>, vector<128x128xf32>
    %cst_85 = arith.constant dense<0.000000e+00> : vector<64x128xf32>
    %94 = tpu.matmul %92, %93, %cst_85 {dimension_numbers = #tpu.dot_dimension_numbers<[1], [0], [0], [1], [0, 0, 1, 1], [], []>} : vector<64x128xf32>, vector<128x128xf32>, vector<64x128xf32> -> vector<64x128xf32>
    %95 = vector.shape_cast %94 : vector<64x128xf32> to vector<4x16x128xf32>
    %c0_86 = arith.constant 0 : index
    %c0_87 = arith.constant 0 : index
    %c0_88 = arith.constant 0 : index
    %c0_89 = arith.constant 0 : index
    %96 = vector.load %arg9[%c0_86, %c0_87, %c0_88, %c0_89] : memref<1x4x16x128xf32, #tpu.memory_space<vmem>>, vector<1x4x16x128xf32>
    %97 = vector.shape_cast %96 : vector<1x4x16x128xf32> to vector<4x16x128xf32>
    %98 = vector.shape_cast %95 : vector<4x16x128xf32> to vector<1x4x16x128xf32>
    tpu.vector_store %arg9[%c0_86, %c0_87, %c0_88, %c0_89], %98 {strides = array<i32>} : memref<1x4x16x128xf32, #tpu.memory_space<vmem>>, vector<1x4x16x128xf32>,
    %cst_90 = arith.constant dense<0.000000e+00> : vector<128xf32>
    %99 = vector.multi_reduction <add>, %94, %cst_90 [0] : vector<64x128xf32> to vector<128xf32>
    %100 = vector.shape_cast %99 : vector<128xf32> to vector<1x128xf32>
    %101 = arith.mulf %94, %94 : vector<64x128xf32>
    %cst_91 = arith.constant dense<0.000000e+00> : vector<128xf32>
    %102 = vector.multi_reduction <add>, %101, %cst_91 [0] : vector<64x128xf32> to vector<128xf32>
    %103 = vector.shape_cast %102 : vector<128xf32> to vector<1x128xf32>
    %104 = tpu.concatenate %100, %103 in 0 : vector<1x128xf32>, vector<1x128xf32> -> vector<2x128xf32>
    %c0_i32_92 = arith.constant 0 : i32
    %105 = arith.cmpi eq, %arg1, %c0_i32_92 : i32
    %106 = arith.extui %105 : i1 to i32
    %c0_i32_93 = arith.constant 0 : i32
    %107 = arith.cmpi ne, %106, %c0_i32_93 : i32
    scf.if %107 {
      %c0_96 = arith.constant 0 : index
      %c0_97 = arith.constant 0 : index
      %c0_98 = arith.constant 0 : index
      %111 = vector.load %arg10[%c0_96, %c0_97, %c0_98] : memref<1x2x128xf32, #tpu.memory_space<vmem>>, vector<1x2x128xf32>
      %112 = vector.shape_cast %111 : vector<1x2x128xf32> to vector<2x128xf32>
      %113 = vector.shape_cast %104 : vector<2x128xf32> to vector<1x2x128xf32>
      tpu.vector_store %arg10[%c0_96, %c0_97, %c0_98], %113 {strides = array<i32>} : memref<1x2x128xf32, #tpu.memory_space<vmem>>, vector<1x2x128xf32>,
    } else {
    }
    %c0_i32_94 = arith.constant 0 : i32
    %108 = arith.cmpi sgt, %arg1, %c0_i32_94 : i32
    %109 = arith.extui %108 : i1 to i32
    %c0_i32_95 = arith.constant 0 : i32
    %110 = arith.cmpi ne, %109, %c0_i32_95 : i32
    scf.if %110 {
      %c0_96 = arith.constant 0 : index
      %c0_97 = arith.constant 0 : index
      %c0_98 = arith.constant 0 : index
      %111 = vector.load %arg10[%c0_96, %c0_97, %c0_98] : memref<1x2x128xf32, #tpu.memory_space<vmem>>, vector<1x2x128xf32>
      %112 = vector.shape_cast %111 : vector<1x2x128xf32> to vector<2x128xf32>
      %113 = arith.addf %112, %104 : vector<2x128xf32>
      %c0_99 = arith.constant 0 : index
      %c0_100 = arith.constant 0 : index
      %c0_101 = arith.constant 0 : index
      %114 = vector.load %arg10[%c0_99, %c0_100, %c0_101] : memref<1x2x128xf32, #tpu.memory_space<vmem>>, vector<1x2x128xf32>
      %115 = vector.shape_cast %114 : vector<1x2x128xf32> to vector<2x128xf32>
      %116 = vector.shape_cast %113 : vector<2x128xf32> to vector<1x2x128xf32>
      tpu.vector_store %arg10[%c0_99, %c0_100, %c0_101], %116 {strides = array<i32>} : memref<1x2x128xf32, #tpu.memory_space<vmem>>, vector<1x2x128xf32>,
    } else {
    }
    return
  }
  func.func @transform_0(%arg0: i32, %arg1: i32) -> (i32, i32, i32, i32) {
    %c0_i32 = arith.constant 0 : i32
    %c0_i32_0 = arith.constant 0 : i32
    %c0_i32_1 = arith.constant 0 : i32
    return %arg0, %arg1, %c0_i32, %c0_i32_0 : i32, i32, i32, i32
  }
  func.func @transform_1(%arg0: i32, %arg1: i32) -> (i32, i32, i32, i32) {
    %c4_i32 = arith.constant 4 : i32
    %0 = arith.muli %arg1, %c4_i32 : i32
    %c1_i32 = arith.constant 1 : i32
    %1 = arith.subi %0, %c1_i32 : i32
    %c0_i32 = arith.constant 0 : i32
    %2 = arith.maxsi %1, %c0_i32 : i32
    %c0_i32_0 = arith.constant 0 : i32
    %c0_i32_1 = arith.constant 0 : i32
    %c0_i32_2 = arith.constant 0 : i32
    return %arg0, %2, %c0_i32_0, %c0_i32_1 : i32, i32, i32, i32
  }
  func.func @transform_2(%arg0: i32, %arg1: i32) -> (i32, i32, i32, i32) {
    %c4_i32 = arith.constant 4 : i32
    %0 = arith.muli %arg1, %c4_i32 : i32
    %c4_i32_0 = arith.constant 4 : i32
    %1 = arith.addi %0, %c4_i32_0 : i32
    %c15_i32 = arith.constant 15 : i32
    %2 = arith.minsi %1, %c15_i32 : i32
    %c0_i32 = arith.constant 0 : i32
    %c0_i32_1 = arith.constant 0 : i32
    %c0_i32_2 = arith.constant 0 : i32
    return %arg0, %2, %c0_i32, %c0_i32_1 : i32, i32, i32, i32
  }
  func.func @transform_3(%arg0: i32, %arg1: i32) -> (i32, i32, i32, i32) {
    %c0_i32 = arith.constant 0 : i32
    %c0_i32_0 = arith.constant 0 : i32
    %c0_i32_1 = arith.constant 0 : i32
    %c0_i32_2 = arith.constant 0 : i32
    %c0_i32_3 = arith.constant 0 : i32
    return %c0_i32, %c0_i32_0, %c0_i32_1, %c0_i32_2 : i32, i32, i32, i32
  }
  func.func @transform_4(%arg0: i32, %arg1: i32) -> (i32, i32) {
    %c0_i32 = arith.constant 0 : i32
    %c0_i32_0 = arith.constant 0 : i32
    %c0_i32_1 = arith.constant 0 : i32
    return %c0_i32, %c0_i32_0 : i32, i32
  }
  func.func @transform_5(%arg0: i32, %arg1: i32) -> (i32, i32, i32, i32) {
    %c0_i32 = arith.constant 0 : i32
    %c0_i32_0 = arith.constant 0 : i32
    %c0_i32_1 = arith.constant 0 : i32
    return %arg0, %arg1, %c0_i32, %c0_i32_0 : i32, i32, i32, i32
  }
  func.func @transform_6(%arg0: i32, %arg1: i32) -> (i32, i32, i32) {
    %c0_i32 = arith.constant 0 : i32
    %c0_i32_0 = arith.constant 0 : i32
    %c0_i32_1 = arith.constant 0 : i32
    return %arg0, %c0_i32, %c0_i32_0 : i32, i32, i32
  }
  func.func @transform_7(%arg0: i32, %arg1: i32) -> (i32, i32, i32, i32) {
    %c0_i32 = arith.constant 0 : i32
    %c0_i32_0 = arith.constant 0 : i32
    %c0_i32_1 = arith.constant 0 : i32
    return %arg0, %arg1, %c0_i32, %c0_i32_0 : i32, i32, i32, i32
  }
  func.func @transform_8(%arg0: i32, %arg1: i32) -> (i32, i32, i32) {
    %c0_i32 = arith.constant 0 : i32
    %c0_i32_0 = arith.constant 0 : i32
    %c0_i32_1 = arith.constant 0 : i32
    return %arg0, %c0_i32, %c0_i32_0 : i32, i32, i32
  }
}

module attributes {stable_mosaic.version = 11 : i64} {
  func.func @_conv3x3_kernel(%arg0: i32, %arg1: i32, %arg2: memref<1x4x16x128xf32, #tpu.memory_space<vmem>>, %arg3: memref<1x1x16x128xf32, #tpu.memory_space<vmem>>, %arg4: memref<1x1x16x128xf32, #tpu.memory_space<vmem>>, %arg5: memref<3x3x128x128xf32, #tpu.memory_space<vmem>>, %arg6: memref<2x128xf32, #tpu.memory_space<vmem>>, %arg7: memref<1x128xf32, #tpu.memory_space<vmem>>, %arg8: memref<1x128xf32, #tpu.memory_space<vmem>>, %arg9: memref<1x4x16x128xf32, #tpu.memory_space<vmem>>, %arg10: memref<1x2x128xf32, #tpu.memory_space<vmem>>, %arg11: memref<6x18x128xf32, #tpu.memory_space<vmem>>) attributes {dimension_semantics = [#tpu.dimension_semantics<parallel>, #tpu.dimension_semantics<arbitrary>], iteration_bounds = array<i64: 2, 4>, scalar_prefetch = 0 : i64, scratch_operands = 1 : i64, tpu.core_type = #tpu.core_type<tc>, window_params = [{transform_indices = @transform_0, window_bounds = array<i64: 1, 4, 16, 128>}, {transform_indices = @transform_1, window_bounds = array<i64: 1, 1, 16, 128>}, {transform_indices = @transform_2, window_bounds = array<i64: 1, 1, 16, 128>}, {pipeline_mode = #tpu.pipeline_mode<synchronous>, transform_indices = @transform_3, window_bounds = array<i64: 3, 3, 128, 128>}, {pipeline_mode = #tpu.pipeline_mode<synchronous>, transform_indices = @transform_4, window_bounds = array<i64: 2, 128>}, {pipeline_mode = #tpu.pipeline_mode<synchronous>, transform_indices = @transform_5, window_bounds = array<i64: 1, 128>}, {pipeline_mode = #tpu.pipeline_mode<synchronous>, transform_indices = @transform_6, window_bounds = array<i64: 1, 128>}, {transform_indices = @transform_7, window_bounds = array<i64: 1, 4, 16, 128>}, {transform_indices = @transform_8, window_bounds = array<i64: 1, 2, 128>}]} {
    %c0 = arith.constant 0 : index
    %c0_0 = arith.constant 0 : index
    %0 = vector.load %arg6[%c0, %c0_0] : memref<2x128xf32, #tpu.memory_space<vmem>>, vector<2x128xf32>
    %c0_1 = arith.constant 0 : index
    %c0_2 = arith.constant 0 : index
    %1 = vector.load %arg7[%c0_1, %c0_2] : memref<1x128xf32, #tpu.memory_space<vmem>>, vector<1x128xf32>
    %c0_3 = arith.constant 0 : index
    %c0_4 = arith.constant 0 : index
    %2 = vector.load %arg8[%c0_3, %c0_4] : memref<1x128xf32, #tpu.memory_space<vmem>>, vector<1x128xf32>
    %3 = vector.extract_strided_slice %0 {offsets = [0, 0], sizes = [1, 128], strides = [1, 1]} : vector<2x128xf32> to vector<1x128xf32>
    %cst = arith.constant 0.001953125 : f32
    %4 = vector.broadcast %cst : f32 to vector<1x128xf32>
    %5 = arith.mulf %3, %4 : vector<1x128xf32>
    %6 = vector.extract_strided_slice %0 {offsets = [1, 0], sizes = [1, 128], strides = [1, 1]} : vector<2x128xf32> to vector<1x128xf32>
    %cst_5 = arith.constant 0.001953125 : f32
    %7 = vector.broadcast %cst_5 : f32 to vector<1x128xf32>
    %8 = arith.mulf %6, %7 : vector<1x128xf32>
    %9 = arith.mulf %5, %5 : vector<1x128xf32>
    %10 = arith.subf %8, %9 : vector<1x128xf32>
    %cst_6 = arith.constant 0.000000e+00 : f32
    %11 = vector.broadcast %cst_6 : f32 to vector<1x128xf32>
    %12 = arith.maximumf %10, %11 : vector<1x128xf32>
    %cst_7 = arith.constant 9.99999974E-6 : f32
    %13 = vector.broadcast %cst_7 : f32 to vector<1x128xf32>
    %14 = arith.addf %12, %13 : vector<1x128xf32>
    %15 = math.rsqrt %14 : vector<1x128xf32>
    %16 = arith.mulf %1, %15 : vector<1x128xf32>
    %17 = arith.mulf %5, %16 : vector<1x128xf32>
    %18 = arith.subf %2, %17 : vector<1x128xf32>
    %cst_8 = arith.constant 0.000000e+00 : f32
    %19 = vector.broadcast %cst_8 : f32 to vector<6x18x128xf32>
    %c0_9 = arith.constant 0 : index
    %c0_10 = arith.constant 0 : index
    %c0_11 = arith.constant 0 : index
    %20 = vector.load %arg11[%c0_9, %c0_10, %c0_11] : memref<6x18x128xf32, #tpu.memory_space<vmem>>, vector<6x18x128xf32>
    tpu.vector_store %arg11[%c0_9, %c0_10, %c0_11], %19 {strides = array<i32>} : memref<6x18x128xf32, #tpu.memory_space<vmem>>, vector<6x18x128xf32>,
    %c0_12 = arith.constant 0 : index
    %c0_13 = arith.constant 0 : index
    %c0_14 = arith.constant 0 : index
    %c0_15 = arith.constant 0 : index
    %21 = vector.load %arg2[%c0_12, %c0_13, %c0_14, %c0_15] : memref<1x4x16x128xf32, #tpu.memory_space<vmem>>, vector<1x4x16x128xf32>
    %22 = vector.shape_cast %21 : vector<1x4x16x128xf32> to vector<4x16x128xf32>
    %23 = vector.shape_cast %16 : vector<1x128xf32> to vector<1x1x128xf32>
    %24 = vector.broadcast %23 : vector<1x1x128xf32> to vector<4x16x128xf32>
    %25 = arith.mulf %22, %24 : vector<4x16x128xf32>
    %26 = vector.shape_cast %18 : vector<1x128xf32> to vector<1x1x128xf32>
    %27 = vector.broadcast %26 : vector<1x1x128xf32> to vector<4x16x128xf32>
    %28 = arith.addf %25, %27 : vector<4x16x128xf32>
    %cst_16 = arith.constant 0.000000e+00 : f32
    %29 = vector.broadcast %cst_16 : f32 to vector<4x16x128xf32>
    %30 = arith.maximumf %28, %29 : vector<4x16x128xf32>
    %c1 = arith.constant 1 : index
    %c1_17 = arith.constant 1 : index
    %c0_18 = arith.constant 0 : index
    %31 = vector.load %arg11[%c1, %c1_17, %c0_18] : memref<6x18x128xf32, #tpu.memory_space<vmem>>, vector<4x16x128xf32>
    tpu.vector_store %arg11[%c1, %c1_17, %c0_18], %30 {strides = array<i32>} : memref<6x18x128xf32, #tpu.memory_space<vmem>>, vector<4x16x128xf32>,
    %c0_i32 = arith.constant 0 : i32
    %32 = arith.cmpi sgt, %arg1, %c0_i32 : i32
    %cst_19 = arith.constant 1.000000e+00 : f32
    %cst_20 = arith.constant 0.000000e+00 : f32
    %33 = arith.select %32, %cst_19, %cst_20 : f32
    %c0_21 = arith.constant 0 : index
    %c0_22 = arith.constant 0 : index
    %c0_23 = arith.constant 0 : index
    %c0_24 = arith.constant 0 : index
    %34 = vector.load %arg3[%c0_21, %c0_22, %c0_23, %c0_24] : memref<1x1x16x128xf32, #tpu.memory_space<vmem>>, vector<1x1x16x128xf32>
    %35 = vector.shape_cast %34 : vector<1x1x16x128xf32> to vector<1x16x128xf32>
    %36 = vector.shape_cast %16 : vector<1x128xf32> to vector<1x1x128xf32>
    %37 = vector.broadcast %36 : vector<1x1x128xf32> to vector<1x16x128xf32>
    %38 = arith.mulf %35, %37 : vector<1x16x128xf32>
    %39 = vector.shape_cast %18 : vector<1x128xf32> to vector<1x1x128xf32>
    %40 = vector.broadcast %39 : vector<1x1x128xf32> to vector<1x16x128xf32>
    %41 = arith.addf %38, %40 : vector<1x16x128xf32>
    %cst_25 = arith.constant 0.000000e+00 : f32
    %42 = vector.broadcast %cst_25 : f32 to vector<1x16x128xf32>
    %43 = arith.maximumf %41, %42 : vector<1x16x128xf32>
    %44 = vector.broadcast %33 : f32 to vector<1x16x128xf32>
    %45 = arith.mulf %43, %44 : vector<1x16x128xf32>
    %c0_26 = arith.constant 0 : index
    %c1_27 = arith.constant 1 : index
    %c0_28 = arith.constant 0 : index
    %46 = vector.load %arg11[%c0_26, %c1_27, %c0_28] : memref<6x18x128xf32, #tpu.memory_space<vmem>>, vector<1x16x128xf32>
    tpu.vector_store %arg11[%c0_26, %c1_27, %c0_28], %45 {strides = array<i32>} : memref<6x18x128xf32, #tpu.memory_space<vmem>>, vector<1x16x128xf32>,
    %c3_i32 = arith.constant 3 : i32
    %47 = arith.cmpi slt, %arg1, %c3_i32 : i32
    %cst_29 = arith.constant 1.000000e+00 : f32
    %cst_30 = arith.constant 0.000000e+00 : f32
    %48 = arith.select %47, %cst_29, %cst_30 : f32
    %c0_31 = arith.constant 0 : index
    %c0_32 = arith.constant 0 : index
    %c0_33 = arith.constant 0 : index
    %c0_34 = arith.constant 0 : index
    %49 = vector.load %arg4[%c0_31, %c0_32, %c0_33, %c0_34] : memref<1x1x16x128xf32, #tpu.memory_space<vmem>>, vector<1x1x16x128xf32>
    %50 = vector.shape_cast %49 : vector<1x1x16x128xf32> to vector<1x16x128xf32>
    %51 = vector.shape_cast %16 : vector<1x128xf32> to vector<1x1x128xf32>
    %52 = vector.broadcast %51 : vector<1x1x128xf32> to vector<1x16x128xf32>
    %53 = arith.mulf %50, %52 : vector<1x16x128xf32>
    %54 = vector.shape_cast %18 : vector<1x128xf32> to vector<1x1x128xf32>
    %55 = vector.broadcast %54 : vector<1x1x128xf32> to vector<1x16x128xf32>
    %56 = arith.addf %53, %55 : vector<1x16x128xf32>
    %cst_35 = arith.constant 0.000000e+00 : f32
    %57 = vector.broadcast %cst_35 : f32 to vector<1x16x128xf32>
    %58 = arith.maximumf %56, %57 : vector<1x16x128xf32>
    %59 = vector.broadcast %48 : f32 to vector<1x16x128xf32>
    %60 = arith.mulf %58, %59 : vector<1x16x128xf32>
    %c5 = arith.constant 5 : index
    %c1_36 = arith.constant 1 : index
    %c0_37 = arith.constant 0 : index
    %61 = vector.load %arg11[%c5, %c1_36, %c0_37] : memref<6x18x128xf32, #tpu.memory_space<vmem>>, vector<1x16x128xf32>
    tpu.vector_store %arg11[%c5, %c1_36, %c0_37], %60 {strides = array<i32>} : memref<6x18x128xf32, #tpu.memory_space<vmem>>, vector<1x16x128xf32>,
    %c0_38 = arith.constant 0 : index
    %c0_39 = arith.constant 0 : index
    %c0_40 = arith.constant 0 : index
    %62 = vector.load %arg11[%c0_38, %c0_39, %c0_40] : memref<6x18x128xf32, #tpu.memory_space<vmem>>, vector<6x18x128xf32>
    %cst_41 = arith.constant 0.000000e+00 : f32
    %63 = vector.broadcast %cst_41 : f32 to vector<64x128xf32>
    %64 = vector.extract_strided_slice %62 {offsets = [0, 0, 0], sizes = [4, 16, 128], strides = [1, 1, 1]} : vector<6x18x128xf32> to vector<4x16x128xf32>
    %65 = vector.shape_cast %64 : vector<4x16x128xf32> to vector<64x128xf32>
    %c0_42 = arith.constant 0 : index
    %c0_43 = arith.constant 0 : index
    %c0_44 = arith.constant 0 : index
    %c0_45 = arith.constant 0 : index
    %66 = vector.load %arg5[%c0_42, %c0_43, %c0_44, %c0_45] : memref<3x3x128x128xf32, #tpu.memory_space<vmem>>, vector<1x1x128x128xf32>
    %67 = vector.shape_cast %66 : vector<1x1x128x128xf32> to vector<128x128xf32>
    %cst_46 = arith.constant dense<0.000000e+00> : vector<64x128xf32>
    %68 = tpu.matmul %65, %67, %cst_46 {dimension_numbers = #tpu.dot_dimension_numbers<[1], [0], [0], [1], [0, 0, 1, 1], [], []>} : vector<64x128xf32>, vector<128x128xf32>, vector<64x128xf32> -> vector<64x128xf32>
    %69 = arith.addf %63, %68 : vector<64x128xf32>
    %70 = vector.extract_strided_slice %62 {offsets = [0, 1, 0], sizes = [4, 16, 128], strides = [1, 1, 1]} : vector<6x18x128xf32> to vector<4x16x128xf32>
    %71 = vector.shape_cast %70 : vector<4x16x128xf32> to vector<64x128xf32>
    %c0_47 = arith.constant 0 : index
    %c1_48 = arith.constant 1 : index
    %c0_49 = arith.constant 0 : index
    %c0_50 = arith.constant 0 : index
    %72 = vector.load %arg5[%c0_47, %c1_48, %c0_49, %c0_50] : memref<3x3x128x128xf32, #tpu.memory_space<vmem>>, vector<1x1x128x128xf32>
    %73 = vector.shape_cast %72 : vector<1x1x128x128xf32> to vector<128x128xf32>
    %cst_51 = arith.constant dense<0.000000e+00> : vector<64x128xf32>
    %74 = tpu.matmul %71, %73, %cst_51 {dimension_numbers = #tpu.dot_dimension_numbers<[1], [0], [0], [1], [0, 0, 1, 1], [], []>} : vector<64x128xf32>, vector<128x128xf32>, vector<64x128xf32> -> vector<64x128xf32>
    %75 = arith.addf %69, %74 : vector<64x128xf32>
    %76 = vector.extract_strided_slice %62 {offsets = [0, 2, 0], sizes = [4, 16, 128], strides = [1, 1, 1]} : vector<6x18x128xf32> to vector<4x16x128xf32>
    %77 = vector.shape_cast %76 : vector<4x16x128xf32> to vector<64x128xf32>
    %c0_52 = arith.constant 0 : index
    %c2 = arith.constant 2 : index
    %c0_53 = arith.constant 0 : index
    %c0_54 = arith.constant 0 : index
    %78 = vector.load %arg5[%c0_52, %c2, %c0_53, %c0_54] : memref<3x3x128x128xf32, #tpu.memory_space<vmem>>, vector<1x1x128x128xf32>
    %79 = vector.shape_cast %78 : vector<1x1x128x128xf32> to vector<128x128xf32>
    %cst_55 = arith.constant dense<0.000000e+00> : vector<64x128xf32>
    %80 = tpu.matmul %77, %79, %cst_55 {dimension_numbers = #tpu.dot_dimension_numbers<[1], [0], [0], [1], [0, 0, 1, 1], [], []>} : vector<64x128xf32>, vector<128x128xf32>, vector<64x128xf32> -> vector<64x128xf32>
    %81 = arith.addf %75, %80 : vector<64x128xf32>
    %82 = vector.extract_strided_slice %62 {offsets = [1, 0, 0], sizes = [4, 16, 128], strides = [1, 1, 1]} : vector<6x18x128xf32> to vector<4x16x128xf32>
    %83 = vector.shape_cast %82 : vector<4x16x128xf32> to vector<64x128xf32>
    %c1_56 = arith.constant 1 : index
    %c0_57 = arith.constant 0 : index
    %c0_58 = arith.constant 0 : index
    %c0_59 = arith.constant 0 : index
    %84 = vector.load %arg5[%c1_56, %c0_57, %c0_58, %c0_59] : memref<3x3x128x128xf32, #tpu.memory_space<vmem>>, vector<1x1x128x128xf32>
    %85 = vector.shape_cast %84 : vector<1x1x128x128xf32> to vector<128x128xf32>
    %cst_60 = arith.constant dense<0.000000e+00> : vector<64x128xf32>
    %86 = tpu.matmul %83, %85, %cst_60 {dimension_numbers = #tpu.dot_dimension_numbers<[1], [0], [0], [1], [0, 0, 1, 1], [], []>} : vector<64x128xf32>, vector<128x128xf32>, vector<64x128xf32> -> vector<64x128xf32>
    %87 = arith.addf %81, %86 : vector<64x128xf32>
    %88 = vector.extract_strided_slice %62 {offsets = [1, 1, 0], sizes = [4, 16, 128], strides = [1, 1, 1]} : vector<6x18x128xf32> to vector<4x16x128xf32>
    %89 = vector.shape_cast %88 : vector<4x16x128xf32> to vector<64x128xf32>
    %c1_61 = arith.constant 1 : index
    %c1_62 = arith.constant 1 : index
    %c0_63 = arith.constant 0 : index
    %c0_64 = arith.constant 0 : index
    %90 = vector.load %arg5[%c1_61, %c1_62, %c0_63, %c0_64] : memref<3x3x128x128xf32, #tpu.memory_space<vmem>>, vector<1x1x128x128xf32>
    %91 = vector.shape_cast %90 : vector<1x1x128x128xf32> to vector<128x128xf32>
    %cst_65 = arith.constant dense<0.000000e+00> : vector<64x128xf32>
    %92 = tpu.matmul %89, %91, %cst_65 {dimension_numbers = #tpu.dot_dimension_numbers<[1], [0], [0], [1], [0, 0, 1, 1], [], []>} : vector<64x128xf32>, vector<128x128xf32>, vector<64x128xf32> -> vector<64x128xf32>
    %93 = arith.addf %87, %92 : vector<64x128xf32>
    %94 = vector.extract_strided_slice %62 {offsets = [1, 2, 0], sizes = [4, 16, 128], strides = [1, 1, 1]} : vector<6x18x128xf32> to vector<4x16x128xf32>
    %95 = vector.shape_cast %94 : vector<4x16x128xf32> to vector<64x128xf32>
    %c1_66 = arith.constant 1 : index
    %c2_67 = arith.constant 2 : index
    %c0_68 = arith.constant 0 : index
    %c0_69 = arith.constant 0 : index
    %96 = vector.load %arg5[%c1_66, %c2_67, %c0_68, %c0_69] : memref<3x3x128x128xf32, #tpu.memory_space<vmem>>, vector<1x1x128x128xf32>
    %97 = vector.shape_cast %96 : vector<1x1x128x128xf32> to vector<128x128xf32>
    %cst_70 = arith.constant dense<0.000000e+00> : vector<64x128xf32>
    %98 = tpu.matmul %95, %97, %cst_70 {dimension_numbers = #tpu.dot_dimension_numbers<[1], [0], [0], [1], [0, 0, 1, 1], [], []>} : vector<64x128xf32>, vector<128x128xf32>, vector<64x128xf32> -> vector<64x128xf32>
    %99 = arith.addf %93, %98 : vector<64x128xf32>
    %100 = vector.extract_strided_slice %62 {offsets = [2, 0, 0], sizes = [4, 16, 128], strides = [1, 1, 1]} : vector<6x18x128xf32> to vector<4x16x128xf32>
    %101 = vector.shape_cast %100 : vector<4x16x128xf32> to vector<64x128xf32>
    %c2_71 = arith.constant 2 : index
    %c0_72 = arith.constant 0 : index
    %c0_73 = arith.constant 0 : index
    %c0_74 = arith.constant 0 : index
    %102 = vector.load %arg5[%c2_71, %c0_72, %c0_73, %c0_74] : memref<3x3x128x128xf32, #tpu.memory_space<vmem>>, vector<1x1x128x128xf32>
    %103 = vector.shape_cast %102 : vector<1x1x128x128xf32> to vector<128x128xf32>
    %cst_75 = arith.constant dense<0.000000e+00> : vector<64x128xf32>
    %104 = tpu.matmul %101, %103, %cst_75 {dimension_numbers = #tpu.dot_dimension_numbers<[1], [0], [0], [1], [0, 0, 1, 1], [], []>} : vector<64x128xf32>, vector<128x128xf32>, vector<64x128xf32> -> vector<64x128xf32>
    %105 = arith.addf %99, %104 : vector<64x128xf32>
    %106 = vector.extract_strided_slice %62 {offsets = [2, 1, 0], sizes = [4, 16, 128], strides = [1, 1, 1]} : vector<6x18x128xf32> to vector<4x16x128xf32>
    %107 = vector.shape_cast %106 : vector<4x16x128xf32> to vector<64x128xf32>
    %c2_76 = arith.constant 2 : index
    %c1_77 = arith.constant 1 : index
    %c0_78 = arith.constant 0 : index
    %c0_79 = arith.constant 0 : index
    %108 = vector.load %arg5[%c2_76, %c1_77, %c0_78, %c0_79] : memref<3x3x128x128xf32, #tpu.memory_space<vmem>>, vector<1x1x128x128xf32>
    %109 = vector.shape_cast %108 : vector<1x1x128x128xf32> to vector<128x128xf32>
    %cst_80 = arith.constant dense<0.000000e+00> : vector<64x128xf32>
    %110 = tpu.matmul %107, %109, %cst_80 {dimension_numbers = #tpu.dot_dimension_numbers<[1], [0], [0], [1], [0, 0, 1, 1], [], []>} : vector<64x128xf32>, vector<128x128xf32>, vector<64x128xf32> -> vector<64x128xf32>
    %111 = arith.addf %105, %110 : vector<64x128xf32>
    %112 = vector.extract_strided_slice %62 {offsets = [2, 2, 0], sizes = [4, 16, 128], strides = [1, 1, 1]} : vector<6x18x128xf32> to vector<4x16x128xf32>
    %113 = vector.shape_cast %112 : vector<4x16x128xf32> to vector<64x128xf32>
    %c2_81 = arith.constant 2 : index
    %c2_82 = arith.constant 2 : index
    %c0_83 = arith.constant 0 : index
    %c0_84 = arith.constant 0 : index
    %114 = vector.load %arg5[%c2_81, %c2_82, %c0_83, %c0_84] : memref<3x3x128x128xf32, #tpu.memory_space<vmem>>, vector<1x1x128x128xf32>
    %115 = vector.shape_cast %114 : vector<1x1x128x128xf32> to vector<128x128xf32>
    %cst_85 = arith.constant dense<0.000000e+00> : vector<64x128xf32>
    %116 = tpu.matmul %113, %115, %cst_85 {dimension_numbers = #tpu.dot_dimension_numbers<[1], [0], [0], [1], [0, 0, 1, 1], [], []>} : vector<64x128xf32>, vector<128x128xf32>, vector<64x128xf32> -> vector<64x128xf32>
    %117 = arith.addf %111, %116 : vector<64x128xf32>
    %118 = vector.shape_cast %117 : vector<64x128xf32> to vector<4x16x128xf32>
    %c0_86 = arith.constant 0 : index
    %c0_87 = arith.constant 0 : index
    %c0_88 = arith.constant 0 : index
    %c0_89 = arith.constant 0 : index
    %119 = vector.load %arg9[%c0_86, %c0_87, %c0_88, %c0_89] : memref<1x4x16x128xf32, #tpu.memory_space<vmem>>, vector<1x4x16x128xf32>
    %120 = vector.shape_cast %119 : vector<1x4x16x128xf32> to vector<4x16x128xf32>
    %121 = vector.shape_cast %118 : vector<4x16x128xf32> to vector<1x4x16x128xf32>
    tpu.vector_store %arg9[%c0_86, %c0_87, %c0_88, %c0_89], %121 {strides = array<i32>} : memref<1x4x16x128xf32, #tpu.memory_space<vmem>>, vector<1x4x16x128xf32>,
    %cst_90 = arith.constant dense<0.000000e+00> : vector<128xf32>
    %122 = vector.multi_reduction <add>, %117, %cst_90 [0] : vector<64x128xf32> to vector<128xf32>
    %123 = vector.shape_cast %122 : vector<128xf32> to vector<1x128xf32>
    %124 = arith.mulf %117, %117 : vector<64x128xf32>
    %cst_91 = arith.constant dense<0.000000e+00> : vector<128xf32>
    %125 = vector.multi_reduction <add>, %124, %cst_91 [0] : vector<64x128xf32> to vector<128xf32>
    %126 = vector.shape_cast %125 : vector<128xf32> to vector<1x128xf32>
    %127 = tpu.concatenate %123, %126 in 0 : vector<1x128xf32>, vector<1x128xf32> -> vector<2x128xf32>
    %c0_i32_92 = arith.constant 0 : i32
    %128 = arith.cmpi eq, %arg1, %c0_i32_92 : i32
    %129 = arith.extui %128 : i1 to i32
    %c0_i32_93 = arith.constant 0 : i32
    %130 = arith.cmpi ne, %129, %c0_i32_93 : i32
    scf.if %130 {
      %c0_96 = arith.constant 0 : index
      %c0_97 = arith.constant 0 : index
      %c0_98 = arith.constant 0 : index
      %134 = vector.load %arg10[%c0_96, %c0_97, %c0_98] : memref<1x2x128xf32, #tpu.memory_space<vmem>>, vector<1x2x128xf32>
      %135 = vector.shape_cast %134 : vector<1x2x128xf32> to vector<2x128xf32>
      %136 = vector.shape_cast %127 : vector<2x128xf32> to vector<1x2x128xf32>
      tpu.vector_store %arg10[%c0_96, %c0_97, %c0_98], %136 {strides = array<i32>} : memref<1x2x128xf32, #tpu.memory_space<vmem>>, vector<1x2x128xf32>,
    } else {
    }
    %c0_i32_94 = arith.constant 0 : i32
    %131 = arith.cmpi sgt, %arg1, %c0_i32_94 : i32
    %132 = arith.extui %131 : i1 to i32
    %c0_i32_95 = arith.constant 0 : i32
    %133 = arith.cmpi ne, %132, %c0_i32_95 : i32
    scf.if %133 {
      %c0_96 = arith.constant 0 : index
      %c0_97 = arith.constant 0 : index
      %c0_98 = arith.constant 0 : index
      %134 = vector.load %arg10[%c0_96, %c0_97, %c0_98] : memref<1x2x128xf32, #tpu.memory_space<vmem>>, vector<1x2x128xf32>
      %135 = vector.shape_cast %134 : vector<1x2x128xf32> to vector<2x128xf32>
      %136 = arith.addf %135, %127 : vector<2x128xf32>
      %c0_99 = arith.constant 0 : index
      %c0_100 = arith.constant 0 : index
      %c0_101 = arith.constant 0 : index
      %137 = vector.load %arg10[%c0_99, %c0_100, %c0_101] : memref<1x2x128xf32, #tpu.memory_space<vmem>>, vector<1x2x128xf32>
      %138 = vector.shape_cast %137 : vector<1x2x128xf32> to vector<2x128xf32>
      %139 = vector.shape_cast %136 : vector<2x128xf32> to vector<1x2x128xf32>
      tpu.vector_store %arg10[%c0_99, %c0_100, %c0_101], %139 {strides = array<i32>} : memref<1x2x128xf32, #tpu.memory_space<vmem>>, vector<1x2x128xf32>,
    } else {
    }
    return
  }
  func.func @transform_0(%arg0: i32, %arg1: i32) -> (i32, i32, i32, i32) {
    %c0_i32 = arith.constant 0 : i32
    %c0_i32_0 = arith.constant 0 : i32
    %c0_i32_1 = arith.constant 0 : i32
    return %arg0, %arg1, %c0_i32, %c0_i32_0 : i32, i32, i32, i32
  }
  func.func @transform_1(%arg0: i32, %arg1: i32) -> (i32, i32, i32, i32) {
    %c4_i32 = arith.constant 4 : i32
    %0 = arith.muli %arg1, %c4_i32 : i32
    %c1_i32 = arith.constant 1 : i32
    %1 = arith.subi %0, %c1_i32 : i32
    %c0_i32 = arith.constant 0 : i32
    %2 = arith.maxsi %1, %c0_i32 : i32
    %c0_i32_0 = arith.constant 0 : i32
    %c0_i32_1 = arith.constant 0 : i32
    %c0_i32_2 = arith.constant 0 : i32
    return %arg0, %2, %c0_i32_0, %c0_i32_1 : i32, i32, i32, i32
  }
  func.func @transform_2(%arg0: i32, %arg1: i32) -> (i32, i32, i32, i32) {
    %c4_i32 = arith.constant 4 : i32
    %0 = arith.muli %arg1, %c4_i32 : i32
    %c4_i32_0 = arith.constant 4 : i32
    %1 = arith.addi %0, %c4_i32_0 : i32
    %c15_i32 = arith.constant 15 : i32
    %2 = arith.minsi %1, %c15_i32 : i32
    %c0_i32 = arith.constant 0 : i32
    %c0_i32_1 = arith.constant 0 : i32
    %c0_i32_2 = arith.constant 0 : i32
    return %arg0, %2, %c0_i32, %c0_i32_1 : i32, i32, i32, i32
  }
  func.func @transform_3(%arg0: i32, %arg1: i32) -> (i32, i32, i32, i32) {
    %c0_i32 = arith.constant 0 : i32
    %c0_i32_0 = arith.constant 0 : i32
    %c0_i32_1 = arith.constant 0 : i32
    %c0_i32_2 = arith.constant 0 : i32
    %c0_i32_3 = arith.constant 0 : i32
    return %c0_i32, %c0_i32_0, %c0_i32_1, %c0_i32_2 : i32, i32, i32, i32
  }
  func.func @transform_4(%arg0: i32, %arg1: i32) -> (i32, i32) {
    %c0_i32 = arith.constant 0 : i32
    %c0_i32_0 = arith.constant 0 : i32
    %c0_i32_1 = arith.constant 0 : i32
    return %c0_i32, %c0_i32_0 : i32, i32
  }
  func.func @transform_5(%arg0: i32, %arg1: i32) -> (i32, i32) {
    %c0_i32 = arith.constant 0 : i32
    %c0_i32_0 = arith.constant 0 : i32
    %c0_i32_1 = arith.constant 0 : i32
    return %c0_i32, %c0_i32_0 : i32, i32
  }
  func.func @transform_6(%arg0: i32, %arg1: i32) -> (i32, i32) {
    %c0_i32 = arith.constant 0 : i32
    %c0_i32_0 = arith.constant 0 : i32
    %c0_i32_1 = arith.constant 0 : i32
    return %c0_i32, %c0_i32_0 : i32, i32
  }
  func.func @transform_7(%arg0: i32, %arg1: i32) -> (i32, i32, i32, i32) {
    %c0_i32 = arith.constant 0 : i32
    %c0_i32_0 = arith.constant 0 : i32
    %c0_i32_1 = arith.constant 0 : i32
    return %arg0, %arg1, %c0_i32, %c0_i32_0 : i32, i32, i32, i32
  }
  func.func @transform_8(%arg0: i32, %arg1: i32) -> (i32, i32, i32) {
    %c0_i32 = arith.constant 0 : i32
    %c0_i32_0 = arith.constant 0 : i32
    %c0_i32_1 = arith.constant 0 : i32
    return %arg0, %c0_i32, %c0_i32_0 : i32, i32, i32
  }
}

</mosaic_0001>

<bundles_post_ra>
// kernel: residual_layer_forward.5
= control target key start
LH: loop header
LB: loop body
LE: loop exit
PB: predicated region body
PF: predicated region fallthrough
CT: control target
= control target key end

     0   :  { %v702_v13 = vmov 1966171168   ;;  %v45_v15 = vlaneseq  ;;  %s1606_s2 = inlined_call_operand.vmem [shape: f32[2,128], index: 2, kind: input, shape index: {}]   ;;  %s1607_s3 = inlined_call_operand.vmem [shape: f32[2,128], index: 3, kind: input, shape index: {}]   ;;  %s1608_s4 = inlined_call_operand.vmem [shape: f32[1,128], index: 4, kind: input, shape index: {}]   ;;  %s1609_s6 = inlined_call_operand.vmem [shape: f32[1,128], index: 6, kind: input, shape index: {}]   ;;  %s1610_s5 = inlined_call_operand.vmem [shape: f32[1,128], index: 5, kind: input, shape index: {}]   ;;  %s1611_s7 = inlined_call_operand.vmem [shape: f32[1,128], index: 7, kind: input, shape index: {}]   ;;  %s1612_s0 = inlined_call_operand.vmem [shape: f32[512,128], index: 0, kind: input, shape index: {}]   ;;  %s1613_s1 = inlined_call_operand.vmem [shape: f32[512,128], index: 1, kind: input, shape index: {}]   ;;  %s1614_s8 = inlined_call_operand.vmem [shape: f32[512,128], index: 8, kind: output, shape index: {}]  }
   0x1   :  { %v29_v0 = vld [vmem:[%s1606_s2] sm:$0x3]  ;;  %v43_v14 = vunpack.c.l.s4 %v702_v13  ;;  %v94_v36 = vld [vmem:[%s1612_s0 + $0x8] sm:$0xff]  ;;  %v95_v37 = vld [vmem:[%s1612_s0 + $0x10] sm:$0xff] }
   0x2   :  { %v32_v1 = vmul.f32 0.001953125, %v29_v0  ;;  %v61_v2 = vld [vmem:[%s1607_s3] sm:$0x3]  ;;  %v46_v18 = vshrl.u32 %v45_v15, 7  ;;  %v298_v41 = vld [vmem:[%s1613_s1 + $0x8] sm:$0xff]  ;;  %v299_v42 = vld [vmem:[%s1613_s1 + $0x10] sm:$0xff] }
   0x3   :  { %v64_v3 = vmul.f32 0.001953125, %v61_v2  ;;  %v44_v17 = vunpack.c.0.s8 %v43_v14  ;;  %v30_v25 = vld [vmem:[%s1608_s4] sm:$0x1]  ;;  %v96_v45 = vld [vmem:[%s1612_s0 + $0x18] sm:$0xff]  ;;  %v98_v53 = vld [vmem:[%s1612_s0 + $0x28] sm:$0xff] }
   0x4   :  { %v33_v4 = vmul.f32 %v32_v1, %v32_v1  ;;  %v62_v28 = vld [vmem:[%s1609_s6] sm:$0x1]  ;;  %v160_v29 = vsub.s32 0, %v46_v18  ;;  %v300_v46 = vld [vmem:[%s1613_s1 + $0x18] sm:$0xff]  ;;  %v302_v54 = vld [vmem:[%s1613_s1 + $0x28] sm:$0xff] }
   0x5   :  { %v65_v5 = vmul.f32 %v64_v3, %v64_v3  ;;  %v47_v19 = vsub.s32 %v44_v17, %v46_v18  ;;  %v31_v31 = vld [vmem:[%s1610_s5] sm:$0x1]  ;;  %v99_v63 = vld [vmem:[%s1612_s0 + $0x30] sm:$0xff] }
   0x6   :  { %v35_v6 = vrot.slane %v33_v4, 7  ;;  %v63_v33 = vld [vmem:[%s1611_s7] sm:$0x1]  ;;  %v303_v0 = vld [vmem:[%s1613_s1 + $0x30] sm:$0xff] }
   0x7   :  { %v67_v7 = vrot.slane %v65_v5, 7  ;;  %v93_v35 = vld [vmem:[%s1612_s0] sm:$0xff] }
   0x8   :  { %v37_v8 = vsub.f32 %v32_v1, %v35_v6  ;;  %v297_v40 = vld [vmem:[%s1613_s1] sm:$0xff] }
   0x9   :  { %v69_v9 = vsub.f32 %v64_v3, %v67_v7  ;;  %v97_v47 = vld [vmem:[%s1612_s0 + $0x20] sm:$0xff] }
   0xa   :  { %v38_v10 = vmax.f32 %v37_v8, 0.0  ;;  %v301_v52 = vld [vmem:[%s1613_s1 + $0x20] sm:$0xff] }
   0xb   :  { %v70_v11 = vmax.f32 %v69_v9, 0.0  ;;  %v100_v9 = vld [vmem:[%s1612_s0 + $0x38] sm:$0xff] }
   0xc   :  { %v39_v12 = vadd.f32 1e-05, %v38_v10 }
   0xd   :  { %v71_v16 = vadd.f32 1e-05, %v70_v11 }
   0xe   :  { %698 = vrsqrt.f32 %v39_v12 }
   0xf   :  { %700 = vrsqrt.f32 %v71_v16 }
  0x18   :  { %v699_v20 = vpop.eup %698 }
  0x19   :  { %v701_v21 = vpop.eup %700  ;;  %v48_v22 = vrot.slane %v699_v20, %v47_v19 }
  0x1a   :  { %v80_v23 = vrot.slane %v701_v21, %v47_v19 }
  0x1b   :  { %v49_v24 = vcombine.high %v48_v22, %v48_v22 }
  0x1c   :  { %v81_v26 = vcombine.high %v80_v23, %v80_v23 }
  0x1d   :  { %v56_v27 = vrot.slane %v49_v24, %v47_v19 }
  0x1e   :  { %v88_v30 = vrot.slane %v81_v26, %v47_v19  ;;  %v304_v26 = vld [vmem:[%s1613_s1 + $0x38] sm:$0xff] }
  0x1f   :  { %v58_v32 = vmul.f32 %v56_v27, %v30_v25  ;;  %v101_v27 = vld [vmem:[%s1612_s0 + $0x40] sm:$0xff] }
  0x20   :  { %v90_v34 = vmul.f32 %v88_v30, %v62_v28 }
  0x21   :  { %v59_v38 = vmul.f32 %v58_v32, %v32_v1  ;;  %v775_v39 = vrot.slane %v58_v32, %v160_v29  ;;  %v305_v32 = vld [vmem:[%s1613_s1 + $0x40] sm:$0xff] }
  0x22   :  { %v91_v43 = vmul.f32 %v90_v34, %v64_v3  ;;  %v786_v44 = vrot.slane %v90_v34, %v160_v29  ;;  %v306_v34 = vld [vmem:[%s1613_s1 + $0x48] sm:$0xff] }
  0x23   :  { %v60_v48 = vsub.f32 %v31_v31, %v59_v38  ;;  %v163_v49 = vmul.f32 %v775_v39, %v93_v35  ;;  %v164_v50 = vmul.f32 %v775_v39, %v94_v36  ;;  %v165_v51 = vmul.f32 %v775_v39, %v95_v37 }
  0x24   :  { %v92_v55 = vsub.f32 %v63_v33, %v91_v43  ;;  %v367_v56 = vmul.f32 %v786_v44, %v297_v40  ;;  %v368_v57 = vmul.f32 %v786_v44, %v298_v41  ;;  %v369_v58 = vmul.f32 %v786_v44, %v299_v42  ;;  %v102_v33 = vld [vmem:[%s1612_s0 + $0x48] sm:$0xff]  ;;  %v103_v40 = vld [vmem:[%s1612_s0 + $0x50] sm:$0xff] }
  0x25   :  { %v812_v59 = vrot.slane %v60_v48, %v160_v29  ;;  %v166_v60 = vmul.f32 %v775_v39, %v96_v45  ;;  %v370_v61 = vmul.f32 %v786_v44, %v300_v46  ;;  %v167_v62 = vmul.f32 %v775_v39, %v97_v47  ;;  %v307_v41 = vld [vmem:[%s1613_s1 + $0x50] sm:$0xff]  ;;  %v104_v47 = vld [vmem:[%s1612_s0 + $0x58] sm:$0xff] }
  0x26   :  { %v823_v1 = vrot.slane %v92_v55, %v160_v29  ;;  %v371_v2 = vmul.f32 %v786_v44, %v301_v52  ;;  %v168_v3 = vmul.f32 %v775_v39, %v98_v53  ;;  %v372_v4 = vmul.f32 %v786_v44, %v302_v54  ;;  %v308_v48 = vld [vmem:[%s1613_s1 + $0x58] sm:$0xff]  ;;  %v105_v53 = vld [vmem:[%s1612_s0 + $0x60] sm:$0xff] }
  0x27   :  { %v233_v5 = vadd.f32 %v812_v59, %v163_v49  ;;  %v234_v6 = vadd.f32 %v812_v59, %v164_v50  ;;  %v235_v7 = vadd.f32 %v812_v59, %v165_v51  ;;  %v236_v8 = vadd.f32 %v812_v59, %v166_v60  ;;  %v309_v54 = vld [vmem:[%s1613_s1 + $0x60] sm:$0xff]  ;;  %v106_v60 = vld [vmem:[%s1612_s0 + $0x68] sm:$0xff] }
  0x28   :  { %v237_v10 = vadd.f32 %v812_v59, %v167_v62  ;;  %v238_v11 = vadd.f32 %v812_v59, %v168_v3  ;;  %v169_v12 = vmul.f32 %v775_v39, %v99_v63  ;;  %v373_v13 = vmul.f32 %v786_v44, %v303_v0 }
  0x29   :  { %v431_v14 = vadd.f32 %v367_v56, %v233_v5  ;;  %v432_v15 = vadd.f32 %v368_v57, %v234_v6  ;;  %v433_v16 = vadd.f32 %v369_v58, %v235_v7  ;;  %v434_v17 = vadd.f32 %v370_v61, %v236_v8 }
  0x2a   :  { %v435_v18 = vadd.f32 %v371_v2, %v237_v10  ;;  %v436_v19 = vadd.f32 %v372_v4, %v238_v11  ;;  %v239_v20 = vadd.f32 %v812_v59, %v169_v12  ;;  %v170_v21 = vmul.f32 %v775_v39, %v100_v9  ;;  %v310_v2 = vld [vmem:[%s1613_s1 + $0x68] sm:$0xff]  ;;  %v107_v11 = vld [vmem:[%s1612_s0 + $0x70] sm:$0xff] }
  0x2b   :  { %v501_v22 = vadd.f32 %v823_v1, %v431_v14  ;;  %v502_v23 = vadd.f32 %v823_v1, %v432_v15  ;;  %v503_v24 = vadd.f32 %v823_v1, %v433_v16  ;;  %v504_v25 = vadd.f32 %v823_v1, %v434_v17  ;;  %v311_v12 = vld [vmem:[%s1613_s1 + $0x70] sm:$0xff] }
  0x2c   :  { %v505_v28 = vadd.f32 %v823_v1, %v435_v18  ;;  %v506_v29 = vadd.f32 %v823_v1, %v436_v19  ;;  %v437_v30 = vadd.f32 %v373_v13, %v239_v20  ;;  %v240_v31 = vadd.f32 %v812_v59, %v170_v21  ;;  %v108_v21 = vld [vmem:[%s1612_s0 + $0x78] sm:$0xff] }
  0x2d   :  { %v565_v35 = vmax.f32 %v501_v22, 0.0  ;;  %v566_v36 = vmax.f32 %v502_v23, 0.0  ;;  %v567_v37 = vmax.f32 %v503_v24, 0.0  ;;  %v568_v38 = vmax.f32 %v504_v25, 0.0 }
  0x2e   :  { %v569_v42 = vmax.f32 %v505_v28, 0.0  ;;  %v570_v43 = vmax.f32 %v506_v29, 0.0  ;;  %v507_v45 = vadd.f32 %v823_v1, %v437_v30  ;;  %v374_v46 = vmul.f32 %v786_v44, %v304_v26  ;;  %v312_v26 = vld [vmem:[%s1613_s1 + $0x78] sm:$0xff] }
  0x2f   :  { %629 = vst [vmem:[%s1614_s8] sm:$0xff] %v565_v35  ;;  %630 = vst [vmem:[%s1614_s8 + $0x8] sm:$0xff] %v566_v36  ;;  %v171_v49 = vmul.f32 %v775_v39, %v101_v27  ;;  %v375_v50 = vmul.f32 %v786_v44, %v305_v32  ;;  %v172_v51 = vmul.f32 %v775_v39, %v102_v33  ;;  %v109_v27 = vld [vmem:[%s1612_s0 + $0x80] sm:$0xff] }
  0x30   :  { %631 = vst [vmem:[%s1614_s8 + $0x10] sm:$0xff] %v567_v37  ;;  %632 = vst [vmem:[%s1614_s8 + $0x18] sm:$0xff] %v568_v38  ;;  %v376_v52 = vmul.f32 %v786_v44, %v306_v34  ;;  %v571_v55 = vmax.f32 %v507_v45, 0.0  ;;  %v438_v56 = vadd.f32 %v374_v46, %v240_v31  ;;  %v173_v57 = vmul.f32 %v775_v39, %v103_v40  ;;  %v313_v32 = vld [vmem:[%s1613_s1 + $0x80] sm:$0xff]  ;;  %v110_v37 = vld [vmem:[%s1612_s0 + $0x88] sm:$0xff] }
  0x31   :  { %633 = vst [vmem:[%s1614_s8 + $0x20] sm:$0xff] %v569_v42  ;;  %634 = vst [vmem:[%s1614_s8 + $0x28] sm:$0xff] %v570_v43  ;;  %v377_v58 = vmul.f32 %v786_v44, %v307_v41  ;;  %v241_v61 = vadd.f32 %v812_v59, %v171_v49  ;;  %v242_v62 = vadd.f32 %v812_v59, %v172_v51  ;;  %v314_v38 = vld [vmem:[%s1613_s1 + $0x88] sm:$0xff]  ;;  %v111_v45 = vld [vmem:[%s1612_s0 + $0x90] sm:$0xff] }
  0x32   :  { %v174_v63 = vmul.f32 %v775_v39, %v104_v47  ;;  %v378_v0 = vmul.f32 %v786_v44, %v308_v48  ;;  %635 = vst [vmem:[%s1614_s8 + $0x30] sm:$0xff] %v571_v55  ;;  %v508_v3 = vadd.f32 %v823_v1, %v438_v56  ;;  %v243_v4 = vadd.f32 %v812_v59, %v173_v57  ;;  %v315_v46 = vld [vmem:[%s1613_s1 + $0x90] sm:$0xff]  ;;  %v112_v51 = vld [vmem:[%s1612_s0 + $0x98] sm:$0xff]  ;;  %v113_v57 = vld [vmem:[%s1612_s0 + $0xa0] sm:$0xff] }
  0x33   :  { %v175_v5 = vmul.f32 %v775_v39, %v105_v53  ;;  %v379_v6 = vmul.f32 %v786_v44, %v309_v54  ;;  %v439_v7 = vadd.f32 %v375_v50, %v241_v61  ;;  %v440_v8 = vadd.f32 %v376_v52, %v242_v62  ;;  %v316_v52 = vld [vmem:[%s1613_s1 + $0x98] sm:$0xff] }
  0x34   :  { %v244_v9 = vadd.f32 %v812_v59, %v174_v63  ;;  %v176_v10 = vmul.f32 %v775_v39, %v106_v60  ;;  %v572_v13 = vmax.f32 %v508_v3, 0.0  ;;  %v441_v14 = vadd.f32 %v377_v58, %v243_v4  ;;  %v317_v63 = vld [vmem:[%s1613_s1 + $0xa0] sm:$0xff] }
  0x35   :  { %v245_v15 = vadd.f32 %v812_v59, %v175_v5  ;;  %v380_v16 = vmul.f32 %v786_v44, %v310_v2  ;;  %v509_v17 = vadd.f32 %v823_v1, %v439_v7  ;;  %v510_v18 = vadd.f32 %v823_v1, %v440_v8  ;;  %v114_v5 = vld [vmem:[%s1612_s0 + $0xa8] sm:$0xff] }
  0x36   :  { %v442_v19 = vadd.f32 %v378_v0, %v244_v9  ;;  %v246_v20 = vadd.f32 %v812_v59, %v176_v10  ;;  %636 = vst [vmem:[%s1614_s8 + $0x38] sm:$0xff] %v572_v13  ;;  %v511_v22 = vadd.f32 %v823_v1, %v441_v14  ;;  %v177_v24 = vmul.f32 %v775_v39, %v107_v11  ;;  %v318_v10 = vld [vmem:[%s1613_s1 + $0xa8] sm:$0xff] }
  0x37   :  { %v443_v23 = vadd.f32 %v379_v6, %v245_v15  ;;  %v381_v25 = vmul.f32 %v786_v44, %v311_v12  ;;  %v573_v28 = vmax.f32 %v509_v17, 0.0  ;;  %v574_v29 = vmax.f32 %v510_v18, 0.0  ;;  %v115_v15 = vld [vmem:[%s1612_s0 + $0xb0] sm:$0xff] }
  0x38   :  { %v512_v30 = vadd.f32 %v823_v1, %v442_v19  ;;  %v444_v31 = vadd.f32 %v380_v16, %v246_v20  ;;  %v575_v33 = vmax.f32 %v511_v22, 0.0  ;;  %v247_v35 = vadd.f32 %v812_v59, %v177_v24  ;;  %v319_v20 = vld [vmem:[%s1613_s1 + $0xb0] sm:$0xff] }
  0x39   :  { %v513_v34 = vadd.f32 %v823_v1, %v443_v23  ;;  %v178_v36 = vmul.f32 %v775_v39, %v108_v21  ;;  %637 = vst [vmem:[%s1614_s8 + $0x40] sm:$0xff] %v573_v28  ;;  %638 = vst [vmem:[%s1614_s8 + $0x48] sm:$0xff] %v574_v29  ;;  %v382_v42 = vmul.f32 %v786_v44, %v312_v26  ;;  %v116_v21 = vld [vmem:[%s1612_s0 + $0xb8] sm:$0xff] }
  0x3a   :  { %v576_v40 = vmax.f32 %v512_v30, 0.0  ;;  %v514_v41 = vadd.f32 %v823_v1, %v444_v31  ;;  %v179_v43 = vmul.f32 %v775_v39, %v109_v27  ;;  %639 = vst [vmem:[%s1614_s8 + $0x50] sm:$0xff] %v575_v33  ;;  %v445_v48 = vadd.f32 %v381_v25, %v247_v35  ;;  %v320_v30 = vld [vmem:[%s1613_s1 + $0xb8] sm:$0xff]  ;;  %v117_v31 = vld [vmem:[%s1612_s0 + $0xc0] sm:$0xff] }
  0x3b   :  { %v577_v47 = vmax.f32 %v513_v34, 0.0  ;;  %v248_v49 = vadd.f32 %v812_v59, %v178_v36  ;;  %v383_v50 = vmul.f32 %v786_v44, %v313_v32  ;;  %v180_v55 = vmul.f32 %v775_v39, %v110_v37  ;;  %v321_v36 = vld [vmem:[%s1613_s1 + $0xc0] sm:$0xff] }
  0x3c   :  { %640 = vst [vmem:[%s1614_s8 + $0x58] sm:$0xff] %v576_v40  ;;  %v578_v53 = vmax.f32 %v514_v41, 0.0  ;;  %v249_v54 = vadd.f32 %v812_v59, %v179_v43  ;;  %v384_v56 = vmul.f32 %v786_v44, %v314_v38  ;;  %v515_v58 = vadd.f32 %v823_v1, %v445_v48  ;;  %v322_v43 = vld [vmem:[%s1613_s1 + $0xc8] sm:$0xff] }
  0x3d   :  { %641 = vst [vmem:[%s1614_s8 + $0x60] sm:$0xff] %v577_v47  ;;  %v446_v60 = vadd.f32 %v382_v42, %v248_v49  ;;  %v181_v61 = vmul.f32 %v775_v39, %v111_v45  ;;  %v385_v62 = vmul.f32 %v786_v44, %v315_v46  ;;  %v250_v2 = vadd.f32 %v812_v59, %v180_v55  ;;  %v118_v42 = vld [vmem:[%s1612_s0 + $0xc8] sm:$0xff]  ;;  %v119_v49 = vld [vmem:[%s1612_s0 + $0xd0] sm:$0xff]  ;;  %v120_v55 = vld [vmem:[%s1612_s0 + $0xd8] sm:$0xff] }
  0x3e   :  { %642 = vst [vmem:[%s1614_s8 + $0x68] sm:$0xff] %v578_v53  ;;  %v447_v0 = vadd.f32 %v383_v50, %v249_v54  ;;  %v182_v3 = vmul.f32 %v775_v39, %v112_v51  ;;  %v386_v4 = vmul.f32 %v786_v44, %v316_v52  ;;  %v579_v6 = vmax.f32 %v515_v58, 0.0  ;;  %v323_v50 = vld [vmem:[%s1613_s1 + $0xd0] sm:$0xff] }
  0x3f   :  { %v516_v7 = vadd.f32 %v823_v1, %v446_v60  ;;  %v251_v8 = vadd.f32 %v812_v59, %v181_v61  ;;  %v183_v9 = vmul.f32 %v775_v39, %v113_v57  ;;  %v448_v12 = vadd.f32 %v384_v56, %v250_v2  ;;  %v324_v61 = vld [vmem:[%s1613_s1 + $0xd8] sm:$0xff] }
  0x40   :  { %v517_v11 = vadd.f32 %v823_v1, %v447_v0  ;;  %v252_v13 = vadd.f32 %v812_v59, %v182_v3  ;;  %v387_v14 = vmul.f32 %v786_v44, %v317_v63  ;;  %643 = vst [vmem:[%s1614_s8 + $0x70] sm:$0xff] %v579_v6  ;;  %v184_v19 = vmul.f32 %v775_v39, %v114_v5 }
  0x41   :  { %v580_v16 = vmax.f32 %v516_v7, 0.0  ;;  %v449_v17 = vadd.f32 %v385_v62, %v251_v8  ;;  %v253_v18 = vadd.f32 %v812_v59, %v183_v9  ;;  %v518_v23 = vadd.f32 %v823_v1, %v448_v12  ;;  %v121_v62 = vld [vmem:[%s1612_s0 + $0xe0] sm:$0xff]  ;;  %v122_v9 = vld [vmem:[%s1612_s0 + $0xe8] sm:$0xff] }
  0x42   :  { %v581_v22 = vmax.f32 %v517_v11, 0.0  ;;  %v450_v24 = vadd.f32 %v386_v4, %v252_v13  ;;  %v388_v25 = vmul.f32 %v786_v44, %v318_v10  ;;  %v254_v28 = vadd.f32 %v812_v59, %v184_v19  ;;  %v325_v8 = vld [vmem:[%s1613_s1 + $0xe0] sm:$0xff]  ;;  %v123_v19 = vld [vmem:[%s1612_s0 + $0xf0] sm:$0xff] }
  0x43   :  { %644 = vst [vmem:[%s1614_s8 + $0x78] sm:$0xff] %v580_v16  ;;  %v519_v26 = vadd.f32 %v823_v1, %v449_v17  ;;  %v451_v27 = vadd.f32 %v387_v14, %v253_v18  ;;  %v185_v29 = vmul.f32 %v775_v39, %v115_v15  ;;  %v582_v32 = vmax.f32 %v518_v23, 0.0  ;;  %v326_v14 = vld [vmem:[%s1613_s1 + $0xe8] sm:$0xff] }
  0x44   :  { %645 = vst [vmem:[%s1614_s8 + $0x80] sm:$0xff] %v581_v22  ;;  %v520_v33 = vadd.f32 %v823_v1, %v450_v24  ;;  %v389_v34 = vmul.f32 %v786_v44, %v319_v20  ;;  %v186_v35 = vmul.f32 %v775_v39, %v116_v21  ;;  %v452_v40 = vadd.f32 %v388_v25, %v254_v28  ;;  %v327_v24 = vld [vmem:[%s1613_s1 + $0xf0] sm:$0xff]  ;;  %v124_v25 = vld [vmem:[%s1612_s0 + $0xf8] sm:$0xff] }
  0x45   :  { %v583_v37 = vmax.f32 %v519_v26, 0.0  ;;  %v521_v38 = vadd.f32 %v823_v1, %v451_v27  ;;  %v255_v41 = vadd.f32 %v812_v59, %v185_v29  ;;  %646 = vst [vmem:[%s1614_s8 + $0x88] sm:$0xff] %v582_v32  ;;  %v390_v47 = vmul.f32 %v786_v44, %v320_v30 }
  0x46   :  { %v584_v45 = vmax.f32 %v520_v33, 0.0  ;;  %v256_v46 = vadd.f32 %v812_v59, %v186_v35  ;;  %v187_v48 = vmul.f32 %v775_v39, %v117_v31  ;;  %v522_v52 = vadd.f32 %v823_v1, %v452_v40  ;;  %v125_v35 = vld [vmem:[%s1612_s0 + $0x100] sm:$0xff] }
  0x47   :  { %647 = vst [vmem:[%s1614_s8 + $0x90] sm:$0xff] %v583_v37  ;;  %v585_v51 = vmax.f32 %v521_v38, 0.0  ;;  %v453_v53 = vadd.f32 %v389_v34, %v255_v41  ;;  %v391_v54 = vmul.f32 %v786_v44, %v321_v36  ;;  %v188_v58 = vmul.f32 %v775_v39, %v118_v42  ;;  %v328_v34 = vld [vmem:[%s1613_s1 + $0xf8] sm:$0xff]  ;;  %v329_v41 = vld [vmem:[%s1613_s1 + $0x100] sm:$0xff] }
  0x48   :  { %648 = vst [vmem:[%s1614_s8 + $0x98] sm:$0xff] %v584_v45  ;;  %v454_v56 = vadd.f32 %v390_v47, %v256_v46  ;;  %v257_v57 = vadd.f32 %v812_v59, %v187_v48  ;;  %v392_v60 = vmul.f32 %v786_v44, %v322_v43  ;;  %v586_v63 = vmax.f32 %v522_v52, 0.0  ;;  %v126_v47 = vld [vmem:[%s1612_s0 + $0x108] sm:$0xff] }
  0x49   :  { %649 = vst [vmem:[%s1614_s8 + $0xa0] sm:$0xff] %v585_v51  ;;  %v523_v0 = vadd.f32 %v823_v1, %v453_v53  ;;  %v189_v2 = vmul.f32 %v775_v39, %v119_v49  ;;  %v393_v3 = vmul.f32 %v786_v44, %v323_v50  ;;  %v258_v6 = vadd.f32 %v812_v59, %v188_v58  ;;  %v330_v48 = vld [vmem:[%s1613_s1 + $0x108] sm:$0xff]  ;;  %v127_v53 = vld [vmem:[%s1612_s0 + $0x110] sm:$0xff] }
  0x4a   :  { %v524_v4 = vadd.f32 %v823_v1, %v454_v56  ;;  %v455_v5 = vadd.f32 %v391_v54, %v257_v57  ;;  %v190_v7 = vmul.f32 %v775_v39, %v120_v55  ;;  %650 = vst [vmem:[%s1614_s8 + $0xa8] sm:$0xff] %v586_v63  ;;  %v394_v12 = vmul.f32 %v786_v44, %v324_v61  ;;  %v331_v54 = vld [vmem:[%s1613_s1 + $0x110] sm:$0xff] }
  0x4b   :  { %v587_v10 = vmax.f32 %v523_v0, 0.0  ;;  %v259_v11 = vadd.f32 %v812_v59, %v189_v2  ;;  %v191_v13 = vmul.f32 %v775_v39, %v121_v62  ;;  %v456_v17 = vadd.f32 %v392_v60, %v258_v6  ;;  %v128_v60 = vld [vmem:[%s1612_s0 + $0x118] sm:$0xff] }
  0x4c   :  { %v588_v15 = vmax.f32 %v524_v4, 0.0  ;;  %v525_v16 = vadd.f32 %v823_v1, %v455_v5  ;;  %v260_v18 = vadd.f32 %v812_v59, %v190_v7  ;;  %v395_v22 = vmul.f32 %v786_v44, %v325_v8  ;;  %v332_v2 = vld [vmem:[%s1613_s1 + $0x118] sm:$0xff] }
  0x4d   :  { %651 = vst [vmem:[%s1614_s8 + $0xb0] sm:$0xff] %v587_v10  ;;  %v457_v20 = vadd.f32 %v393_v3, %v259_v11  ;;  %v261_v21 = vadd.f32 %v812_v59, %v191_v13  ;;  %v192_v23 = vmul.f32 %v775_v39, %v122_v9  ;;  %v526_v27 = vadd.f32 %v823_v1, %v456_v17  ;;  %v129_v3 = vld [vmem:[%s1612_s0 + $0x120] sm:$0xff]  ;;  %v130_v13 = vld [vmem:[%s1612_s0 + $0x128] sm:$0xff] }
  0x4e   :  { %652 = vst [vmem:[%s1614_s8 + $0xb8] sm:$0xff] %v588_v15  ;;  %v589_v26 = vmax.f32 %v525_v16, 0.0  ;;  %v458_v28 = vadd.f32 %v394_v12, %v260_v18  ;;  %v396_v29 = vmul.f32 %v786_v44, %v326_v14  ;;  %v193_v33 = vmul.f32 %v775_v39, %v123_v19  ;;  %v333_v12 = vld [vmem:[%s1613_s1 + $0x120] sm:$0xff]  ;;  %v334_v18 = vld [vmem:[%s1613_s1 + $0x128] sm:$0xff] }
  0x4f   :  { %v527_v30 = vadd.f32 %v823_v1, %v457_v20  ;;  %v459_v31 = vadd.f32 %v395_v22, %v261_v21  ;;  %v262_v32 = vadd.f32 %v812_v59, %v192_v23  ;;  %v590_v36 = vmax.f32 %v526_v27, 0.0  ;;  %v131_v23 = vld [vmem:[%s1612_s0 + $0x130] sm:$0xff] }
  0x50   :  { %653 = vst [vmem:[%s1614_s8 + $0xc0] sm:$0xff] %v589_v26  ;;  %v528_v37 = vadd.f32 %v823_v1, %v458_v28  ;;  %v397_v38 = vmul.f32 %v786_v44, %v327_v24  ;;  %v194_v40 = vmul.f32 %v775_v39, %v124_v25  ;;  %v263_v46 = vadd.f32 %v812_v59, %v193_v33  ;;  %v335_v28 = vld [vmem:[%s1613_s1 + $0x130] sm:$0xff] }
  0x51   :  { %v591_v42 = vmax.f32 %v527_v30, 0.0  ;;  %v529_v43 = vadd.f32 %v823_v1, %v459_v31  ;;  %v460_v45 = vadd.f32 %v396_v29, %v262_v32  ;;  %654 = vst [vmem:[%s1614_s8 + $0xc8] sm:$0xff] %v590_v36  ;;  %v398_v51 = vmul.f32 %v786_v44, %v328_v34  ;;  %v132_v29 = vld [vmem:[%s1612_s0 + $0x138] sm:$0xff] }
  0x52   :  { %v592_v49 = vmax.f32 %v528_v37, 0.0  ;;  %v264_v50 = vadd.f32 %v812_v59, %v194_v40  ;;  %v195_v52 = vmul.f32 %v775_v39, %v125_v35  ;;  %v461_v57 = vadd.f32 %v397_v38, %v263_v46  ;;  %v336_v38 = vld [vmem:[%s1613_s1 + $0x138] sm:$0xff]  ;;  %v133_v40 = vld [vmem:[%s1612_s0 + $0x140] sm:$0xff] }
  0x53   :  { %655 = vst [vmem:[%s1614_s8 + $0xd0] sm:$0xff] %v591_v42  ;;  %v593_v55 = vmax.f32 %v529_v43, 0.0  ;;  %v530_v56 = vadd.f32 %v823_v1, %v460_v45  ;;  %v399_v58 = vmul.f32 %v786_v44, %v329_v41  ;;  %v196_v63 = vmul.f32 %v775_v39, %v126_v47  ;;  %v337_v46 = vld [vmem:[%s1613_s1 + $0x140] sm:$0xff] }
  0x54   :  { %656 = vst [vmem:[%s1614_s8 + $0xd8] sm:$0xff] %v592_v49  ;;  %v462_v61 = vadd.f32 %v398_v51, %v264_v50  ;;  %v265_v62 = vadd.f32 %v812_v59, %v195_v52  ;;  %v400_v0 = vmul.f32 %v786_v44, %v330_v48  ;;  %v531_v5 = vadd.f32 %v823_v1, %v461_v57  ;;  %v134_v51 = vld [vmem:[%s1612_s0 + $0x148] sm:$0xff]  ;;  %v135_v57 = vld [vmem:[%s1612_s0 + $0x150] sm:$0xff] }
  0x55   :  { %657 = vst [vmem:[%s1614_s8 + $0xe0] sm:$0xff] %v593_v55  ;;  %v594_v4 = vmax.f32 %v530_v56, 0.0  ;;  %v197_v6 = vmul.f32 %v775_v39, %v127_v53  ;;  %v401_v7 = vmul.f32 %v786_v44, %v331_v54  ;;  %v266_v10 = vadd.f32 %v812_v59, %v196_v63  ;;  %v338_v52 = vld [vmem:[%s1613_s1 + $0x148] sm:$0xff] }
  0x56   :  { %v532_v8 = vadd.f32 %v823_v1, %v462_v61  ;;  %v463_v9 = vadd.f32 %v399_v58, %v265_v62  ;;  %v198_v11 = vmul.f32 %v775_v39, %v128_v60  ;;  %v595_v14 = vmax.f32 %v531_v5, 0.0  ;;  %v339_v58 = vld [vmem:[%s1613_s1 + $0x150] sm:$0xff] }
  0x57   :  { %658 = vst [vmem:[%s1614_s8 + $0xe8] sm:$0xff] %v594_v4  ;;  %v267_v15 = vadd.f32 %v812_v59, %v197_v6  ;;  %v402_v16 = vmul.f32 %v786_v44, %v332_v2  ;;  %v199_v17 = vmul.f32 %v775_v39, %v129_v3  ;;  %v464_v21 = vadd.f32 %v400_v0, %v266_v10  ;;  %v136_v0 = vld [vmem:[%s1612_s0 + $0x158] sm:$0xff] }
  0x58   :  { %v596_v19 = vmax.f32 %v532_v8, 0.0  ;;  %v533_v20 = vadd.f32 %v823_v1, %v463_v9  ;;  %v268_v22 = vadd.f32 %v812_v59, %v198_v11  ;;  %659 = vst [vmem:[%s1614_s8 + $0xf0] sm:$0xff] %v595_v14  ;;  %v403_v26 = vmul.f32 %v786_v44, %v333_v12  ;;  %v340_v6 = vld [vmem:[%s1613_s1 + $0x158] sm:$0xff] }
  0x59   :  { %v465_v24 = vadd.f32 %v401_v7, %v267_v15  ;;  %v269_v25 = vadd.f32 %v812_v59, %v199_v17  ;;  %v200_v27 = vmul.f32 %v775_v39, %v130_v13  ;;  %v534_v31 = vadd.f32 %v823_v1, %v464_v21  ;;  %v137_v7 = vld [vmem:[%s1612_s0 + $0x160] sm:$0xff]  ;;  %v138_v17 = vld [vmem:[%s1612_s0 + $0x168] sm:$0xff] }
  0x5a   :  { %660 = vst [vmem:[%s1614_s8 + $0xf8] sm:$0xff] %v596_v19  ;;  %v597_v30 = vmax.f32 %v533_v20, 0.0  ;;  %v466_v32 = vadd.f32 %v402_v16, %v268_v22  ;;  %v404_v33 = vmul.f32 %v786_v44, %v334_v18  ;;  %v201_v37 = vmul.f32 %v775_v39, %v131_v23  ;;  %v341_v16 = vld [vmem:[%s1613_s1 + $0x160] sm:$0xff]  ;;  %v342_v22 = vld [vmem:[%s1613_s1 + $0x168] sm:$0xff] }
  0x5b   :  { %v535_v34 = vadd.f32 %v823_v1, %v465_v24  ;;  %v467_v35 = vadd.f32 %v403_v26, %v269_v25  ;;  %v270_v36 = vadd.f32 %v812_v59, %v200_v27  ;;  %v598_v41 = vmax.f32 %v534_v31, 0.0  ;;  %v139_v27 = vld [vmem:[%s1612_s0 + $0x170] sm:$0xff] }
  0x5c   :  { %661 = vst [vmem:[%s1614_s8 + $0x100] sm:$0xff] %v597_v30  ;;  %v536_v42 = vadd.f32 %v823_v1, %v466_v32  ;;  %v405_v43 = vmul.f32 %v786_v44, %v335_v28  ;;  %v202_v45 = vmul.f32 %v775_v39, %v132_v29  ;;  %v271_v50 = vadd.f32 %v812_v59, %v201_v37  ;;  %v343_v32 = vld [vmem:[%s1613_s1 + $0x170] sm:$0xff] }
  0x5d   :  { %v599_v47 = vmax.f32 %v535_v34, 0.0  ;;  %v537_v48 = vadd.f32 %v823_v1, %v467_v35  ;;  %v468_v49 = vadd.f32 %v404_v33, %v270_v36  ;;  %662 = vst [vmem:[%s1614_s8 + $0x108] sm:$0xff] %v598_v41  ;;  %v406_v55 = vmul.f32 %v786_v44, %v336_v38  ;;  %v140_v33 = vld [vmem:[%s1612_s0 + $0x178] sm:$0xff] }
  0x5e   :  { %v600_v53 = vmax.f32 %v536_v42, 0.0  ;;  %v272_v54 = vadd.f32 %v812_v59, %v202_v45  ;;  %v203_v56 = vmul.f32 %v775_v39, %v133_v40  ;;  %v469_v62 = vadd.f32 %v405_v43, %v271_v50  ;;  %v344_v43 = vld [vmem:[%s1613_s1 + $0x178] sm:$0xff]  ;;  %v141_v45 = vld [vmem:[%s1612_s0 + $0x180] sm:$0xff] }
  0x5f   :  { %663 = vst [vmem:[%s1614_s8 + $0x110] sm:$0xff] %v599_v47  ;;  %v601_v60 = vmax.f32 %v537_v48, 0.0  ;;  %v538_v61 = vadd.f32 %v823_v1, %v468_v49  ;;  %v407_v63 = vmul.f32 %v786_v44, %v337_v46  ;;  %v204_v4 = vmul.f32 %v775_v39, %v134_v51  ;;  %v345_v50 = vld [vmem:[%s1613_s1 + $0x180] sm:$0xff] }
  0x60   :  { %664 = vst [vmem:[%s1614_s8 + $0x118] sm:$0xff] %v600_v53  ;;  %v470_v2 = vadd.f32 %v406_v55, %v272_v54  ;;  %v273_v3 = vadd.f32 %v812_v59, %v203_v56  ;;  %v408_v5 = vmul.f32 %v786_v44, %v338_v52  ;;  %v539_v9 = vadd.f32 %v823_v1, %v469_v62  ;;  %v142_v55 = vld [vmem:[%s1612_s0 + $0x188] sm:$0xff]  ;;  %v143_v62 = vld [vmem:[%s1612_s0 + $0x190] sm:$0xff] }
  0x61   :  { %665 = vst [vmem:[%s1614_s8 + $0x120] sm:$0xff] %v601_v60  ;;  %v602_v8 = vmax.f32 %v538_v61, 0.0  ;;  %v205_v10 = vmul.f32 %v775_v39, %v135_v57  ;;  %v409_v11 = vmul.f32 %v786_v44, %v339_v58  ;;  %v274_v14 = vadd.f32 %v812_v59, %v204_v4  ;;  %v346_v56 = vld [vmem:[%s1613_s1 + $0x188] sm:$0xff] }
  0x62   :  { %v540_v12 = vadd.f32 %v823_v1, %v470_v2  ;;  %v471_v13 = vadd.f32 %v407_v63, %v273_v3  ;;  %v206_v15 = vmul.f32 %v775_v39, %v136_v0  ;;  %v603_v18 = vmax.f32 %v539_v9, 0.0  ;;  %v347_v63 = vld [vmem:[%s1613_s1 + $0x190] sm:$0xff] }
  0x63   :  { %666 = vst [vmem:[%s1614_s8 + $0x128] sm:$0xff] %v602_v8  ;;  %v275_v19 = vadd.f32 %v812_v59, %v205_v10  ;;  %v410_v20 = vmul.f32 %v786_v44, %v340_v6  ;;  %v207_v21 = vmul.f32 %v775_v39, %v137_v7  ;;  %v472_v25 = vadd.f32 %v408_v5, %v274_v14  ;;  %v144_v5 = vld [vmem:[%s1612_s0 + $0x198] sm:$0xff] }
  0x64   :  { %v604_v23 = vmax.f32 %v540_v12, 0.0  ;;  %v541_v24 = vadd.f32 %v823_v1, %v471_v13  ;;  %v276_v26 = vadd.f32 %v812_v59, %v206_v15  ;;  %667 = vst [vmem:[%s1614_s8 + $0x130] sm:$0xff] %v603_v18  ;;  %v411_v30 = vmul.f32 %v786_v44, %v341_v16  ;;  %v348_v10 = vld [vmem:[%s1613_s1 + $0x198] sm:$0xff] }
  0x65   :  { %v473_v28 = vadd.f32 %v409_v11, %v275_v19  ;;  %v277_v29 = vadd.f32 %v812_v59, %v207_v21  ;;  %v208_v31 = vmul.f32 %v775_v39, %v138_v17  ;;  %v542_v35 = vadd.f32 %v823_v1, %v472_v25  ;;  %v145_v11 = vld [vmem:[%s1612_s0 + $0x1a0] sm:$0xff]  ;;  %v146_v21 = vld [vmem:[%s1612_s0 + $0x1a8] sm:$0xff] }
  0x66   :  { %668 = vst [vmem:[%s1614_s8 + $0x138] sm:$0xff] %v604_v23  ;;  %v605_v34 = vmax.f32 %v541_v24, 0.0  ;;  %v474_v36 = vadd.f32 %v410_v20, %v276_v26  ;;  %v412_v37 = vmul.f32 %v786_v44, %v342_v22  ;;  %v209_v42 = vmul.f32 %v775_v39, %v139_v27  ;;  %v349_v20 = vld [vmem:[%s1613_s1 + $0x1a0] sm:$0xff]  ;;  %v350_v26 = vld [vmem:[%s1613_s1 + $0x1a8] sm:$0xff] }
  0x67   :  { %v543_v38 = vadd.f32 %v823_v1, %v473_v28  ;;  %v475_v40 = vadd.f32 %v411_v30, %v277_v29  ;;  %v278_v41 = vadd.f32 %v812_v59, %v208_v31  ;;  %v606_v46 = vmax.f32 %v542_v35, 0.0  ;;  %v147_v31 = vld [vmem:[%s1612_s0 + $0x1b0] sm:$0xff] }
  0x68   :  { %669 = vst [vmem:[%s1614_s8 + $0x140] sm:$0xff] %v605_v34  ;;  %v544_v47 = vadd.f32 %v823_v1, %v474_v36  ;;  %v413_v48 = vmul.f32 %v786_v44, %v343_v32  ;;  %v210_v49 = vmul.f32 %v775_v39, %v140_v33  ;;  %v279_v54 = vadd.f32 %v812_v59, %v209_v42  ;;  %v351_v36 = vld [vmem:[%s1613_s1 + $0x1b0] sm:$0xff] }
  0x69   :  { %v607_v51 = vmax.f32 %v543_v38, 0.0  ;;  %v545_v52 = vadd.f32 %v823_v1, %v475_v40  ;;  %v476_v53 = vadd.f32 %v412_v37, %v278_v41  ;;  %670 = vst [vmem:[%s1614_s8 + $0x148] sm:$0xff] %v606_v46  ;;  %v414_v60 = vmul.f32 %v786_v44, %v344_v43  ;;  %v148_v37 = vld [vmem:[%s1612_s0 + $0x1b8] sm:$0xff] }
  0x6a   :  { %v608_v57 = vmax.f32 %v544_v47, 0.0  ;;  %v280_v58 = vadd.f32 %v812_v59, %v210_v49  ;;  %v211_v61 = vmul.f32 %v775_v39, %v141_v45  ;;  %v477_v3 = vadd.f32 %v413_v48, %v279_v54  ;;  %v352_v48 = vld [vmem:[%s1613_s1 + $0x1b8] sm:$0xff]  ;;  %v149_v49 = vld [vmem:[%s1612_s0 + $0x1c0] sm:$0xff] }
  0x6b   :  { %671 = vst [vmem:[%s1614_s8 + $0x150] sm:$0xff] %v607_v51  ;;  %v609_v0 = vmax.f32 %v545_v52, 0.0  ;;  %v546_v2 = vadd.f32 %v823_v1, %v476_v53  ;;  %v415_v4 = vmul.f32 %v786_v44, %v345_v50  ;;  %v212_v8 = vmul.f32 %v775_v39, %v142_v55  ;;  %v353_v54 = vld [vmem:[%s1613_s1 + $0x1c0] sm:$0xff] }
  0x6c   :  { %672 = vst [vmem:[%s1614_s8 + $0x158] sm:$0xff] %v608_v57  ;;  %v478_v6 = vadd.f32 %v414_v60, %v280_v58  ;;  %v281_v7 = vadd.f32 %v812_v59, %v211_v61  ;;  %v416_v9 = vmul.f32 %v786_v44, %v346_v56  ;;  %v547_v13 = vadd.f32 %v823_v1, %v477_v3  ;;  %v150_v60 = vld [vmem:[%s1612_s0 + $0x1c8] sm:$0xff]  ;;  %v151_v3 = vld [vmem:[%s1612_s0 + $0x1d0] sm:$0xff] }
  0x6d   :  { %673 = vst [vmem:[%s1614_s8 + $0x160] sm:$0xff] %v609_v0  ;;  %v610_v12 = vmax.f32 %v546_v2, 0.0  ;;  %v213_v14 = vmul.f32 %v775_v39, %v143_v62  ;;  %v417_v15 = vmul.f32 %v786_v44, %v347_v63  ;;  %v282_v18 = vadd.f32 %v812_v59, %v212_v8  ;;  %v354_v61 = vld [vmem:[%s1613_s1 + $0x1c8] sm:$0xff] }
  0x6e   :  { %v548_v16 = vadd.f32 %v823_v1, %v478_v6  ;;  %v479_v17 = vadd.f32 %v415_v4, %v281_v7  ;;  %v214_v19 = vmul.f32 %v775_v39, %v144_v5  ;;  %v611_v22 = vmax.f32 %v547_v13, 0.0  ;;  %v355_v4 = vld [vmem:[%s1613_s1 + $0x1d0] sm:$0xff] }
  0x6f   :  { %674 = vst [vmem:[%s1614_s8 + $0x168] sm:$0xff] %v610_v12  ;;  %v283_v23 = vadd.f32 %v812_v59, %v213_v14  ;;  %v418_v24 = vmul.f32 %v786_v44, %v348_v10  ;;  %v215_v25 = vmul.f32 %v775_v39, %v145_v11  ;;  %v480_v29 = vadd.f32 %v416_v9, %v282_v18  ;;  %v152_v9 = vld [vmem:[%s1612_s0 + $0x1d8] sm:$0xff] }
  0x70   :  { %v612_v27 = vmax.f32 %v548_v16, 0.0  ;;  %v549_v28 = vadd.f32 %v823_v1, %v479_v17  ;;  %v284_v30 = vadd.f32 %v812_v59, %v214_v19  ;;  %675 = vst [vmem:[%s1614_s8 + $0x170] sm:$0xff] %v611_v22  ;;  %v419_v34 = vmul.f32 %v786_v44, %v349_v20  ;;  %v356_v14 = vld [vmem:[%s1613_s1 + $0x1d8] sm:$0xff] }
  0x71   :  { %v481_v32 = vadd.f32 %v417_v15, %v283_v23  ;;  %v285_v33 = vadd.f32 %v812_v59, %v215_v25  ;;  %v216_v35 = vmul.f32 %v775_v39, %v146_v21  ;;  %v550_v40 = vadd.f32 %v823_v1, %v480_v29  ;;  %v153_v15 = vld [vmem:[%s1612_s0 + $0x1e0] sm:$0xff]  ;;  %v154_v25 = vld [vmem:[%s1612_s0 + $0x1e8] sm:$0xff] }
  0x72   :  { %676 = vst [vmem:[%s1614_s8 + $0x178] sm:$0xff] %v612_v27  ;;  %v613_v38 = vmax.f32 %v549_v28, 0.0  ;;  %v482_v41 = vadd.f32 %v418_v24, %v284_v30  ;;  %v420_v42 = vmul.f32 %v786_v44, %v350_v26  ;;  %v217_v47 = vmul.f32 %v775_v39, %v147_v31  ;;  %v357_v24 = vld [vmem:[%s1613_s1 + $0x1e0] sm:$0xff]  ;;  %v358_v30 = vld [vmem:[%s1613_s1 + $0x1e8] sm:$0xff] }
  0x73   :  { %v551_v43 = vadd.f32 %v823_v1, %v481_v32  ;;  %v483_v45 = vadd.f32 %v419_v34, %v285_v33  ;;  %v286_v46 = vadd.f32 %v812_v59, %v216_v35  ;;  %v614_v50 = vmax.f32 %v550_v40, 0.0  ;;  %v155_v35 = vld [vmem:[%s1612_s0 + $0x1f0] sm:$0xff] }
  0x74   :  { %677 = vst [vmem:[%s1614_s8 + $0x180] sm:$0xff] %v613_v38  ;;  %v552_v51 = vadd.f32 %v823_v1, %v482_v41  ;;  %v421_v52 = vmul.f32 %v786_v44, %v351_v36  ;;  %v218_v53 = vmul.f32 %v775_v39, %v148_v37  ;;  %v287_v58 = vadd.f32 %v812_v59, %v217_v47  ;;  %v359_v41 = vld [vmem:[%s1613_s1 + $0x1f0] sm:$0xff] }
  0x75   :  { %v615_v55 = vmax.f32 %v551_v43, 0.0  ;;  %v553_v56 = vadd.f32 %v823_v1, %v483_v45  ;;  %v484_v57 = vadd.f32 %v420_v42, %v286_v46  ;;  %678 = vst [vmem:[%s1614_s8 + $0x188] sm:$0xff] %v614_v50  ;;  %v422_v0 = vmul.f32 %v786_v44, %v352_v48  ;;  %v156_v42 = vld [vmem:[%s1612_s0 + $0x1f8] sm:$0xff] }
  0x76   :  { %v616_v62 = vmax.f32 %v552_v51, 0.0  ;;  %v288_v63 = vadd.f32 %v812_v59, %v218_v53  ;;  %v219_v2 = vmul.f32 %v775_v39, %v149_v49  ;;  %v485_v7 = vadd.f32 %v421_v52, %v287_v58  ;;  %v360_v52 = vld [vmem:[%s1613_s1 + $0x1f8] sm:$0xff] }
  0x77   :  { %679 = vst [vmem:[%s1614_s8 + $0x190] sm:$0xff] %v615_v55  ;;  %v617_v5 = vmax.f32 %v553_v56, 0.0  ;;  %v554_v6 = vadd.f32 %v823_v1, %v484_v57  ;;  %v423_v8 = vmul.f32 %v786_v44, %v353_v54  ;;  %v220_v12 = vmul.f32 %v775_v39, %v150_v60 }
  0x78   :  { %680 = vst [vmem:[%s1614_s8 + $0x198] sm:$0xff] %v616_v62  ;;  %v486_v10 = vadd.f32 %v422_v0, %v288_v63  ;;  %v289_v11 = vadd.f32 %v812_v59, %v219_v2  ;;  %v424_v13 = vmul.f32 %v786_v44, %v354_v61  ;;  %v555_v17 = vadd.f32 %v823_v1, %v485_v7 }
  0x79   :  { %681 = vst [vmem:[%s1614_s8 + $0x1a0] sm:$0xff] %v617_v5  ;;  %v618_v16 = vmax.f32 %v554_v6, 0.0  ;;  %v221_v18 = vmul.f32 %v775_v39, %v151_v3  ;;  %v425_v19 = vmul.f32 %v786_v44, %v355_v4  ;;  %v290_v22 = vadd.f32 %v812_v59, %v220_v12 }
  0x7a   :  { %v556_v20 = vadd.f32 %v823_v1, %v486_v10  ;;  %v487_v21 = vadd.f32 %v423_v8, %v289_v11  ;;  %v222_v23 = vmul.f32 %v775_v39, %v152_v9  ;;  %v619_v26 = vmax.f32 %v555_v17, 0.0 }
  0x7b   :  { %682 = vst [vmem:[%s1614_s8 + $0x1a8] sm:$0xff] %v618_v16  ;;  %v291_v27 = vadd.f32 %v812_v59, %v221_v18  ;;  %v426_v28 = vmul.f32 %v786_v44, %v356_v14  ;;  %v223_v29 = vmul.f32 %v775_v39, %v153_v15  ;;  %v488_v33 = vadd.f32 %v424_v13, %v290_v22 }
  0x7c   :  { %v620_v31 = vmax.f32 %v556_v20, 0.0  ;;  %v557_v32 = vadd.f32 %v823_v1, %v487_v21  ;;  %v292_v34 = vadd.f32 %v812_v59, %v222_v23  ;;  %683 = vst [vmem:[%s1614_s8 + $0x1b0] sm:$0xff] %v619_v26  ;;  %v427_v38 = vmul.f32 %v786_v44, %v357_v24 }
  0x7d   :  { %v489_v36 = vadd.f32 %v425_v19, %v291_v27  ;;  %v293_v37 = vadd.f32 %v812_v59, %v223_v29  ;;  %v224_v40 = vmul.f32 %v775_v39, %v154_v25  ;;  %v558_v45 = vadd.f32 %v823_v1, %v488_v33 }
  0x7e   :  { %684 = vst [vmem:[%s1614_s8 + $0x1b8] sm:$0xff] %v620_v31  ;;  %v621_v43 = vmax.f32 %v557_v32, 0.0  ;;  %v490_v46 = vadd.f32 %v426_v28, %v292_v34  ;;  %v428_v47 = vmul.f32 %v786_v44, %v358_v30  ;;  %v225_v51 = vmul.f32 %v775_v39, %v155_v35 }
  0x7f   :  { %v559_v48 = vadd.f32 %v823_v1, %v489_v36  ;;  %v491_v49 = vadd.f32 %v427_v38, %v293_v37  ;;  %v294_v50 = vadd.f32 %v812_v59, %v224_v40  ;;  %v622_v53 = vmax.f32 %v558_v45, 0.0 }
  0x80   :  { %685 = vst [vmem:[%s1614_s8 + $0x1c0] sm:$0xff] %v621_v43  ;;  %v560_v54 = vadd.f32 %v823_v1, %v490_v46  ;;  %v429_v55 = vmul.f32 %v786_v44, %v359_v41  ;;  %v226_v56 = vmul.f32 %v775_v39, %v156_v42  ;;  %v295_v61 = vadd.f32 %v812_v59, %v225_v51 }
  0x81   :  { %v623_v57 = vmax.f32 %v559_v48, 0.0  ;;  %v561_v58 = vadd.f32 %v823_v1, %v491_v49  ;;  %v492_v60 = vadd.f32 %v428_v47, %v294_v50  ;;  %686 = vst [vmem:[%s1614_s8 + $0x1c8] sm:$0xff] %v622_v53  ;;  %v430_v0 = vmul.f32 %v786_v44, %v360_v52 }
  0x82   :  { %v624_v62 = vmax.f32 %v560_v54, 0.0  ;;  %v296_v63 = vadd.f32 %v812_v59, %v226_v56  ;;  %v493_v3 = vadd.f32 %v429_v55, %v295_v61 }
  0x83   :  { %687 = vst [vmem:[%s1614_s8 + $0x1d0] sm:$0xff] %v623_v57  ;;  %v625_v39 = vmax.f32 %v561_v58, 0.0  ;;  %v562_v2 = vadd.f32 %v823_v1, %v492_v60 }
  0x84   :  { %688 = vst [vmem:[%s1614_s8 + $0x1d8] sm:$0xff] %v624_v62  ;;  %v494_v4 = vadd.f32 %v430_v0, %v296_v63  ;;  %v563_v44 = vadd.f32 %v823_v1, %v493_v3 }
  0x85   :  { %689 = vst [vmem:[%s1614_s8 + $0x1e0] sm:$0xff] %v625_v39  ;;  %v626_v59 = vmax.f32 %v562_v2, 0.0 }
  0x86   :  { %v564_v5 = vadd.f32 %v823_v1, %v494_v4  ;;  %v627_v6 = vmax.f32 %v563_v44, 0.0 }
  0x87   :  { %690 = vst [vmem:[%s1614_s8 + $0x1e8] sm:$0xff] %v626_v59 }
  0x88   :  { %v628_v7 = vmax.f32 %v564_v5, 0.0  ;;  %691 = vst [vmem:[%s1614_s8 + $0x1f0] sm:$0xff] %v627_v6 }
  0x8a   :  { %692 = vst [vmem:[%s1614_s8 + $0x1f8] sm:$0xff] %v628_v7 }

// kernel: residual_layer_forward.3
= control target key start
LH: loop header
LB: loop body
LE: loop exit
PB: predicated region body
PF: predicated region fallthrough
CT: control target
= control target key end

     0   :  { %s3706_s27 = smov 0   ;;  %s3708_s28 = smov 0   ;;  %s4577_s0 = inlined_call_operand.vmem [shape: f32[2,16,16,128], index: 0, kind: input, shape index: {}, may-alias: {0,1,2}]   ;;  %s4578_s1 = inlined_call_operand.vmem [shape: f32[2,16,16,128], index: 1, kind: input, shape index: {}, may-alias: {0,1,2}]   ;;  %s4579_s2 = inlined_call_operand.vmem [shape: f32[2,16,16,128], index: 2, kind: input, shape index: {}, may-alias: {0,1,2}]   ;;  %s4580_s3 = inlined_call_operand.vmem [shape: f32[3,3,128,128], index: 3, kind: input, shape index: {}]   ;;  %s4581_s4 = inlined_call_operand.vmem [shape: f32[128,128], index: 4, kind: input, shape index: {}]   ;;  %s4582_s5 = inlined_call_operand.vmem [shape: f32[2,16,16,128], index: 5, kind: output, shape index: {0}]   ;;  %s4583_s6 = inlined_call_operand.vmem [shape: f32[2,2,128], index: 6, kind: output, shape index: {1}]   ;;  %s4584_s7 = inlined_call_operand.vmem [shape: f32[2,16,16,128], index: 7, kind: output, shape index: {2}]   ;;  %s4585_s8 = inlined_call_operand.vmem [shape: f32[2,2,128], index: 8, kind: output, shape index: {3}]  }
   0x1   :  { %4586 = sst [smem:[#allocation4_spill]] %s4577_s0  ;;  %s3710_s29 = smov 0  }
   0x2   :  { %4587 = sst [smem:[#allocation5_spill]] %s4583_s6  ;;  %s3712_s30 = smov 0  }
   0x3   :  { %4588 = sst [smem:[#allocation6_spill]] %s4584_s7  ;;  %s3714_s9 = smov 0  }
   0x4   :  { %4589 = sst [smem:[#allocation7_spill]] %s4585_s8 }
   0x5 LB: > { %s28_s10 = sadd.s32 1, %s3650_s29  ;;  %s31_s11 = sadd.s32 1, %s3654_s30  ;;  %s3658_s9 = sphi %s3714_s9, %s19_s9   ;;  %s3654_s30 = sphi %s3712_s30, %s4600_s30   ;;  %s3650_s29 = sphi %s3710_s29, %s4599_s29   ;;  %s3646_s28 = sphi %s3708_s28, %s4598_s28   ;;  %s3642_s27 = sphi %s3706_s27, %s4597_s27  }
   0x6   : > { %p29_p0 = scmp.ge.s32.totalorder %s28_s10, 4  ;;  %p2347_p1 = scmp.ge.s32.totalorder %s3658_s9, 1 }
   0x7   : > { %p357_p2 = scmp.lt.s32.totalorder %s3658_s9, 9 }
   0x8   : > { %s4602_s10 = smov (%p29_p0, %s28_s10), 0  ;;  %s4604_s11 = smov (!%p29_p0, %s31_s11), %s3654_s30 }
   0x9   : > { %p358_p3 = pnand %p2347_p1, %p357_p2  ;;  %p33_p4 = scmp.ge.s32.totalorder %s4604_s11, 2 }
   0xa   : > { %v2379_v0 = vld [vmem:[%s4580_s3 + $0x80] sm:$0xff] (!%p358_p3)  ;;  %v2380_v1 = vld [vmem:[%s4580_s3 + $0x88] sm:$0xff] (!%p358_p3)  ;;  %s3750_s18 = sshll.u32 (!%p358_p3), %s3642_s27, 2  ;;  %p446_p5 = scmp.lt.s32.totalorder (!%p358_p3), %s3646_s28, 1  ;;  %v2381_v5 = vld [vmem:[%s4580_s3 + $0x90] sm:$0xff] (!%p358_p3)  ;;  %v3660_v7 = vmov (!%p358_p3), 0.0  }
   0xb   : > { %s4606_s11 = smov (%p33_p4, %s4604_s11), 0  ;;  %361 = sbr.rel (%p358_p3) target bundleno = 723 (0x2d3), region = 40 }
   0xc   : > { %4590 = sst [smem:[#allocation3_spill]] %s4606_s11  ;;  %v2427_v2 = vld [vmem:[%s4580_s3 + $0x200] sm:$0xff] (!%p358_p3)  ;;  %v3195_v3 = vpack.c.bf16 (!%p358_p3), %v2380_v1, %v2379_v0  ;;  %v2428_v4 = vld [vmem:[%s4580_s3 + $0x208] sm:$0xff] (!%p358_p3)  ;;  %v2382_v6 = vld [vmem:[%s4580_s3 + $0x98] sm:$0xff] (!%p358_p3)  ;;  %p448_p6 = scmp.lt.s32.totalorder (!%p358_p3), %s3750_s18, 15  ;;  %520 = vst [vmem:[#allocation2] sm:$0xff] (!%p358_p3), %v3660_v7 }
   0xd   : > { %s3764_s25 = sadd.s32 (!%p358_p3), 4294967295, %s3750_s18  ;;  %521 = vst [vmem:[#allocation2 + $0x8] sm:$0xff] (!%p358_p3), %v3660_v7  ;;  %522 = vst [vmem:[#allocation2 + $0x10] sm:$0x3] (!%p358_p3), %v3660_v7  ;;  %v3323_v8 = vpack.c.bf16 (!%p358_p3), %v2428_v4, %v2427_v2  ;;  %v3199_v9 = vpack.c.bf16 (!%p358_p3), %v2382_v6, %v2381_v5  ;;  %v2429_v10 = vld [vmem:[%s4580_s3 + $0x210] sm:$0xff] (!%p358_p3)  ;;  %v2430_v11 = vld [vmem:[%s4580_s3 + $0x218] sm:$0xff] (!%p358_p3) }
   0xe   : > { %523 = vst [vmem:[#allocation2 + $0x18] sm:$0xff] (!%p358_p3), %v3660_v7  ;;  %524 = vst [vmem:[#allocation2 + $0x20] sm:$0xff] (!%p358_p3), %v3660_v7  ;;  %v2383_v12 = vld [vmem:[%s4580_s3 + $0xa0] sm:$0xff] (!%p358_p3)  ;;  %3196 = vmatprep.subr.bf16.mxu1 (!%p358_p3), %v3195_v3  ;;  %v3327_v13 = vpack.c.bf16 (!%p358_p3), %v2430_v11, %v2429_v10  ;;  %v2384_v14 = vld [vmem:[%s4580_s3 + $0xa8] sm:$0xff] (!%p358_p3)  ;;  %p458_p7 = scmp.gt.s32.totalorder (!%p358_p3), %s3764_s25, 0  ;;  %p2354_p8 = scmp.lt.s32.totalorder (!%p358_p3), %s3764_s25, 15 }
   0xf   : > { %525 = vst [vmem:[#allocation2 + $0x28] sm:$0x3] (!%p358_p3), %v3660_v7  ;;  %526 = vst [vmem:[#allocation2 + $0x30] sm:$0xff] (!%p358_p3), %v3660_v7  ;;  %v2431_v15 = vld [vmem:[%s4580_s3 + $0x220] sm:$0xff] (!%p358_p3)  ;;  %v2432_v16 = vld [vmem:[%s4580_s3 + $0x228] sm:$0xff] (!%p358_p3)  ;;  %3324 = vmatprep.subr.bf16.mxu0 (!%p358_p3), %v3323_v8  ;;  %3198 = vmatpush3.bf16.msra.mxu1 (!%p358_p3), %v3195_v3  ;;  %v3203_v17 = vpack.c.bf16 (!%p358_p3), %v2384_v14, %v2383_v12  ;;  %s4591_s6 = sld [smem:[#allocation5_spill]] (!%p358_p3) }
  0x10   : > { %527 = vst [vmem:[#allocation2 + $0x38] sm:$0xff] (!%p358_p3), %v3660_v7  ;;  %528 = vst [vmem:[#allocation2 + $0x40] sm:$0x3] (!%p358_p3), %v3660_v7  ;;  %3326 = vmatpush3.bf16.msra.mxu0 (!%p358_p3), %v3323_v8  ;;  %3200 = vmatprep.subr.bf16.mxu1 (!%p358_p3), %v3199_v9  ;;  %v3331_v18 = vpack.c.bf16 (!%p358_p3), %v2432_v16, %v2431_v15  ;;  %v2385_v19 = vld [vmem:[%s4580_s3 + $0xb0] sm:$0xff] (!%p358_p3)  ;;  %v2386_v20 = vld [vmem:[%s4580_s3 + $0xb8] sm:$0xff] (!%p358_p3)  ;;  %s4592_s0 = sld [smem:[#allocation4_spill]] (!%p358_p3) }
  0x11   : > { %529 = vst [vmem:[#allocation2 + $0x48] sm:$0xff] (!%p358_p3), %v3660_v7  ;;  %530 = vst [vmem:[#allocation2 + $0x50] sm:$0xff] (!%p358_p3), %v3660_v7  ;;  %3328 = vmatprep.subr.bf16.mxu0 (!%p358_p3), %v3327_v13  ;;  %v2433_v21 = vld [vmem:[%s4580_s3 + $0x230] sm:$0xff] (!%p358_p3)  ;;  %v2434_v22 = vld [vmem:[%s4580_s3 + $0x238] sm:$0xff] (!%p358_p3)  ;;  %s4593_s7 = sld [smem:[#allocation6_spill]] (!%p358_p3)  ;;  %v3207_v23 = vpack.c.bf16 (!%p358_p3), %v2386_v20, %v2385_v19  ;;  %s4594_s8 = sld [smem:[#allocation7_spill]] (!%p358_p3) }
  0x12   : > { %531 = vst [vmem:[#allocation2 + $0x58] sm:$0x3] %v3660_v7  ;;  %532 = vst [vmem:[#allocation2 + $0x60] sm:$0xff] %v3660_v7  ;;  %s4608_s28 = smov (!%p446_p5, %s3646_s28), 1  ;;  %v3335_v24 = vpack.c.bf16 %v2434_v22, %v2433_v21  ;;  %v2387_v25 = vld [vmem:[%s4580_s3 + $0xc0] sm:$0xff]  ;;  %v2388_v26 = vld [vmem:[%s4580_s3 + $0xc8] sm:$0xff] }
  0x13   : > { %533 = vst [vmem:[#allocation2 + $0x68] sm:$0xff] %v3660_v7  ;;  %534 = vst [vmem:[#allocation2 + $0x70] sm:$0x3] %v3660_v7  ;;  %s449_s24 = scalar_select %p448_p6, %s3750_s18, 15  ;;  %3202 = vmatpush3.bf16.msra.mxu1 %v3199_v9  ;;  %v2435_v27 = vld [vmem:[%s4580_s3 + $0x240] sm:$0xff]  ;;  %v2436_v28 = vld [vmem:[%s4580_s3 + $0x248] sm:$0xff]  ;;  %v3211_v31 = vpack.c.bf16 %v2388_v26, %v2387_v25 }
  0x14   : > { %535 = vst [vmem:[#allocation2 + $0x78] sm:$0xff] %v3660_v7  ;;  %536 = vst [vmem:[#allocation2 + $0x80] sm:$0xff] %v3660_v7  ;;  %s3793_s26 = sshll.u32 %s4608_s28, 5  ;;  %s2373_s19 = sshll.u32 %s4608_s28, 1  ;;  %3330 = vmatpush3.bf16.msra.mxu0 %v3327_v13  ;;  %3204 = vmatprep.subr.bf16.mxu1 %v3203_v17  ;;  %v3339_v32 = vpack.c.bf16 %v2436_v28, %v2435_v27  ;;  %v2389_v33 = vld [vmem:[%s4580_s3 + $0xd0] sm:$0xff]  ;;  %v2390_v34 = vld [vmem:[%s4580_s3 + $0xd8] sm:$0xff] }
  0x15   : > { %537 = vst [vmem:[#allocation2 + $0x88] sm:$0x3] %v3660_v7  ;;  %s2349_s12 = sshll.u32 %s449_s24, 1  ;;  %s3816_s14 = scalar_lea.vmem %s4591_s6, %s2373_s19  ;;  %3332 = vmatprep.subr.bf16.mxu0 %v3331_v18  ;;  %v2437_v35 = vld [vmem:[%s4580_s3 + $0x250] sm:$0xff]  ;;  %v2438_v36 = vld [vmem:[%s4580_s3 + $0x258] sm:$0xff]  ;;  %v3215_v38 = vpack.c.bf16 %v2390_v34, %v2389_v33  ;;  %v2391_v42 = vld [vmem:[%s4580_s3 + $0xe0] sm:$0xff] }
  0x16   : > { %s452_s17 = sadd.s32 %s3793_s26, %s2349_s12  ;;  %p555_p9 = scmp.gt.s32.totalorder %s3642_s27, 0  ;;  %v3343_v41 = vpack.c.bf16 %v2438_v36, %v2437_v35  ;;  %v2392_v43 = vld [vmem:[%s4580_s3 + $0xe8] sm:$0xff]  ;;  %v2439_v44 = vld [vmem:[%s4580_s3 + $0x260] sm:$0xff]  ;;  %vm620_vm0 = vcmask 1046528   ;;  %v2393_v56 = vld [vmem:[%s4580_s3 + $0xf0] sm:$0xff]  ;;  %vm876_vm1 = vcmask 1045504  }
  0x17   : > { %s3811_s24 = sshll.u32 %s452_s17, 3  ;;  %3206 = vmatpush3.bf16.msra.mxu1 %v3203_v17  ;;  %v2440_v47 = vld [vmem:[%s4580_s3 + $0x268] sm:$0xff]  ;;  %v3219_v53 = vpack.c.bf16 %v2392_v43, %v2391_v42  ;;  %v2394_v57 = vld [vmem:[%s4580_s3 + $0xf8] sm:$0xff]  ;;  %v2441_v60 = vld [vmem:[%s4580_s3 + $0x270] sm:$0xff]  ;;  %s474_s6 = sadd.s32 4, %s3750_s18  ;;  %vm1891_vm2 = vcmask 1040384  }
  0x18   : > { %s3822_s15 = scalar_lea.vmem %s4592_s0, %s3811_s24  ;;  %s3828_s17 = scalar_lea.vmem %s4593_s7, %s3811_s24  ;;  %3334 = vmatpush3.bf16.msra.mxu0 %v3331_v18  ;;  %3208 = vmatprep.subr.bf16.mxu1 %v3207_v23  ;;  %v3347_v55 = vpack.c.bf16 %v2440_v47, %v2439_v44  ;;  %v2442_v61 = vld [vmem:[%s4580_s3 + $0x278] sm:$0xff]  ;;  %v3223_v0 = vpack.c.bf16 %v2394_v57, %v2393_v56  ;;  %v592_v1 = vld [vmem:[%s4580_s3] sm:$0xff]  ;;  %v593_v2 = vld [vmem:[%s4580_s3 + $0x8] sm:$0xff] }
  0x19   : > { %s459_s11 = scalar_select %p458_p7, %s3764_s25, 0  ;;  %v538_v29 = vld [vmem:[%s3822_s15] sm:$0xff]  ;;  %v539_v30 = vld [vmem:[%s3822_s15 + $0x8] sm:$0xff]  ;;  %3336 = vmatprep.subr.bf16.mxu0 %v3335_v24  ;;  %v540_v52 = vld [vmem:[%s3822_s15 + $0x10] sm:$0xff]  ;;  %v3351_v4 = vpack.c.bf16 %v2442_v61, %v2441_v60  ;;  %v3227_v14 = vpack.c.bf16 %v593_v2, %v592_v1 }
  0x1a   : > { %s3845_s0 = scalar_lea.vmem %s4594_s8, %s2373_s19  ;;  %547 = vst [vmem:[#allocation2 + $0x19] sm:$0xff] %v538_v29  ;;  %548 = vst [vmem:[#allocation2 + $0x21] sm:$0xff] %v539_v30  ;;  %v541_v54 = vld [vmem:[%s3822_s15 + $0x18] sm:$0xff]  ;;  %v542_v59 = vld [vmem:[%s3822_s15 + $0x20] sm:$0xff]  ;;  %p3936_p10 = scmp.lt.s32.totalorder %s474_s6, 15 }
  0x1b   : > { %s4610_s11 = smov (!%p2354_p8, %s459_s11), 15  ;;  %3210 = vmatpush3.bf16.msra.mxu1 %v3207_v23  ;;  %549 = vst [vmem:[#allocation2 + $0x31] sm:$0xff] %v540_v52  ;;  %550 = vst [vmem:[#allocation2 + $0x39] sm:$0xff] %v541_v54  ;;  %v543_v62 = vld [vmem:[%s3822_s15 + $0x28] sm:$0xff]  ;;  %v544_v63 = vld [vmem:[%s3822_s15 + $0x30] sm:$0xff]  ;;  %p564_p11 = scmp.lt.s32.totalorder %s3642_s27, 3 }
  0x1c   : > { %s556_s21 = scalar_select %p555_p9, 1.0, 0.0  ;;  %3338 = vmatpush3.bf16.msra.mxu0 %v3335_v24  ;;  %3212 = vmatprep.subr.bf16.mxu1 %v3211_v31  ;;  %551 = vst [vmem:[#allocation2 + $0x49] sm:$0xff] %v542_v59  ;;  %552 = vst [vmem:[#allocation2 + $0x51] sm:$0xff] %v543_v62  ;;  %v545_v3 = vld [vmem:[%s3822_s15 + $0x38] sm:$0xff]  ;;  %v2443_v5 = vld [vmem:[%s4580_s3 + $0x280] sm:$0xff] }
  0x1d   : > { %s2359_s22 = sshll.u32 %s4610_s11, 1  ;;  %3340 = vmatprep.subr.bf16.mxu0 %v3339_v32  ;;  %553 = vst [vmem:[#allocation2 + $0x61] sm:$0xff] %v544_v63  ;;  %v2444_v6 = vld [vmem:[%s4580_s3 + $0x288] sm:$0xff]  ;;  %554 = vst [vmem:[#allocation2 + $0x69] sm:$0xff] %v545_v3  ;;  %v594_v20 = vld [vmem:[%s4580_s3 + $0x10] sm:$0xff]  ;;  %s4612_s6 = smov (!%p3936_p10, %s474_s6), 15 }
  0x1e   : > { %s466_s25 = sadd.s32 %s2359_s22, %s3793_s26  ;;  %v559_v37 = vstv %s556_s21  ;;  %v3355_v19 = vpack.c.bf16 %v2444_v6, %v2443_v5  ;;  %v595_v21 = vld [vmem:[%s4580_s3 + $0x18] sm:$0xff]  ;;  %v2445_v23 = vld [vmem:[%s4580_s3 + $0x290] sm:$0xff]  ;;  %v596_v34 = vld [vmem:[%s4580_s3 + $0x20] sm:$0xff]  ;;  %s4614_s6 = smov (!%p3936_p10, %s4612_s6), 15 }
  0x1f   : > { %s2361_s11 = sshll.u32 %s466_s25, 3  ;;  %3214 = vmatpush3.bf16.msra.mxu1 %v3211_v31  ;;  %v2446_v24 = vld [vmem:[%s4580_s3 + $0x298] sm:$0xff]  ;;  %v3231_v29 = vpack.c.bf16 %v595_v21, %v594_v20  ;;  %v597_v35 = vld [vmem:[%s4580_s3 + $0x28] sm:$0xff]  ;;  %s4030_s8 = sshll.u32 %s4614_s6, 1  ;;  %v600_v63 = vld [vmem:[%s4580_s3 + $0x40] sm:$0xff] }
  0x20   : > { %s468_s19 = scalar_lea.vmem %s4578_s1, %s2361_s11  ;;  %3342 = vmatpush3.bf16.msra.mxu0 %v3339_v32  ;;  %3216 = vmatprep.subr.bf16.mxu1 %v3215_v38  ;;  %v3359_v33 = vpack.c.bf16 %v2446_v24, %v2445_v23  ;;  %v3235_v42 = vpack.c.bf16 %v597_v35, %v596_v34  ;;  %v2450_v54 = vld [vmem:[%s4580_s3 + $0x2b8] sm:$0xff]  ;;  %s483_s16 = sadd.s32 %s4030_s8, %s3793_s26  ;;  %v2451_v1 = vld [vmem:[%s4580_s3 + $0x2c0] sm:$0xff]  ;;  %v2452_v2 = vld [vmem:[%s4580_s3 + $0x2c8] sm:$0xff] }
  0x21   : > { %v557_v39 = vld [vmem:[%s468_s19] sm:$0xff]  ;;  %v558_v40 = vld [vmem:[%s468_s19 + $0x8] sm:$0xff]  ;;  %v3883_v48 = vld [vmem:[#allocation2 + $0x18] sm:$0xff]  ;;  %3344 = vmatprep.subr.bf16.mxu0 %v3343_v41  ;;  %s4068_s26 = scalar_select %p564_p11, 1.0, 0.0 }
  0x22   : > { %v560_v45 = vmul.f32 %v559_v37, %v557_v39  ;;  %v561_v46 = vmul.f32 %v559_v37, %v558_v40  ;;  %v3885_v49 = vld [vmem:[#allocation2 + $0x20] sm:$0xff]  ;;  %v626_v50 = vrot.slane %v3883_v48, 1  ;;  %v3926_v7 = vld [vmem:[#allocation2 + $0x28] sm:$0x3]  ;;  %v3944_v16 = vld [vmem:[#allocation2 + $0x30] sm:$0xff]  ;;  %s2368_s22 = sshll.u32 %s483_s16, 3 }
  0x23   : > { %v627_v51 = vrot.slane %v3885_v49, 1  ;;  %3218 = vmatpush3.bf16.msra.mxu1 %v3215_v38  ;;  %v629_v15 = vrot.slane %v3926_v7, 1  ;;  %v3946_v17 = vld [vmem:[#allocation2 + $0x38] sm:$0xff]  ;;  %v3955_v22 = vld [vmem:[#allocation2 + $0x40] sm:$0x3]  ;;  %v631_v26 = vrot.slane %v3944_v16, 1  ;;  %s485_s16 = scalar_lea.vmem %s4579_s2, %s2368_s22  ;;  %v568_v21 = vstv %s4068_s26  ;;  %s4470_s26 = scalar_lea.vmem %s4582_s5, %s3811_s24 }
  0x24   : > { %562 = vst [vmem:[#allocation2 + $0x1] sm:$0xff] %v560_v45  ;;  %563 = vst [vmem:[#allocation2 + $0x9] sm:$0xff] %v561_v46  ;;  %3346 = vmatpush3.bf16.msra.mxu0 %v3343_v41  ;;  %3220 = vmatprep.subr.bf16.mxu1 %v3219_v53  ;;  %v632_v27 = vrot.slane %v3946_v17, 1  ;;  %v634_v30 = vrot.slane %v3955_v22, 1  ;;  %v3978_v31 = vld [vmem:[#allocation2 + $0x48] sm:$0xff]  ;;  %v3980_v32 = vld [vmem:[#allocation2 + $0x50] sm:$0xff] }
  0x25   : > { %v3900_v58 = vsel %vm620_vm0, %v626_v50, %v627_v51  ;;  %3348 = vmatprep.subr.bf16.mxu0 %v3347_v55  ;;  %v3975_v28 = vsel %vm620_vm0, %v627_v51, %v629_v15  ;;  %v3988_v36 = vld [vmem:[#allocation2 + $0x58] sm:$0x3]  ;;  %v2447_v37 = vld [vmem:[%s4580_s3 + $0x2a0] sm:$0xff]  ;;  %v2448_v38 = vld [vmem:[%s4580_s3 + $0x2a8] sm:$0xff]  ;;  %v636_v40 = vrot.slane %v3978_v31, 1  ;;  %v637_v41 = vrot.slane %v3980_v32, 1 }
  0x26   : > { %2963 = vmatprep.mubr.f32.mxu0 %v3900_v58  ;;  %v4001_v39 = vsel %vm620_vm0, %v631_v26, %v632_v27  ;;  %v4006_v43 = vsel %vm620_vm0, %v632_v27, %v634_v30  ;;  %v639_v44 = vrot.slane %v3988_v36, 1  ;;  %v4009_v45 = vld [vmem:[#allocation2 + $0x60] sm:$0xff]  ;;  %v4011_v46 = vld [vmem:[#allocation2 + $0x68] sm:$0xff]  ;;  %v3363_v47 = vpack.c.bf16 %v2448_v38, %v2447_v37  ;;  %v598_v50 = vld [vmem:[%s4580_s3 + $0x30] sm:$0xff]  ;;  %p2507_p12 = scmp.ne.s32.totalorder %s3642_s27, 0 }
  0x27   : > { %3222 = vmatpush3.bf16.msra.mxu1 %v3219_v53  ;;  %v599_v51 = vld [vmem:[%s4580_s3 + $0x38] sm:$0xff]  ;;  %v4020_v52 = vld [vmem:[#allocation2 + $0x70] sm:$0x3]  ;;  %v1168_v56 = vrot.slane %v4009_v45, 1  ;;  %v1169_v57 = vrot.slane %v4011_v46, 1  ;;  %v883_v5 = vrot.slane %v3885_v49, 2 }
  0x28   : > { %3350 = vmatpush3.bf16.msra.mxu0 %v3347_v55  ;;  %3224 = vmatprep.subr.bf16.mxu1 %v3223_v0  ;;  %v2449_v53 = vld [vmem:[%s4580_s3 + $0x2b0] sm:$0xff]  ;;  %v4034_v55 = vsel %vm620_vm0, %v636_v40, %v637_v41  ;;  %v3239_v59 = vpack.c.bf16 %v599_v51, %v598_v50  ;;  %v4040_v60 = vsel %vm620_vm0, %v637_v41, %v639_v44  ;;  %v1171_v61 = vrot.slane %v4020_v52, 1  ;;  %v604_v24 = vld [vmem:[%s4580_s3 + $0x60] sm:$0xff]  ;;  %v2456_v27 = vld [vmem:[%s4580_s3 + $0x2e8] sm:$0xff] }
  0x29   : > { %3352 = vmatprep.subr.bf16.mxu0 %v3351_v4  ;;  %v3367_v62 = vpack.c.bf16 %v2450_v54, %v2449_v53  ;;  %v4062_v3 = vsel %vm620_vm0, %v1168_v56, %v1169_v57  ;;  %v2453_v15 = vld [vmem:[%s4580_s3 + $0x2d0] sm:$0xff]  ;;  %v2455_v26 = vld [vmem:[%s4580_s3 + $0x2e0] sm:$0xff]  ;;  %v607_v40 = vld [vmem:[%s4580_s3 + $0x78] sm:$0xff]  ;;  %v885_v56 = vrot.slane %v3926_v7, 2 }
  0x2a   : > { %v3379_v37 = vpack.c.bf16 %v2456_v27, %v2455_v26  ;;  %v606_v38 = vld [vmem:[%s4580_s3 + $0x70] sm:$0xff]  ;;  %v2395_v50 = vld [vmem:[%s4580_s3 + $0x100] sm:$0xff]  ;;  %v2396_v51 = vld [vmem:[%s4580_s3 + $0x108] sm:$0xff] }
  0x2b   : > { %v3928_v8 = vld [vmem:[#allocation2] sm:$0xff]  ;;  %v3930_v9 = vld [vmem:[#allocation2 + $0x8] sm:$0xff]  ;;  %v3932_v10 = vld [vmem:[#allocation2 + $0x10] sm:$0x3]  ;;  %3226 = vmatpush3.bf16.msra.mxu1 %v3223_v0  ;;  %v3255_v44 = vpack.c.bf16 %v607_v40, %v606_v38  ;;  %v1308_v38 = vrot.slane %v4020_v52, 2 }
  0x2c   : > { %v621_v11 = vrot.slane %v3928_v8, 1  ;;  %v622_v12 = vrot.slane %v3930_v9, 1  ;;  %v624_v13 = vrot.slane %v3932_v10, 1  ;;  %3354 = vmatpush3.bf16.msra.mxu0 %v3351_v4  ;;  %3228 = vmatprep.subr.bf16.mxu1 %v3227_v14  ;;  %v601_v0 = vld [vmem:[%s4580_s3 + $0x48] sm:$0xff]  ;;  %v882_v4 = vrot.slane %v3883_v48, 2  ;;  %v2457_v41 = vld [vmem:[%s4580_s3 + $0x2f0] sm:$0xff] }
  0x2d   : > { %3356 = vmatprep.subr.bf16.mxu0 %v3355_v19  ;;  %v3243_v6 = vpack.c.bf16 %v601_v0, %v600_v63  ;;  %v2459_v53 = vld [vmem:[%s4580_s3 + $0x300] sm:$0xff]  ;;  %v2460_v54 = vld [vmem:[%s4580_s3 + $0x308] sm:$0xff]  ;;  %v2461_v63 = vld [vmem:[%s4580_s3 + $0x310] sm:$0xff]  ;;  %v887_v0 = vrot.slane %v3944_v16, 2 }
  0x2e   : > { %v623_v18 = vsel %vm620_vm0, %v621_v11, %v622_v12  ;;  %v625_v25 = vsel %vm620_vm0, %v622_v12, %v624_v13  ;;  %v4071_v11 = vsel %vm620_vm0, %v1169_v57, %v1171_v61  ;;  %v3371_v12 = vpack.c.bf16 %v2452_v2, %v2451_v1  ;;  %v602_v13 = vld [vmem:[%s4580_s3 + $0x50] sm:$0xff]  ;;  %v2462_v7 = vld [vmem:[%s4580_s3 + $0x318] sm:$0xff]  ;;  %v2468_v52 = vld [vmem:[%s4580_s3 + $0x348] sm:$0xff] }
  0x2f   : > { %2787 = vmatprep.mubr.f32.mxu1 %v623_v18  ;;  %2964 = vmatmul.mubr.f32.vlgmr.msra.gmra.mrb[0].mxu0 %v3975_v28  ;;  %v2454_v18 = vld [vmem:[%s4580_s3 + $0x2d8] sm:$0xff]  ;;  %v3259_v57 = vpack.c.bf16 %v2396_v51, %v2395_v50  ;;  %v2397_v61 = vld [vmem:[%s4580_s3 + $0x110] sm:$0xff]  ;;  %v888_v1 = vrot.slane %v3946_v17, 2  ;;  %v4154_v2 = vsel %vm876_vm1, %v883_v5, %v885_v56  ;;  %v878_v50 = vrot.slane %v3930_v9, 2 }
  0x30   : > { %2788 = vmatmul.mubr.f32.vlgmr.msra.gmra.mrb[0].mxu1 %v625_v25  ;;  %3358 = vmatpush3.bf16.msra.mxu0 %v3355_v19  ;;  %v4092_v19 = vsel %vm876_vm1, %v882_v4, %v883_v5  ;;  %v3375_v23 = vpack.c.bf16 %v2454_v18, %v2453_v15  ;;  %v605_v25 = vld [vmem:[%s4580_s3 + $0x68] sm:$0xff]  ;;  %v2463_v5 = vld [vmem:[%s4580_s3 + $0x320] sm:$0xff]  ;;  %v892_v18 = vrot.slane %v3978_v31, 2  ;;  %v2401_v26 = vld [vmem:[%s4580_s3 + $0x130] sm:$0xff] }
  0x31   : > { %3230 = vmatpush3.bf16.msra.mxu1 %v3227_v14  ;;  %3360 = vmatprep.subr.bf16.mxu0 %v3359_v33  ;;  %v603_v14 = vld [vmem:[%s4580_s3 + $0x58] sm:$0xff]  ;;  %v3251_v34 = vpack.c.bf16 %v605_v25, %v604_v24  ;;  %v4172_v15 = vsel %vm876_vm1, %v887_v0, %v888_v1  ;;  %v895_v24 = vrot.slane %v3988_v36, 2  ;;  %v2407_v0 = vld [vmem:[%s4580_s3 + $0x160] sm:$0xff] }
  0x32   : > { %3232 = vmatprep.subr.bf16.mxu1 %v3231_v29  ;;  %2790 = vmatprep.mubr.f32.mxu1 %v3900_v58  ;;  %v3247_v20 = vpack.c.bf16 %v603_v14, %v602_v13  ;;  %v2399_v13 = vld [vmem:[%s4580_s3 + $0x120] sm:$0xff]  ;;  %v2400_v14 = vld [vmem:[%s4580_s3 + $0x128] sm:$0xff]  ;;  %v2402_v27 = vld [vmem:[%s4580_s3 + $0x138] sm:$0xff] }
  0x33   : > { %2966 = vmatprep.mubr.f32.mxu0 %v4001_v39  ;;  %v2466_v36 = vld [vmem:[%s4580_s3 + $0x338] sm:$0xff] }
  0x34   : > { %2791 = vmatmul.mubr.f32.gmra.mrb[2].mxu1 %v3975_v28  ;;  %2967 = vmatmul.mubr.f32.gmra.mrb[2].mxu0 %v4006_v43 }
  0x35   : > { %3234 = vmatpush3.bf16.msra.mxu1 %v3231_v29  ;;  %3362 = vmatpush3.bf16.msra.mxu0 %v3359_v33  ;;  %v566_v29 = vld [vmem:[%s485_s16] sm:$0xff]  ;;  %v567_v33 = vld [vmem:[%s485_s16 + $0x8] sm:$0xff] }
  0x36   : > { %3236 = vmatprep.subr.bf16.mxu1 %v3235_v42  ;;  %3364 = vmatprep.subr.bf16.mxu0 %v3363_v47  ;;  %v569_v30 = vmul.f32 %v568_v21, %v566_v29  ;;  %v570_v35 = vmul.f32 %v568_v21, %v567_v33  ;;  %v3267_v21 = vpack.c.bf16 %v2400_v14, %v2399_v13  ;;  %v2465_v29 = vld [vmem:[%s4580_s3 + $0x330] sm:$0xff]  ;;  %v1305_v33 = vrot.slane %v4009_v45, 2 }
  0x37   : > { %2793 = vmatprep.mubr.f32.mxu1 %v4001_v39  ;;  %2969 = vmatprep.mubr.f32.mxu0 %v4034_v55  ;;  %v3399_v40 = vpack.c.bf16 %v2466_v36, %v2465_v29  ;;  %v2409_v14 = vld [vmem:[%s4580_s3 + $0x170] sm:$0xff]  ;;  %v880_v29 = vrot.slane %v3932_v10, 2  ;;  %v2478_v10 = vld [vmem:[%s4580_s3 + $0x398] sm:$0xff] }
  0x38   : > { %2794 = vmatmul.mubr.f32.gmra.mrb[4].mxu1 %v4006_v43  ;;  %2970 = vmatmul.mubr.f32.gmra.mrb[4].mxu0 %v4040_v60  ;;  %572 = vst [vmem:[#allocation2 + $0x79] sm:$0xff] %v569_v30  ;;  %573 = vst [vmem:[#allocation2 + $0x81] sm:$0xff] %v570_v35  ;;  %v3271_v35 = vpack.c.bf16 %v2402_v27, %v2401_v26  ;;  %v2475_v26 = vld [vmem:[%s4580_s3 + $0x380] sm:$0xff]  ;;  %v2476_v27 = vld [vmem:[%s4580_s3 + $0x388] sm:$0xff] }
  0x39   : > { %3238 = vmatpush3.bf16.msra.mxu1 %v3235_v42  ;;  %3366 = vmatpush3.bf16.msra.mxu0 %v3363_v47  ;;  %v2458_v42 = vld [vmem:[%s4580_s3 + $0x2f8] sm:$0xff] }
  0x3a   : > { %3240 = vmatprep.subr.bf16.mxu1 %v3239_v59  ;;  %3368 = vmatprep.subr.bf16.mxu0 %v3367_v62  ;;  %v3383_v47 = vpack.c.bf16 %v2458_v42, %v2457_v41  ;;  %v2403_v41 = vld [vmem:[%s4580_s3 + $0x140] sm:$0xff]  ;;  %v2404_v42 = vld [vmem:[%s4580_s3 + $0x148] sm:$0xff] }
  0x3b   : > { %2796 = vmatprep.mubr.f32.mxu1 %v4034_v55  ;;  %2972 = vmatprep.mubr.f32.mxu0 %v4062_v3 }
  0x3c   : > { %2797 = vmatmul.mubr.f32.gmra.mrb[6].mxu1 %v4040_v60  ;;  %2973 = vmatmul.mubr.f32.gmra.mrb[6].mxu0 %v4071_v11 }
  0x3d   : > { %3242 = vmatpush3.bf16.msra.mxu1 %v3239_v59  ;;  %3370 = vmatpush3.bf16.msra.mxu0 %v3367_v62  ;;  %v3387_v59 = vpack.c.bf16 %v2460_v54, %v2459_v53  ;;  %v2398_v62 = vld [vmem:[%s4580_s3 + $0x118] sm:$0xff]  ;;  %v3275_v53 = vpack.c.bf16 %v2404_v42, %v2403_v41 }
  0x3e   : > { %3244 = vmatprep.subr.bf16.mxu1 %v3243_v6  ;;  %3372 = vmatprep.subr.bf16.mxu0 %v3371_v12  ;;  %v3263_v4 = vpack.c.bf16 %v2398_v62, %v2397_v61  ;;  %v2470_v61 = vld [vmem:[%s4580_s3 + $0x358] sm:$0xff] }
  0x3f   : > { %2831 = vmatprep.mubr.f32.mxu1 %v3928_v8  ;;  %3007 = vmatprep.mubr.f32.mxu0 %v4092_v19 }
  0x41   : > { %3246 = vmatpush3.bf16.msra.mxu1 %v3243_v6  ;;  %3374 = vmatpush3.bf16.msra.mxu0 %v3371_v12  ;;  %v890_v6 = vrot.slane %v3955_v22, 2  ;;  %v3391_v12 = vpack.c.bf16 %v2462_v7, %v2461_v63  ;;  %v2464_v22 = vld [vmem:[%s4580_s3 + $0x328] sm:$0xff] }
  0x42   : > { %3248 = vmatprep.subr.bf16.mxu1 %v3247_v20  ;;  %3376 = vmatprep.subr.bf16.mxu0 %v3375_v23  ;;  %v3395_v25 = vpack.c.bf16 %v2464_v22, %v2463_v5  ;;  %v2410_v5 = vld [vmem:[%s4580_s3 + $0x178] sm:$0xff]  ;;  %v2473_v22 = vld [vmem:[%s4580_s3 + $0x370] sm:$0xff] }
  0x45   : > { %3250 = vmatpush3.bf16.msra.mxu1 %v3247_v20  ;;  %3378 = vmatpush3.bf16.msra.mxu0 %v3375_v23  ;;  %v893_v20 = vrot.slane %v3980_v32, 2  ;;  %v4177_v23 = vsel %vm876_vm1, %v888_v1, %v890_v6  ;;  %v2408_v1 = vld [vmem:[%s4580_s3 + $0x168] sm:$0xff] }
  0x46   : > { %3252 = vmatprep.subr.bf16.mxu1 %v3251_v34  ;;  %3380 = vmatprep.subr.bf16.mxu0 %v3379_v37  ;;  %v2472_v6 = vld [vmem:[%s4580_s3 + $0x368] sm:$0xff] }
  0x47   : > { %v4197_v30 = vsel %vm876_vm1, %v892_v18, %v893_v20  ;;  %v2474_v18 = vld [vmem:[%s4580_s3 + $0x378] sm:$0xff] }
  0x49   : > { %3254 = vmatpush3.bf16.msra.mxu1 %v3251_v34  ;;  %3382 = vmatpush3.bf16.msra.mxu0 %v3379_v37  ;;  %v1306_v34 = vrot.slane %v4011_v46, 2  ;;  %v4202_v37 = vsel %vm876_vm1, %v893_v20, %v895_v24  ;;  %v3287_v20 = vpack.c.bf16 %v2410_v5, %v2409_v14  ;;  %v2411_v24 = vld [vmem:[%s4580_s3 + $0x180] sm:$0xff]  ;;  %v2485_v14 = vld [vmem:[%s4580_s3 + $0x3d0] sm:$0xff]  ;;  %v2486_v5 = vld [vmem:[%s4580_s3 + $0x3d8] sm:$0xff] }
  0x4a   : > { %3256 = vmatprep.subr.bf16.mxu1 %v3255_v44  ;;  %3384 = vmatprep.subr.bf16.mxu0 %v3383_v47 }
  0x4b   : > { %v4224_v51 = vsel %vm876_vm1, %v1305_v33, %v1306_v34  ;;  %v4227_v54 = vsel %vm876_vm1, %v1306_v34, %v1308_v38  ;;  %v3419_v33 = vpack.c.bf16 %v2476_v27, %v2475_v26  ;;  %v2413_v34 = vld [vmem:[%s4580_s3 + $0x190] sm:$0xff] }
  0x4c   : > { %v2477_v38 = vld [vmem:[%s4580_s3 + $0x390] sm:$0xff] }
  0x4d   : > { %3258 = vmatpush3.bf16.msra.mxu1 %v3255_v44  ;;  %3386 = vmatpush3.bf16.msra.mxu0 %v3383_v47  ;;  %v2467_v44 = vld [vmem:[%s4580_s3 + $0x340] sm:$0xff]  ;;  %v877_v47 = vrot.slane %v3928_v8, 2  ;;  %v2405_v8 = vld [vmem:[%s4580_s3 + $0x150] sm:$0xff]  ;;  %v3423_v42 = vpack.c.bf16 %v2478_v10, %v2477_v38  ;;  %v2492_v10 = vld [vmem:[%s4580_s3 + $0x408] sm:$0xff] }
  0x4e   : > { %3260 = vmatprep.subr.bf16.mxu1 %v3259_v57  ;;  %3388 = vmatprep.subr.bf16.mxu0 %v3387_v59  ;;  %v3403_v56 = vpack.c.bf16 %v2468_v52, %v2467_v44  ;;  %v2415_v44 = vld [vmem:[%s4580_s3 + $0x1a0] sm:$0xff]  ;;  %v2416_v52 = vld [vmem:[%s4580_s3 + $0x1a8] sm:$0xff] }
  0x4f   : > { %v879_v62 = vsel %vm876_vm1, %v877_v47, %v878_v50  ;;  %v2480_v47 = vld [vmem:[%s4580_s3 + $0x3a8] sm:$0xff]  ;;  %v2491_v38 = vld [vmem:[%s4580_s3 + $0x400] sm:$0xff] }
  0x50   : > { %2832 = vmatmul.mubr.f32.vlgmr.msra.gmra.mrb[0].mxu1 %v3930_v9  ;;  %3008 = vmatmul.mubr.f32.vlgmr.msra.gmra.mrb[0].mxu0 %v4154_v2  ;;  %v2479_v9 = vld [vmem:[%s4580_s3 + $0x3a0] sm:$0xff] }
  0x51   : > { %3262 = vmatpush3.bf16.msra.mxu1 %v3259_v57  ;;  %3390 = vmatpush3.bf16.msra.mxu0 %v3387_v59  ;;  %v2406_v57 = vld [vmem:[%s4580_s3 + $0x158] sm:$0xff]  ;;  %v2469_v59 = vld [vmem:[%s4580_s3 + $0x350] sm:$0xff] }
  0x52   : > { %3264 = vmatprep.subr.bf16.mxu1 %v3263_v4  ;;  %3392 = vmatprep.subr.bf16.mxu0 %v3391_v12  ;;  %v3279_v63 = vpack.c.bf16 %v2406_v57, %v2405_v8  ;;  %v3407_v7 = vpack.c.bf16 %v2470_v61, %v2469_v59  ;;  %v2418_v8 = vld [vmem:[%s4580_s3 + $0x1b8] sm:$0xff]  ;;  %v2481_v57 = vld [vmem:[%s4580_s3 + $0x3b0] sm:$0xff] }
  0x53   : > { %2834 = vmatprep.mubr.f32.mxu1 %v3883_v48  ;;  %3010 = vmatprep.mubr.f32.mxu0 %v4172_v15  ;;  %v2482_v59 = vld [vmem:[%s4580_s3 + $0x3b8] sm:$0xff] }
  0x54   : > { %2835 = vmatmul.mubr.f32.gmra.mrb[2].mxu1 %v3885_v49  ;;  %3011 = vmatmul.mubr.f32.gmra.mrb[2].mxu0 %v4177_v23 }
  0x55   : > { %3266 = vmatpush3.bf16.msra.mxu1 %v3263_v4  ;;  %3394 = vmatpush3.bf16.msra.mxu0 %v3391_v12  ;;  %v2471_v4 = vld [vmem:[%s4580_s3 + $0x360] sm:$0xff]  ;;  %v3283_v12 = vpack.c.bf16 %v2408_v1, %v2407_v0  ;;  %v4346_v0 = vld [vmem:[#allocation2 + $0x78] sm:$0xff] }
  0x56   : > { %3268 = vmatprep.subr.bf16.mxu1 %v3267_v21  ;;  %3396 = vmatprep.subr.bf16.mxu0 %v3395_v25  ;;  %v3411_v13 = vpack.c.bf16 %v2472_v6, %v2471_v4  ;;  %v4348_v4 = vld [vmem:[#allocation2 + $0x80] sm:$0xff] }
  0x57   : > { %2837 = vmatprep.mubr.f32.mxu1 %v3944_v16  ;;  %3013 = vmatprep.mubr.f32.mxu0 %v4197_v30 }
  0x58   : > { %2838 = vmatmul.mubr.f32.gmra.mrb[4].mxu1 %v3946_v17  ;;  %3014 = vmatmul.mubr.f32.gmra.mrb[4].mxu0 %v4202_v37 }
  0x59   : > { %3270 = vmatpush3.bf16.msra.mxu1 %v3267_v21  ;;  %3398 = vmatpush3.bf16.msra.mxu0 %v3395_v25  ;;  %v3415_v21 = vpack.c.bf16 %v2474_v18, %v2473_v22  ;;  %v2412_v25 = vld [vmem:[%s4580_s3 + $0x188] sm:$0xff]  ;;  %v3439_v18 = vpack.c.bf16 %v2486_v5, %v2485_v14 }
  0x5a   : > { %3272 = vmatprep.subr.bf16.mxu1 %v3271_v35  ;;  %3400 = vmatprep.subr.bf16.mxu0 %v3399_v40  ;;  %v3291_v36 = vpack.c.bf16 %v2412_v25, %v2411_v24  ;;  %v2487_v24 = vld [vmem:[%s4580_s3 + $0x3e0] sm:$0xff]  ;;  %v2488_v25 = vld [vmem:[%s4580_s3 + $0x3e8] sm:$0xff] }
  0x5b   : > { %2840 = vmatprep.mubr.f32.mxu1 %v3978_v31  ;;  %3016 = vmatprep.mubr.f32.mxu0 %v4224_v51  ;;  %v3443_v27 = vpack.c.bf16 %v2488_v25, %v2487_v24 }
  0x5c   : > { %2841 = vmatmul.mubr.f32.gmra.mrb[6].mxu1 %v3980_v32  ;;  %3017 = vmatmul.mubr.f32.gmra.mrb[6].mxu0 %v4227_v54 }
  0x5d   : > { %3274 = vmatpush3.bf16.msra.mxu1 %v3271_v35  ;;  %3402 = vmatpush3.bf16.msra.mxu0 %v3399_v40  ;;  %v2414_v35 = vld [vmem:[%s4580_s3 + $0x198] sm:$0xff]  ;;  %v881_v40 = vsel %vm876_vm1, %v878_v50, %v880_v29  ;;  %v3299_v50 = vpack.c.bf16 %v2416_v52, %v2415_v44  ;;  %v2495_v52 = vld [vmem:[%s4580_s3 + $0x420] sm:$0xff] }
  0x5e   : > { %3276 = vmatprep.subr.bf16.mxu1 %v3275_v53  ;;  %3404 = vmatprep.subr.bf16.mxu0 %v3403_v56  ;;  %v3295_v41 = vpack.c.bf16 %v2414_v35, %v2413_v34  ;;  %v2426_v29 = vld [vmem:[%s4580_s3 + $0x1f8] sm:$0xff] }
  0x5f   : > { %2875 = vmatprep.mubr.f32.mxu1 %v879_v62  ;;  %3051 = vmatprep.mubr.f32.mxu0 %v3944_v16  ;;  %v2419_v62 = vld [vmem:[%s4580_s3 + $0x1c0] sm:$0xff] }
  0x61   : > { %3278 = vmatpush3.bf16.msra.mxu1 %v3275_v53  ;;  %3406 = vmatpush3.bf16.msra.mxu0 %v3403_v56  ;;  %v3427_v53 = vpack.c.bf16 %v2480_v47, %v2479_v9  ;;  %v2417_v56 = vld [vmem:[%s4580_s3 + $0x1b0] sm:$0xff]  ;;  %v2496_v9 = vld [vmem:[%s4580_s3 + $0x428] sm:$0xff]  ;;  %v1575_v47 = vrot.slane %v4346_v0, 1 }
  0x62   : > { %3280 = vmatprep.subr.bf16.mxu1 %v3279_v63  ;;  %3408 = vmatprep.subr.bf16.mxu0 %v3407_v7  ;;  %v3303_v61 = vpack.c.bf16 %v2418_v8, %v2417_v56  ;;  %v2497_v56 = vld [vmem:[%s4580_s3 + $0x430] sm:$0xff] }
  0x65   : > { %3282 = vmatpush3.bf16.msra.mxu1 %v3279_v63  ;;  %3410 = vmatpush3.bf16.msra.mxu0 %v3407_v7  ;;  %v2420_v63 = vld [vmem:[%s4580_s3 + $0x1c8] sm:$0xff] }
  0x66   : > { %3284 = vmatprep.subr.bf16.mxu1 %v3283_v12  ;;  %3412 = vmatprep.subr.bf16.mxu0 %v3411_v13  ;;  %v2484_v7 = vld [vmem:[%s4580_s3 + $0x3c8] sm:$0xff]  ;;  %v3307_v1 = vpack.c.bf16 %v2420_v63, %v2419_v62  ;;  %v2502_v62 = vld [vmem:[%s4580_s3 + $0x458] sm:$0xff]  ;;  %v2503_v63 = vld [vmem:[%s4580_s3 + $0x460] sm:$0xff] }
  0x69   : > { %3286 = vmatpush3.bf16.msra.mxu1 %v3283_v12  ;;  %3414 = vmatpush3.bf16.msra.mxu0 %v3411_v13  ;;  %v2421_v12 = vld [vmem:[%s4580_s3 + $0x1d0] sm:$0xff]  ;;  %v2422_v13 = vld [vmem:[%s4580_s3 + $0x1d8] sm:$0xff] }
  0x6a   : > { %3288 = vmatprep.subr.bf16.mxu1 %v3287_v20  ;;  %3416 = vmatprep.subr.bf16.mxu0 %v3415_v21  ;;  %v3311_v22 = vpack.c.bf16 %v2422_v13, %v2421_v12  ;;  %v1713_v12 = vrot.slane %v4348_v4, 2 }
  0x6d   : > { %3290 = vmatpush3.bf16.msra.mxu1 %v3287_v20  ;;  %3418 = vmatpush3.bf16.msra.mxu0 %v3415_v21  ;;  %v2423_v20 = vld [vmem:[%s4580_s3 + $0x1e0] sm:$0xff]  ;;  %v2424_v21 = vld [vmem:[%s4580_s3 + $0x1e8] sm:$0xff] }
  0x6e   : > { %3292 = vmatprep.subr.bf16.mxu1 %v3291_v36  ;;  %3420 = vmatprep.subr.bf16.mxu0 %v3419_v33  ;;  %v3315_v26 = vpack.c.bf16 %v2424_v21, %v2423_v20 }
  0x70   : > { %2876 = vmatmul.mubr.f32.vlgmr.msra.gmra.mrb[0].mxu1 %v881_v40  ;;  %3052 = vmatmul.mubr.f32.vlgmr.msra.gmra.mrb[0].mxu0 %v3946_v17  ;;  %v3451_v40 = vpack.c.bf16 %v2492_v10, %v2491_v38 }
  0x71   : > { %3294 = vmatpush3.bf16.msra.mxu1 %v3291_v36  ;;  %3422 = vmatpush3.bf16.msra.mxu0 %v3419_v33  ;;  %v2489_v36 = vld [vmem:[%s4580_s3 + $0x3f0] sm:$0xff]  ;;  %v2490_v33 = vld [vmem:[%s4580_s3 + $0x3f8] sm:$0xff] }
  0x72   : > { %3296 = vmatprep.subr.bf16.mxu1 %v3295_v41  ;;  %3424 = vmatprep.subr.bf16.mxu0 %v3423_v42  ;;  %v3447_v35 = vpack.c.bf16 %v2490_v33, %v2489_v36 }
  0x73   : > { %2878 = vmatprep.mubr.f32.mxu1 %v4092_v19  ;;  %3054 = vmatprep.mubr.f32.mxu0 %v3978_v31  ;;  %v3431_v19 = vpack.c.bf16 %v2482_v59, %v2481_v57  ;;  %v2499_v59 = vld [vmem:[%s4580_s3 + $0x440] sm:$0xff] }
  0x74   : > { %2879 = vmatmul.mubr.f32.gmra.mrb[2].mxu1 %v4154_v2  ;;  %3055 = vmatmul.mubr.f32.gmra.mrb[2].mxu0 %v3980_v32  ;;  %v2483_v2 = vld [vmem:[%s4580_s3 + $0x3c0] sm:$0xff] }
  0x75   : > { %3298 = vmatpush3.bf16.msra.mxu1 %v3295_v41  ;;  %3426 = vmatpush3.bf16.msra.mxu0 %v3423_v42  ;;  %v3435_v6 = vpack.c.bf16 %v2484_v7, %v2483_v2  ;;  %v2493_v41 = vld [vmem:[%s4580_s3 + $0x410] sm:$0xff]  ;;  %v2494_v42 = vld [vmem:[%s4580_s3 + $0x418] sm:$0xff] }
  0x76   : > { %3300 = vmatprep.subr.bf16.mxu1 %v3299_v50  ;;  %3428 = vmatprep.subr.bf16.mxu0 %v3427_v53  ;;  %v3455_v44 = vpack.c.bf16 %v2494_v42, %v2493_v41  ;;  %v2505_v7 = vld [vmem:[%s4580_s3 + $0x470] sm:$0xff] }
  0x77   : > { %2881 = vmatprep.mubr.f32.mxu1 %v4172_v15  ;;  %3057 = vmatprep.mubr.f32.mxu0 %v4009_v45 }
  0x78   : > { %2882 = vmatmul.mubr.f32.gmra.mrb[4].mxu1 %v4177_v23  ;;  %3058 = vmatmul.mubr.f32.gmra.mrb[4].mxu0 %v4011_v46 }
  0x79   : > { %3302 = vmatpush3.bf16.msra.mxu1 %v3299_v50  ;;  %3430 = vmatpush3.bf16.msra.mxu0 %v3427_v53  ;;  %v1576_v50 = vrot.slane %v4348_v4, 1  ;;  %v591_v53 = vld [vmem:[#allocation2 + $0x88] sm:$0x3] }
  0x7a   : > { %3304 = vmatprep.subr.bf16.mxu1 %v3303_v61  ;;  %3432 = vmatprep.subr.bf16.mxu0 %v3431_v19  ;;  %v1578_v8 = vrot.slane %v591_v53, 1  ;;  %v1715_v13 = vrot.slane %v591_v53, 2 }
  0x7b   : > { %2884 = vmatprep.mubr.f32.mxu1 %v4197_v30  ;;  %3060 = vmatprep.mubr.f32.mxu0 %v4346_v0 }
  0x7c   : > { %2885 = vmatmul.mubr.f32.gmra.mrb[6].mxu1 %v4202_v37  ;;  %3061 = vmatmul.mubr.f32.gmra.mrb[6].mxu0 %v4348_v4  ;;  %v1716_v5 = vsel %vm876_vm1, %v1713_v12, %v1715_v13 }
  0x7d   : > { %3306 = vmatpush3.bf16.msra.mxu1 %v3303_v61  ;;  %3434 = vmatpush3.bf16.msra.mxu0 %v3431_v19  ;;  %v1579_v61 = vsel %vm620_vm0, %v1576_v50, %v1578_v8 }
  0x7e   : > { %3308 = vmatprep.subr.bf16.mxu1 %v3307_v1  ;;  %3436 = vmatprep.subr.bf16.mxu0 %v3435_v6 }
  0x7f   : > { %2919 = vmatprep.mubr.f32.mxu1 %v3883_v48  ;;  %3095 = vmatprep.mubr.f32.mxu0 %v4001_v39  ;;  %v2425_v48 = vld [vmem:[%s4580_s3 + $0x1f0] sm:$0xff] }
  0x80   : > { %v3319_v34 = vpack.c.bf16 %v2426_v29, %v2425_v48 }
  0x81   : > { %3310 = vmatpush3.bf16.msra.mxu1 %v3307_v1  ;;  %3438 = vmatpush3.bf16.msra.mxu0 %v3435_v6  ;;  %v1712_v6 = vrot.slane %v4346_v0, 2 }
  0x82   : > { %3312 = vmatprep.subr.bf16.mxu1 %v3311_v22  ;;  %3440 = vmatprep.subr.bf16.mxu0 %v3439_v18 }
  0x83   : > { %v1714_v14 = vsel %vm876_vm1, %v1712_v6, %v1713_v12 }
  0x85   : > { %3314 = vmatpush3.bf16.msra.mxu1 %v3311_v22  ;;  %3442 = vmatpush3.bf16.msra.mxu0 %v3439_v18 }
  0x86   : > { %3316 = vmatprep.subr.bf16.mxu1 %v3315_v26  ;;  %3444 = vmatprep.subr.bf16.mxu0 %v3443_v27 }
  0x89   : > { %3318 = vmatpush3.bf16.msra.mxu1 %v3315_v26  ;;  %3446 = vmatpush3.bf16.msra.mxu0 %v3443_v27 }
  0x8a   : > { %3320 = vmatprep.subr.bf16.mxu1 %v3319_v34  ;;  %3448 = vmatprep.subr.bf16.mxu0 %v3447_v35 }
  0x8d   : > { %3322 = vmatpush3.bf16.msra.mxu1 %v3319_v34  ;;  %3450 = vmatpush3.bf16.msra.mxu0 %v3447_v35 }
  0x8e   : > { %3452 = vmatprep.subr.bf16.mxu0 %v3451_v40 }
  0x90   : > { %2920 = vmatmul.mubr.f32.vlgmr.msra.gmra.mrb[0].mxu1 %v3885_v49  ;;  %3096 = vmatmul.mubr.f32.vlgmr.msra.gmra.mrb[0].mxu0 %v4006_v43  ;;  %v3459_v49 = vpack.c.bf16 %v2496_v9, %v2495_v52 }
  0x91   : > { %2922 = vmatprep.mubr.f32.mxu1 %v3944_v16  ;;  %3454 = vmatpush3.bf16.msra.mxu0 %v3451_v40  ;;  %v2498_v16 = vld [vmem:[%s4580_s3 + $0x438] sm:$0xff] }
  0x92   : > { %3098 = vmatprep.mubr.f32.mxu0 %v4034_v55  ;;  %3456 = vmatprep.subr.bf16.mxu0 %v3455_v44  ;;  %v3463_v57 = vpack.c.bf16 %v2498_v16, %v2497_v56 }
  0x94   : > { %2923 = vmatmul.mubr.f32.gmra.mrb[2].mxu1 %v3946_v17  ;;  %3099 = vmatmul.mubr.f32.gmra.mrb[2].mxu0 %v4040_v60  ;;  %v1577_v17 = vsel %vm620_vm0, %v1575_v47, %v1576_v50 }
  0x95   : > { %2925 = vmatprep.mubr.f32.mxu1 %v3978_v31  ;;  %3458 = vmatpush3.bf16.msra.mxu0 %v3455_v44  ;;  %v2500_v31 = vld [vmem:[%s4580_s3 + $0x448] sm:$0xff] }
  0x96   : > { %3101 = vmatprep.mubr.f32.mxu0 %v4062_v3  ;;  %3460 = vmatprep.subr.bf16.mxu0 %v3459_v49  ;;  %v3467_v19 = vpack.c.bf16 %v2500_v31, %v2499_v59 }
  0x98   : > { %2926 = vmatmul.mubr.f32.gmra.mrb[4].mxu1 %v3980_v32  ;;  %3102 = vmatmul.mubr.f32.gmra.mrb[4].mxu0 %v4071_v11  ;;  %v2501_v32 = vld [vmem:[%s4580_s3 + $0x450] sm:$0xff] }
  0x99   : > { %2928 = vmatprep.mubr.f32.mxu1 %v4009_v45  ;;  %3462 = vmatpush3.bf16.msra.mxu0 %v3459_v49  ;;  %v3471_v45 = vpack.c.bf16 %v2502_v62, %v2501_v32 }
  0x9a   : > { %3104 = vmatprep.mubr.f32.mxu0 %v1577_v17  ;;  %3464 = vmatprep.subr.bf16.mxu0 %v3463_v57 }
  0x9c   : > { %2929 = vmatmul.mubr.f32.gmra.mrb[6].mxu1 %v4011_v46  ;;  %3105 = vmatmul.mubr.f32.gmra.mrb[6].mxu0 %v1579_v61  ;;  %v2504_v46 = vld [vmem:[%s4580_s3 + $0x468] sm:$0xff] }
  0x9d   : > { %3466 = vmatpush3.bf16.msra.mxu0 %v3463_v57  ;;  %3139 = vmatprep.mubr.f32.mxu0 %v4172_v15  ;;  %v3475_v2 = vpack.c.bf16 %v2504_v46, %v2503_v63  ;;  %v2506_v15 = vld [vmem:[%s4580_s3 + $0x478] sm:$0xff] }
  0x9e   : > { %3468 = vmatprep.subr.bf16.mxu0 %v3467_v19  ;;  %v3479_v1 = vpack.c.bf16 %v2506_v15, %v2505_v7 }
  0xa1   : > { %3470 = vmatpush3.bf16.msra.mxu0 %v3467_v19 }
  0xa2   : > { %3472 = vmatprep.subr.bf16.mxu0 %v3471_v45 }
  0xa5   : > { %3474 = vmatpush3.bf16.msra.mxu0 %v3471_v45 }
  0xa6   : > { %3476 = vmatprep.subr.bf16.mxu0 %v3475_v2 }
  0xa9   : > { %3478 = vmatpush3.bf16.msra.mxu0 %v3475_v2 }
  0xaa   : > { %3480 = vmatprep.subr.bf16.mxu0 %v3479_v1 }
  0xad   : > { %3482 = vmatpush3.bf16.msra.mxu0 %v3479_v1 }
  0xb0   : > { %3140 = vmatmul.mubr.f32.vlgmr.msra.gmra.mrb[0].mxu0 %v4177_v23 }
  0xb1   : > { %3142 = vmatprep.mubr.f32.mxu0 %v4197_v30 }
  0xb4   : > { %3143 = vmatmul.mubr.f32.gmra.mrb[2].mxu0 %v4202_v37 }
  0xb5   : > { %3145 = vmatprep.mubr.f32.mxu0 %v4224_v51 }
  0xb8   : > { %3146 = vmatmul.mubr.f32.gmra.mrb[4].mxu0 %v4227_v54 }
  0xb9   : > { %3148 = vmatprep.mubr.f32.mxu0 %v1714_v14 }
  0xbc   : > { %3149 = vmatmul.mubr.f32.gmra.mrb[6].mxu0 %v1716_v5 }
 0x163   : > { %v2921_v23 = vpop.f32.mrb[0].mxu1 }
 0x164   : > { %v1118_v30 = vpop.f32.mrb[1].mxu1 }
 0x167   : > { %v2924_v22 = vpop.f32.mrb[2].mxu1 }
 0x168   : > { %v1128_v0 = vpop.f32.mrb[3].mxu1 }
 0x16b   : > { %v2927_v18 = vpop.f32.mrb[4].mxu1 }
 0x16c   : > { %v1138_v4 = vpop.f32.mrb[5].mxu1 }
 0x16f   : > { %v2930_v20 = vpop.f32.mrb[6].mxu1 }
 0x170   : > { %v1148_v37 = vpop.f32.mrb[7].mxu1 }
 0x183   : > { %v3141_v51 = vpop.f32.mrb[0].mxu0 }
 0x184   : > { %v3515_v54 = vadd.f32 %v3141_v51, %v2921_v23  ;;  %v1802_v21 = vpop.f32.mrb[1].mxu0 }
 0x185   : > { %v3516_v24 = vadd.f32 %v1802_v21, %v1118_v30 }
 0x186   : > { %1850 = vst [vmem:[%s4470_s26 + $0x8] sm:$0xff] %v3515_v54  ;;  %v1871_v25 = vmul.f32 %v3515_v54, %v3515_v54 }
 0x187   : > { %1849 = vst [vmem:[%s4470_s26] sm:$0xff] %v3516_v24  ;;  %v1857_v26 = vadd.f32 %v3516_v24, %v3515_v54  ;;  %v1870_v27 = vmul.f32 %v3516_v24, %v3516_v24  ;;  %v3144_v48 = vpop.f32.mrb[2].mxu0 }
 0x188   : > { %v3517_v29 = vadd.f32 %v3144_v48, %v2924_v22  ;;  %v1812_v36 = vpop.f32.mrb[3].mxu0 }
 0x189   : > { %v1878_v33 = vadd.f32 %v1871_v25, %v1870_v27  ;;  %v3518_v34 = vadd.f32 %v1812_v36, %v1128_v0 }
 0x18a   : > { %1852 = vst [vmem:[%s4470_s26 + $0x18] sm:$0xff] %v3517_v29  ;;  %v1873_v42 = vmul.f32 %v3517_v29, %v3517_v29 }
 0x18b   : > { %1851 = vst [vmem:[%s4470_s26 + $0x10] sm:$0xff] %v3518_v34  ;;  %v1858_v35 = vadd.f32 %v3518_v34, %v1857_v26  ;;  %v1872_v38 = vmul.f32 %v3518_v34, %v3518_v34  ;;  %v3147_v10 = vpop.f32.mrb[4].mxu0 }
 0x18c   : > { %v3519_v40 = vadd.f32 %v3147_v10, %v2927_v18  ;;  %v1822_v41 = vpop.f32.mrb[5].mxu0 }
 0x18d   : > { %v1879_v44 = vadd.f32 %v1878_v33, %v1872_v38  ;;  %v3520_v52 = vadd.f32 %v1822_v41, %v1138_v4  ;;  %v1859_v9 = vadd.f32 %v3517_v29, %v1858_v35 }
 0x18e   : > { %1854 = vst [vmem:[%s4470_s26 + $0x28] sm:$0xff] %v3519_v40  ;;  %v1875_v8 = vmul.f32 %v3519_v40, %v3519_v40 }
 0x18f   : > { %1853 = vst [vmem:[%s4470_s26 + $0x20] sm:$0xff] %v3520_v52  ;;  %v1860_v47 = vadd.f32 %v3520_v52, %v1859_v9  ;;  %v1874_v50 = vmul.f32 %v3520_v52, %v3520_v52  ;;  %v1880_v49 = vadd.f32 %v1879_v44, %v1873_v42  ;;  %v3150_v53 = vpop.f32.mrb[6].mxu0 }
 0x190   : > { %v3521_v56 = vadd.f32 %v3150_v53, %v2930_v20  ;;  %v1832_v16 = vpop.f32.mrb[7].mxu0 }
 0x191   : > { %v1881_v57 = vadd.f32 %v1880_v49, %v1874_v50  ;;  %v3522_v17 = vadd.f32 %v1832_v16, %v1148_v37  ;;  %v1861_v59 = vadd.f32 %v3519_v40, %v1860_v47 }
 0x192   : > { %1856 = vst [vmem:[%s4470_s26 + $0x38] sm:$0xff] %v3521_v56  ;;  %v1877_v32 = vmul.f32 %v3521_v56, %v3521_v56 }
 0x193   : > { %1855 = vst [vmem:[%s4470_s26 + $0x30] sm:$0xff] %v3522_v17  ;;  %v1862_v31 = vadd.f32 %v3522_v17, %v1861_v59  ;;  %v1876_v61 = vmul.f32 %v3522_v17, %v3522_v17  ;;  %v1882_v19 = vadd.f32 %v1881_v57, %v1875_v8 }
 0x195   : > { %v1863_v62 = vadd.f32 %v3521_v56, %v1862_v31  ;;  %v1883_v45 = vadd.f32 %v1882_v19, %v1876_v61 }
 0x197   : > { %v1864_v63 = vrot.slane %v1863_v62, 4  ;;  %v1884_v46 = vadd.f32 %v1883_v45, %v1877_v32 }
 0x199   : > { %v1865_v2 = vadd.f32 %v1864_v63, %v1863_v62  ;;  %v1885_v7 = vrot.slane %v1884_v46, 4 }
 0x19b   : > { %v1866_v15 = vrot.slane %v1865_v2, 2  ;;  %v1886_v1 = vadd.f32 %v1885_v7, %v1884_v46 }
 0x19d   : > { %v1867_v6 = vadd.f32 %v1866_v15, %v1865_v2  ;;  %v1887_v12 = vrot.slane %v1886_v1, 2 }
 0x19f   : > { %v1868_v13 = vrot.slane %v1867_v6, 1  ;;  %v1888_v14 = vadd.f32 %v1887_v12, %v1886_v1  ;;  %1896 = sbr.rel (%p2507_p12) target bundleno = 423 (0x1a7), region = 44 }
 0x1a1   : > { %v1889_v5 = vrot.slane %v1888_v14, 1  ;;  %v1869_v23 = vadd.f32 %v1868_v13, %v1867_v6 }
 0x1a3   : > { %v1890_v30 = vadd.f32 %v1889_v5, %v1888_v14 }
 0x1a5   : > { %v1892_v22 = vsel %vm1891_vm2, %v1869_v23, %v1890_v30 }
 0x1a6   : > { %1897 = vst [vmem:[%s3816_s14] sm:$0x3] %v1892_v22 }
 0x1a7 PF: > { %p2508_p13 = scmp.le.s32.totalorder %s3642_s27, 0 }
 0x1a9   : > { %1900 = sbr.rel (%p2508_p13) target bundleno = 433 (0x1b1), region = 48 }
 0x1ad   : > { %v1901_v0 = vld [vmem:[%s3816_s14] sm:$0x3] (!%p2508_p13) }
 0x1ae   : > { %v1902_v18 = vadd.f32 (!%p2508_p13), %v1901_v0, %v1892_v22 }
 0x1b0   : > { %1903 = vst [vmem:[%s3816_s14] sm:$0x3] %v1902_v18 }
 0x1b1 PF: > { %v1904_v4 = vld [vmem:[%s4581_s4] sm:$0xff]  ;;  %v1905_v20 = vld [vmem:[%s4581_s4 + $0x8] sm:$0xff]  ;;  %v1906_v37 = vld [vmem:[%s4581_s4 + $0x10] sm:$0xff]  ;;  %3183 = vmatprep.mubr.f32.mxu1 %v3900_v58 }
 0x1b2   : > { %v3483_v51 = vpack.c.bf16 %v1905_v20, %v1904_v4  ;;  %v1907_v54 = vld [vmem:[%s4581_s4 + $0x18] sm:$0xff]  ;;  %v1908_v24 = vld [vmem:[%s4581_s4 + $0x20] sm:$0xff]  ;;  %v1909_v25 = vld [vmem:[%s4581_s4 + $0x28] sm:$0xff] }
 0x1b3   : > { %v3487_v21 = vpack.c.bf16 %v1907_v54, %v1906_v37  ;;  %v3491_v26 = vpack.c.bf16 %v1909_v25, %v1908_v24  ;;  %v1910_v58 = vld [vmem:[%s4581_s4 + $0x30] sm:$0xff]  ;;  %v1911_v27 = vld [vmem:[%s4581_s4 + $0x38] sm:$0xff]  ;;  %v1912_v29 = vld [vmem:[%s4581_s4 + $0x40] sm:$0xff] }
 0x1b4   : > { %3484 = vmatprep.subr.bf16.mxu1 %v3483_v51  ;;  %v3495_v48 = vpack.c.bf16 %v1911_v27, %v1910_v58  ;;  %v1913_v36 = vld [vmem:[%s4581_s4 + $0x48] sm:$0xff]  ;;  %v1914_v34 = vld [vmem:[%s4581_s4 + $0x50] sm:$0xff]  ;;  %v1915_v35 = vld [vmem:[%s4581_s4 + $0x58] sm:$0xff] }
 0x1b5   : > { %3486 = vmatpush3.bf16.msra.mxu1 %v3483_v51  ;;  %v3499_v33 = vpack.c.bf16 %v1913_v36, %v1912_v29  ;;  %v3503_v38 = vpack.c.bf16 %v1915_v35, %v1914_v34  ;;  %v1916_v10 = vld [vmem:[%s4581_s4 + $0x60] sm:$0xff]  ;;  %v1917_v40 = vld [vmem:[%s4581_s4 + $0x68] sm:$0xff]  ;;  %v1918_v42 = vld [vmem:[%s4581_s4 + $0x70] sm:$0xff] }
 0x1b6   : > { %3488 = vmatprep.subr.bf16.mxu1 %v3487_v21  ;;  %v3507_v41 = vpack.c.bf16 %v1917_v40, %v1916_v10  ;;  %v1919_v44 = vld [vmem:[%s4581_s4 + $0x78] sm:$0xff] }
 0x1b7   : > { %v3511_v52 = vpack.c.bf16 %v1919_v44, %v1918_v42 }
 0x1b9   : > { %3490 = vmatpush3.bf16.msra.mxu1 %v3487_v21 }
 0x1ba   : > { %3492 = vmatprep.subr.bf16.mxu1 %v3491_v26 }
 0x1bd   : > { %3494 = vmatpush3.bf16.msra.mxu1 %v3491_v26 }
 0x1be   : > { %3496 = vmatprep.subr.bf16.mxu1 %v3495_v48 }
 0x1c1   : > { %3498 = vmatpush3.bf16.msra.mxu1 %v3495_v48 }
 0x1c2   : > { %3500 = vmatprep.subr.bf16.mxu1 %v3499_v33 }
 0x1c5   : > { %3502 = vmatpush3.bf16.msra.mxu1 %v3499_v33 }
 0x1c6   : > { %3504 = vmatprep.subr.bf16.mxu1 %v3503_v38 }
 0x1c9   : > { %3506 = vmatpush3.bf16.msra.mxu1 %v3503_v38 }
 0x1ca   : > { %3508 = vmatprep.subr.bf16.mxu1 %v3507_v41 }
 0x1cd   : > { %3510 = vmatpush3.bf16.msra.mxu1 %v3507_v41 }
 0x1ce   : > { %3512 = vmatprep.subr.bf16.mxu1 %v3511_v52 }
 0x1d1   : > { %3514 = vmatpush3.bf16.msra.mxu1 %v3511_v52 }
 0x1d4   : > { %3184 = vmatmul.mubr.f32.vlgmr.msra.gmra.mrb[8].mxu1 %v3975_v28 }
 0x1d5   : > { %3186 = vmatprep.mubr.f32.mxu1 %v4001_v39 }
 0x1d8   : > { %3187 = vmatmul.mubr.f32.gmra.mrb[10].mxu1 %v4006_v43 }
 0x1d9   : > { %3189 = vmatprep.mubr.f32.mxu1 %v4034_v55 }
 0x1dc   : > { %3190 = vmatmul.mubr.f32.gmra.mrb[12].mxu1 %v4040_v60 }
 0x1dd   : > { %3192 = vmatprep.mubr.f32.mxu1 %v4062_v3 }
 0x1e0   : > { %3193 = vmatmul.mubr.f32.gmra.mrb[14].mxu1 %v4071_v11 }
 0x2a7   : > { %v3185_v9 = vpop.f32.mrb[8].mxu1 }
 0x2a8   : > { %2026 = vst [vmem:[%s3828_s17 + $0x8] sm:$0xff] %v3185_v9  ;;  %v2047_v47 = vmul.f32 %v3185_v9, %v3185_v9  ;;  %v1986_v50 = vpop.f32.mrb[9].mxu1 }
 0x2a9   : > { %2025 = vst [vmem:[%s3828_s17] sm:$0xff] %v1986_v50  ;;  %v2033_v28 = vadd.f32 %v3185_v9, %v1986_v50  ;;  %v2046_v39 = vmul.f32 %v1986_v50, %v1986_v50 }
 0x2ab   : > { %v2054_v49 = vadd.f32 %v2047_v47, %v2046_v39  ;;  %v3188_v43 = vpop.f32.mrb[10].mxu1 }
 0x2ac   : > { %2028 = vst [vmem:[%s3828_s17 + $0x18] sm:$0xff] %v3188_v43  ;;  %v1996_v53 = vpop.f32.mrb[11].mxu1  ;;  %v2049_v3 = vmul.f32 %v3188_v43, %v3188_v43 }
 0x2ad   : > { %2027 = vst [vmem:[%s3828_s17 + $0x10] sm:$0xff] %v1996_v53  ;;  %v2034_v55 = vadd.f32 %v2033_v28, %v1996_v53  ;;  %v2048_v60 = vmul.f32 %v1996_v53, %v1996_v53 }
 0x2af   : > { %v2055_v11 = vadd.f32 %v2054_v49, %v2048_v60  ;;  %v3191_v56 = vpop.f32.mrb[12].mxu1  ;;  %v2035_v16 = vadd.f32 %v3188_v43, %v2034_v55 }
 0x2b0   : > { %2030 = vst [vmem:[%s3828_s17 + $0x28] sm:$0xff] %v3191_v56  ;;  %v2006_v8 = vpop.f32.mrb[13].mxu1  ;;  %v2051_v31 = vmul.f32 %v3191_v56, %v3191_v56 }
 0x2b1   : > { %2029 = vst [vmem:[%s3828_s17 + $0x20] sm:$0xff] %v2006_v8  ;;  %v2036_v57 = vadd.f32 %v2035_v16, %v2006_v8  ;;  %v2050_v17 = vmul.f32 %v2006_v8, %v2006_v8  ;;  %v2056_v59 = vadd.f32 %v2055_v11, %v2049_v3 }
 0x2b3   : > { %v2057_v61 = vadd.f32 %v2056_v59, %v2050_v17  ;;  %v3194_v19 = vpop.f32.mrb[14].mxu1  ;;  %v2037_v32 = vadd.f32 %v3191_v56, %v2036_v57 }
 0x2b4   : > { %2032 = vst [vmem:[%s3828_s17 + $0x38] sm:$0xff] %v3194_v19  ;;  %v2016_v62 = vpop.f32.mrb[15].mxu1  ;;  %v2053_v2 = vmul.f32 %v3194_v19, %v3194_v19 }
 0x2b5   : > { %2031 = vst [vmem:[%s3828_s17 + $0x30] sm:$0xff] %v2016_v62  ;;  %v2038_v45 = vadd.f32 %v2037_v32, %v2016_v62  ;;  %v2052_v63 = vmul.f32 %v2016_v62, %v2016_v62  ;;  %v2058_v46 = vadd.f32 %v2057_v61, %v2051_v31 }
 0x2b7   : > { %v2039_v7 = vadd.f32 %v3194_v19, %v2038_v45  ;;  %v2059_v15 = vadd.f32 %v2058_v46, %v2052_v63 }
 0x2b9   : > { %v2040_v1 = vrot.slane %v2039_v7, 4  ;;  %v2060_v6 = vadd.f32 %v2059_v15, %v2053_v2 }
 0x2bb   : > { %v2041_v12 = vadd.f32 %v2040_v1, %v2039_v7  ;;  %v2061_v13 = vrot.slane %v2060_v6, 4 }
 0x2bd   : > { %v2042_v14 = vrot.slane %v2041_v12, 2  ;;  %v2062_v5 = vadd.f32 %v2061_v13, %v2060_v6 }
 0x2bf   : > { %v2043_v23 = vadd.f32 %v2042_v14, %v2041_v12  ;;  %v2063_v30 = vrot.slane %v2062_v5, 2 }
 0x2c1   : > { %v2044_v22 = vrot.slane %v2043_v23, 1  ;;  %v2064_v0 = vadd.f32 %v2063_v30, %v2062_v5  ;;  %2070 = sbr.rel (%p2507_p12) target bundleno = 713 (0x2c9), region = 52 }
 0x2c3   : > { %v2065_v18 = vrot.slane %v2064_v0, 1  ;;  %v2045_v4 = vadd.f32 %v2044_v22, %v2043_v23 }
 0x2c5   : > { %v2066_v20 = vadd.f32 %v2065_v18, %v2064_v0 }
 0x2c7   : > { %v2067_v37 = vsel %vm1891_vm2, %v2045_v4, %v2066_v20 }
 0x2c8   : > { %2071 = vst [vmem:[%s3845_s0] sm:$0x3] %v2067_v37 }
 0x2c9 PF: > { %2074 = sbr.rel (%p2508_p13) target bundleno = 723 (0x2d3), region = 56 }
 0x2cf   : > { %v2075_v51 = vld [vmem:[%s3845_s0] sm:$0x3] (!%p2508_p13) }
 0x2d0   : > { %v2076_v54 = vadd.f32 %v2075_v51, %v2067_v37 }
 0x2d2   : > { %2077 = vst [vmem:[%s3845_s0] sm:$0x3] %v2076_v54 }
 0x2d3 PF: > { %s19_s9 = sadd.s32 1, %s3658_s9   ;;  %s4596_s17 = sld [smem:[#allocation3_spill]] }
 0x2d4   : > { %p16_p0 = scmp.ge.s32.totalorder %s19_s9, 10   ;;  %s4597_s27 = smov %s3650_s29 }
 0x2d5   : > { %s4598_s28 = smov %s3654_s30  ;;  %s4599_s29 = smov %s4602_s10 }
 0x2d6   :  { %18 = sbr.rel (!%p16_p0) target bundleno = 5 (0x5), region = 138 }
 0x2d9   : > { %s4600_s30 = smov %s4596_s17 }

// kernel: residual_layer_forward.4
= control target key start
LH: loop header
LB: loop body
LE: loop exit
PB: predicated region body
PF: predicated region fallthrough
CT: control target
= control target key end

     0   :  { %s3403_s27 = smov 0   ;;  %s3405_s28 = smov 0   ;;  %s4184_s0 = inlined_call_operand.vmem [shape: f32[2,16,16,128], index: 0, kind: input, shape index: {}, may-alias: {0,1,2}]   ;;  %s4185_s1 = inlined_call_operand.vmem [shape: f32[2,16,16,128], index: 1, kind: input, shape index: {}, may-alias: {0,1,2}]   ;;  %s4186_s2 = inlined_call_operand.vmem [shape: f32[2,16,16,128], index: 2, kind: input, shape index: {}, may-alias: {0,1,2}]   ;;  %s4187_s3 = inlined_call_operand.vmem [shape: f32[3,3,128,128], index: 3, kind: input, shape index: {}]   ;;  %s4188_s4 = inlined_call_operand.vmem [shape: f32[2,128], index: 4, kind: input, shape index: {}]   ;;  %s4189_s5 = inlined_call_operand.vmem [shape: f32[1,128], index: 5, kind: input, shape index: {}]   ;;  %s4190_s6 = inlined_call_operand.vmem [shape: f32[1,128], index: 6, kind: input, shape index: {}]   ;;  %s4191_s7 = inlined_call_operand.vmem [shape: f32[2,16,16,128], index: 7, kind: output, shape index: {0}]   ;;  %s4192_s8 = inlined_call_operand.vmem [shape: f32[2,2,128], index: 8, kind: output, shape index: {1}]  }
   0x1   :  { %4193 = sst [smem:[#allocation3_spill]] %s4188_s4  ;;  %s3407_s29 = smov 0  }
   0x2   :  { %s3409_s30 = smov 0   ;;  %s3411_s9 = smov 0  }
   0x3 LB: > { %s28_s10 = sadd.s32 1, %s3346_s29  ;;  %s31_s11 = sadd.s32 1, %s3350_s30  ;;  %s3354_s9 = sphi %s3411_s9, %s19_s9   ;;  %s3350_s30 = sphi %s3409_s30, %s4199_s30   ;;  %s3346_s29 = sphi %s3407_s29, %s4198_s29   ;;  %s3342_s28 = sphi %s3405_s28, %s4197_s28   ;;  %s3338_s27 = sphi %s3403_s27, %s4196_s27  }
   0x4   : > { %p29_p0 = scmp.ge.s32.totalorder %s28_s10, 4  ;;  %p2131_p1 = scmp.ge.s32.totalorder %s3354_s9, 1 }
   0x5   : > { %p351_p2 = scmp.lt.s32.totalorder %s3354_s9, 9 }
   0x6   : > { %s4201_s10 = smov (%p29_p0, %s28_s10), 0  ;;  %s4203_s11 = smov (!%p29_p0, %s31_s11), %s3350_s30 }
   0x7   : > { %p352_p3 = pnand %p2131_p1, %p351_p2  ;;  %p33_p4 = scmp.ge.s32.totalorder %s4203_s11, 2 }
   0x8   : > { %v2206_v0 = vld [vmem:[%s4187_s3 + $0x200] sm:$0xff] (!%p352_p3)  ;;  %v2207_v1 = vld [vmem:[%s4187_s3 + $0x208] sm:$0xff] (!%p352_p3)  ;;  %p426_p5 = scmp.lt.s32.totalorder (!%p352_p3), %s3342_s28, 1  ;;  %v2208_v5 = vld [vmem:[%s4187_s3 + $0x210] sm:$0xff] (!%p352_p3)  ;;  %v3356_v7 = vmov (!%p352_p3), 0.0   ;;  %s4194_s4 = sld [smem:[#allocation3_spill]] (!%p352_p3)  ;;  %v501_v54 = vlaneseq (!%p352_p3) }
   0x9   : > { %s4205_s11 = smov (%p33_p4, %s4203_s11), 0  ;;  %355 = sbr.rel (%p352_p3) target bundleno = 457 (0x1c9), region = 48 }
   0xa   : > { %v2158_v2 = vld [vmem:[%s4187_s3 + $0x80] sm:$0xff] (!%p352_p3)  ;;  %v3032_v3 = vpack.c.bf16 (!%p352_p3), %v2207_v1, %v2206_v0  ;;  %v2159_v4 = vld [vmem:[%s4187_s3 + $0x88] sm:$0xff] (!%p352_p3)  ;;  %v2209_v6 = vld [vmem:[%s4187_s3 + $0x218] sm:$0xff] (!%p352_p3)  ;;  %520 = vst [vmem:[#allocation2 + $0x18] sm:$0xff] (!%p352_p3), %v3356_v7  ;;  %s3513_s14 = sshll.u32 (!%p352_p3), %s3338_s27, 2  ;;  %v502_v60 = vshrl.u32 (!%p352_p3), %v501_v54, 7 }
   0xb   : > { %521 = vst [vmem:[#allocation2 + $0x20] sm:$0xff] (!%p352_p3), %v3356_v7  ;;  %522 = vst [vmem:[#allocation2 + $0x28] sm:$0x3] (!%p352_p3), %v3356_v7  ;;  %v2904_v8 = vpack.c.bf16 (!%p352_p3), %v2159_v4, %v2158_v2  ;;  %v3036_v9 = vpack.c.bf16 (!%p352_p3), %v2209_v6, %v2208_v5  ;;  %v2160_v10 = vld [vmem:[%s4187_s3 + $0x90] sm:$0xff] (!%p352_p3)  ;;  %v2161_v11 = vld [vmem:[%s4187_s3 + $0x98] sm:$0xff] (!%p352_p3)  ;;  %s3526_s19 = sadd.s32 (!%p352_p3), 4294967295, %s3513_s14 }
   0xc   : > { %517 = vst [vmem:[#allocation2] sm:$0xff] (!%p352_p3), %v3356_v7  ;;  %518 = vst [vmem:[#allocation2 + $0x8] sm:$0xff] (!%p352_p3), %v3356_v7  ;;  %v2210_v12 = vld [vmem:[%s4187_s3 + $0x220] sm:$0xff] (!%p352_p3)  ;;  %3033 = vmatprep.subr.bf16.mxu0 (!%p352_p3), %v3032_v3  ;;  %v2908_v13 = vpack.c.bf16 (!%p352_p3), %v2161_v11, %v2160_v10  ;;  %v2211_v14 = vld [vmem:[%s4187_s3 + $0x228] sm:$0xff] (!%p352_p3)  ;;  %p438_p6 = scmp.gt.s32.totalorder (!%p352_p3), %s3526_s19, 0  ;;  %p428_p7 = scmp.lt.s32.totalorder (!%p352_p3), %s3513_s14, 15 }
   0xd   : > { %519 = vst [vmem:[#allocation2 + $0x10] sm:$0x3] (!%p352_p3), %v3356_v7  ;;  %523 = vst [vmem:[#allocation2 + $0x30] sm:$0xff] (!%p352_p3), %v3356_v7  ;;  %v2162_v15 = vld [vmem:[%s4187_s3 + $0xa0] sm:$0xff] (!%p352_p3)  ;;  %v2163_v16 = vld [vmem:[%s4187_s3 + $0xa8] sm:$0xff] (!%p352_p3)  ;;  %3035 = vmatpush3.bf16.msra.mxu0 (!%p352_p3), %v3032_v3  ;;  %2905 = vmatprep.subr.bf16.mxu1 (!%p352_p3), %v2904_v8  ;;  %v3040_v17 = vpack.c.bf16 (!%p352_p3), %v2211_v14, %v2210_v12  ;;  %p2138_p8 = scmp.lt.s32.totalorder (!%p352_p3), %s3526_s19, 15 }
   0xe   : > { %524 = vst [vmem:[#allocation2 + $0x38] sm:$0xff] (!%p352_p3), %v3356_v7  ;;  %525 = vst [vmem:[#allocation2 + $0x40] sm:$0x3] (!%p352_p3), %v3356_v7  ;;  %2907 = vmatpush3.bf16.msra.mxu1 (!%p352_p3), %v2904_v8  ;;  %3037 = vmatprep.subr.bf16.mxu0 (!%p352_p3), %v3036_v9  ;;  %v2912_v18 = vpack.c.bf16 (!%p352_p3), %v2163_v16, %v2162_v15  ;;  %v2212_v19 = vld [vmem:[%s4187_s3 + $0x230] sm:$0xff] (!%p352_p3)  ;;  %v2213_v20 = vld [vmem:[%s4187_s3 + $0x238] sm:$0xff] (!%p352_p3)  ;;  %s454_s17 = sadd.s32 (!%p352_p3), 4, %s3513_s14 }
   0xf   : > { %526 = vst [vmem:[#allocation2 + $0x48] sm:$0xff] (!%p352_p3), %v3356_v7  ;;  %527 = vst [vmem:[#allocation2 + $0x50] sm:$0xff] (!%p352_p3), %v3356_v7  ;;  %2909 = vmatprep.subr.bf16.mxu1 (!%p352_p3), %v2908_v13  ;;  %v2164_v21 = vld [vmem:[%s4187_s3 + $0xb0] sm:$0xff] (!%p352_p3)  ;;  %v2165_v22 = vld [vmem:[%s4187_s3 + $0xb8] sm:$0xff] (!%p352_p3)  ;;  %v3044_v23 = vpack.c.bf16 (!%p352_p3), %v2213_v20, %v2212_v19  ;;  %v3357_v52 = vmov (!%p352_p3), 1966171168  }
  0x10   : > { %528 = vst [vmem:[#allocation2 + $0x58] sm:$0x3] %v3356_v7  ;;  %529 = vst [vmem:[#allocation2 + $0x60] sm:$0xff] %v3356_v7  ;;  %s4207_s28 = smov (!%p426_p5, %s3342_s28), 1  ;;  %v2916_v24 = vpack.c.bf16 %v2165_v22, %v2164_v21  ;;  %v2214_v25 = vld [vmem:[%s4187_s3 + $0x240] sm:$0xff]  ;;  %v2215_v26 = vld [vmem:[%s4187_s3 + $0x248] sm:$0xff]  ;;  %v499_v53 = vunpack.c.l.s4 %v3357_v52 }
  0x11   : > { %530 = vst [vmem:[#allocation2 + $0x68] sm:$0xff] %v3356_v7  ;;  %531 = vst [vmem:[#allocation2 + $0x70] sm:$0x3] %v3356_v7  ;;  %s2157_s21 = sshll.u32 %s4207_s28, 1  ;;  %3039 = vmatpush3.bf16.msra.mxu0 %v3036_v9  ;;  %v485_v27 = vld [vmem:[%s4194_s4] sm:$0x3]  ;;  %v3048_v31 = vpack.c.bf16 %v2215_v26, %v2214_v25 }
  0x12   : > { %532 = vst [vmem:[#allocation2 + $0x78] sm:$0xff] %v3356_v7  ;;  %533 = vst [vmem:[#allocation2 + $0x80] sm:$0xff] %v3356_v7  ;;  %s3483_s24 = scalar_lea.vmem %s4192_s8, %s2157_s21  ;;  %2911 = vmatpush3.bf16.msra.mxu1 %v2908_v13  ;;  %3041 = vmatprep.subr.bf16.mxu0 %v3040_v17  ;;  %v2166_v28 = vld [vmem:[%s4187_s3 + $0xc0] sm:$0xff]  ;;  %v2167_v29 = vld [vmem:[%s4187_s3 + $0xc8] sm:$0xff]  ;;  %v3515_v30 = vmul.f32 0.001953125, %v485_v27  ;;  %s3570_s18 = sshll.u32 %s4207_s28, 5  ;;  %v500_v59 = vunpack.c.0.s8 %v499_v53 }
  0x13   : > { %534 = vst [vmem:[#allocation2 + $0x88] sm:$0x3] %v3356_v7  ;;  %2913 = vmatprep.subr.bf16.mxu1 %v2912_v18  ;;  %v2920_v33 = vpack.c.bf16 %v2167_v29, %v2166_v28  ;;  %v2216_v34 = vld [vmem:[%s4187_s3 + $0x250] sm:$0xff]  ;;  %v2217_v35 = vld [vmem:[%s4187_s3 + $0x258] sm:$0xff]  ;;  %v2218_v42 = vld [vmem:[%s4187_s3 + $0x260] sm:$0xff]  ;;  %s439_s20 = scalar_select %p438_p6, %s3526_s19, 0 }
  0x14   : > { %v489_v32 = vmul.f32 %v3515_v30, %v3515_v30  ;;  %v2168_v36 = vld [vmem:[%s4187_s3 + $0xd0] sm:$0xff]  ;;  %v2169_v37 = vld [vmem:[%s4187_s3 + $0xd8] sm:$0xff]  ;;  %v3052_v39 = vpack.c.bf16 %v2217_v35, %v2216_v34  ;;  %v2219_v43 = vld [vmem:[%s4187_s3 + $0x268] sm:$0xff]  ;;  %s429_s26 = scalar_select %p428_p7, %s3513_s14, 15  ;;  %v503_v2 = vsub.s32 %v500_v59, %v502_v60  ;;  %v546_v9 = vsub.s32 0, %v502_v60 }
  0x15   : > { %3043 = vmatpush3.bf16.msra.mxu0 %v3040_v17  ;;  %v2924_v41 = vpack.c.bf16 %v2169_v37, %v2168_v36  ;;  %v2170_v44 = vld [vmem:[%s4187_s3 + $0xe0] sm:$0xff]  ;;  %v2171_v45 = vld [vmem:[%s4187_s3 + $0xe8] sm:$0xff]  ;;  %v3056_v47 = vpack.c.bf16 %v2219_v43, %v2218_v42  ;;  %v2220_v50 = vld [vmem:[%s4187_s3 + $0x270] sm:$0xff]  ;;  %s4209_s20 = smov (!%p2138_p8, %s439_s20), 15  ;;  %p3580_p9 = scmp.lt.s32.totalorder %s454_s17, 15  ;;  %vm665_vm0 = vcmask 1046528  }
  0x16   : > { %2915 = vmatpush3.bf16.msra.mxu1 %v2912_v18  ;;  %3045 = vmatprep.subr.bf16.mxu0 %v3044_v23  ;;  %v491_v38 = vrot.slane %v489_v32, 7  ;;  %v2928_v49 = vpack.c.bf16 %v2171_v45, %v2170_v44  ;;  %v2221_v51 = vld [vmem:[%s4187_s3 + $0x278] sm:$0xff]  ;;  %v2172_v55 = vld [vmem:[%s4187_s3 + $0xf0] sm:$0xff]  ;;  %s2133_s21 = sshll.u32 %s429_s26, 1  ;;  %v2222_v61 = vld [vmem:[%s4187_s3 + $0x280] sm:$0xff]  ;;  %s2143_s16 = sshll.u32 %s4209_s20, 1 }
  0x17   : > { %2917 = vmatprep.subr.bf16.mxu1 %v2916_v24  ;;  %v2173_v56 = vld [vmem:[%s4187_s3 + $0xf8] sm:$0xff]  ;;  %v3060_v57 = vpack.c.bf16 %v2221_v51, %v2220_v50  ;;  %v2223_v62 = vld [vmem:[%s4187_s3 + $0x288] sm:$0xff]  ;;  %v637_v63 = vld [vmem:[%s4187_s3] sm:$0xff]  ;;  %s3591_s15 = sadd.s32 %s3570_s18, %s2133_s21  ;;  %s4211_s17 = smov (!%p3580_p9, %s454_s17), 15  ;;  %vm921_vm1 = vcmask 1045504   ;;  %vm1936_vm2 = vcmask 1040384  }
  0x18   : > { %v493_v40 = vsub.f32 %v3515_v30, %v491_v38  ;;  %v2932_v58 = vpack.c.bf16 %v2173_v56, %v2172_v55  ;;  %v638_v0 = vld [vmem:[%s4187_s3 + $0x8] sm:$0xff]  ;;  %v3593_v1 = vpack.c.bf16 %v2223_v62, %v2222_v61  ;;  %s446_s22 = sadd.s32 %s2143_s16, %s3570_s18  ;;  %s2135_s23 = sshll.u32 %s3591_s15, 3  ;;  %v486_v7 = vld [vmem:[%s4189_s5] sm:$0x1] }
  0x19   : > { %3047 = vmatpush3.bf16.msra.mxu0 %v3044_v23  ;;  %v3595_v3 = vpack.c.bf16 %v638_v0, %v637_v63  ;;  %s4213_s17 = smov (!%p3580_p9, %s4211_s17), 15  ;;  %s2145_s20 = sshll.u32 %s446_s22, 3  ;;  %v487_v10 = vld [vmem:[%s4190_s6] sm:$0x1] }
  0x1a   : > { %2919 = vmatpush3.bf16.msra.mxu1 %v2916_v24  ;;  %3049 = vmatprep.subr.bf16.mxu0 %v3048_v31  ;;  %v494_v46 = vmax.f32 %v493_v40, 0.0  ;;  %s434_s14 = scalar_lea.vmem %s4184_s0, %s2135_s23  ;;  %s448_s16 = scalar_lea.vmem %s4185_s1, %s2145_s20 }
  0x1b   : > { %2921 = vmatprep.subr.bf16.mxu1 %v2920_v33  ;;  %s2150_s28 = sshll.u32 %s4213_s17, 1  ;;  %p588_p10 = scmp.gt.s32.totalorder %s3338_s27, 0  ;;  %v535_v12 = vld [vmem:[%s434_s14] sm:$0xff]  ;;  %v536_v13 = vld [vmem:[%s434_s14 + $0x8] sm:$0xff]  ;;  %v537_v18 = vld [vmem:[%s434_s14 + $0x10] sm:$0xff] }
  0x1c   : > { %v495_v48 = vadd.f32 1e-05, %v494_v46  ;;  %v590_v14 = vld [vmem:[%s448_s16] sm:$0xff]  ;;  %v591_v15 = vld [vmem:[%s448_s16 + $0x8] sm:$0xff]  ;;  %s463_s21 = sadd.s32 %s2150_s28, %s3570_s18  ;;  %v538_v19 = vld [vmem:[%s434_s14 + $0x18] sm:$0xff]  ;;  %p603_p11 = scmp.lt.s32.totalorder %s3338_s27, 3 }
  0x1d   : > { %3051 = vmatpush3.bf16.msra.mxu0 %v3048_v31  ;;  %v539_v20 = vld [vmem:[%s434_s14 + $0x20] sm:$0xff]  ;;  %s3622_s25 = scalar_select %p588_p10, 1.0, 0.0  ;;  %v540_v21 = vld [vmem:[%s434_s14 + $0x28] sm:$0xff]  ;;  %v541_v26 = vld [vmem:[%s434_s14 + $0x30] sm:$0xff] }
  0x1e   : > { %2923 = vmatpush3.bf16.msra.mxu1 %v2920_v33  ;;  %3053 = vmatprep.subr.bf16.mxu0 %v3052_v39  ;;  %3314 = vrsqrt.f32 %v495_v48  ;;  %v542_v27 = vld [vmem:[%s434_s14 + $0x38] sm:$0xff]  ;;  %s2152_s4 = sshll.u32 %s463_s21, 3  ;;  %p2286_p12 = scmp.ne.s32.totalorder %s3338_s27, 0 }
  0x1f   : > { %2925 = vmatprep.subr.bf16.mxu1 %v2924_v41  ;;  %v598_v34 = vstv %s3622_s25  ;;  %s465_s20 = scalar_lea.vmem %s4186_s2, %s2152_s4  ;;  %s4154_s25 = scalar_lea.vmem %s4191_s7, %s2135_s23 }
  0x20   : > { %v606_v50 = vld [vmem:[%s465_s20 + $0x8] sm:$0xff]  ;;  %s604_s14 = scalar_select %p603_p11, 1.0, 0.0 }
  0x21   : > { %3055 = vmatpush3.bf16.msra.mxu0 %v3052_v39 }
  0x22   : > { %2927 = vmatpush3.bf16.msra.mxu1 %v2924_v41  ;;  %3057 = vmatprep.subr.bf16.mxu0 %v3056_v47 }
  0x23   : > { %2929 = vmatprep.subr.bf16.mxu1 %v2928_v49 }
  0x25   : > { %3059 = vmatpush3.bf16.msra.mxu0 %v3056_v47 }
  0x26   : > { %2931 = vmatpush3.bf16.msra.mxu1 %v2928_v49  ;;  %3061 = vmatprep.subr.bf16.mxu0 %v3060_v57  ;;  %v605_v49 = vld [vmem:[%s465_s20] sm:$0xff] }
  0x27   : > { %2933 = vmatprep.subr.bf16.mxu1 %v2932_v58 }
  0x28   : > { %v3315_v4 = vpop.eup %3314 }
  0x29   : > { %3063 = vmatpush3.bf16.msra.mxu0 %v3060_v57  ;;  %v504_v5 = vrot.slane %v3315_v4, %v503_v2 }
  0x2a   : > { %2935 = vmatpush3.bf16.msra.mxu1 %v2932_v58  ;;  %3065 = vmatprep.subr.bf16.mxu0 %v3593_v1 }
  0x2b   : > { %2937 = vmatprep.subr.bf16.mxu1 %v3595_v3  ;;  %v505_v6 = vcombine.high %v504_v5, %v504_v5 }
  0x2d   : > { %v512_v8 = vrot.slane %v505_v6, %v503_v2  ;;  %v613_v2 = vstv %s604_s14  ;;  %v2224_v6 = vld [vmem:[%s4187_s3 + $0x290] sm:$0xff] }
  0x2f   : > { %v514_v11 = vmul.f32 %v512_v8, %v486_v7  ;;  %v2225_v7 = vld [vmem:[%s4187_s3 + $0x298] sm:$0xff]  ;;  %v639_v8 = vld [vmem:[%s4187_s3 + $0x10] sm:$0xff] }
  0x31   : > { %v515_v16 = vmul.f32 %v514_v11, %v3515_v30  ;;  %v547_v17 = vrot.slane %v514_v11, %v546_v9 }
  0x33   : > { %v516_v22 = vsub.f32 %v487_v10, %v515_v16  ;;  %v549_v23 = vmul.f32 %v547_v17, %v535_v12  ;;  %v550_v24 = vmul.f32 %v547_v17, %v536_v13  ;;  %v592_v25 = vmul.f32 %v590_v14, %v547_v17 }
  0x34   : > { %v593_v28 = vmul.f32 %v591_v15, %v547_v17  ;;  %v551_v29 = vmul.f32 %v547_v17, %v537_v18  ;;  %v552_v31 = vmul.f32 %v547_v17, %v538_v19  ;;  %v553_v30 = vmul.f32 %v547_v17, %v539_v20 }
  0x35   : > { %v561_v32 = vrot.slane %v516_v22, %v546_v9  ;;  %v554_v33 = vmul.f32 %v547_v17, %v540_v21  ;;  %v555_v35 = vmul.f32 %v547_v17, %v541_v26  ;;  %v556_v36 = vmul.f32 %v547_v17, %v542_v27 }
  0x36   : > { %v607_v59 = vmul.f32 %v605_v49, %v547_v17  ;;  %v608_v60 = vmul.f32 %v606_v50, %v547_v17  ;;  %v640_v17 = vld [vmem:[%s4187_s3 + $0x18] sm:$0xff] }
  0x37   : > { %v563_v37 = vadd.f32 %v561_v32, %v549_v23  ;;  %v564_v38 = vadd.f32 %v561_v32, %v550_v24  ;;  %v594_v39 = vadd.f32 %v592_v25, %v561_v32  ;;  %v595_v40 = vadd.f32 %v593_v28, %v561_v32 }
  0x38   : > { %v565_v41 = vadd.f32 %v561_v32, %v551_v29  ;;  %v566_v42 = vadd.f32 %v561_v32, %v552_v31  ;;  %v567_v43 = vadd.f32 %v561_v32, %v553_v30  ;;  %v568_v44 = vadd.f32 %v561_v32, %v554_v33 }
  0x39   : > { %v571_v45 = vmax.f32 %v563_v37, 0.0  ;;  %v572_v46 = vmax.f32 %v564_v38, 0.0  ;;  %v596_v47 = vmax.f32 %v594_v39, 0.0  ;;  %v597_v48 = vmax.f32 %v595_v40, 0.0  ;;  %v641_v40 = vld [vmem:[%s4187_s3 + $0x20] sm:$0xff] }
  0x3a   : > { %v573_v51 = vmax.f32 %v565_v41, 0.0  ;;  %v574_v52 = vmax.f32 %v566_v42, 0.0  ;;  %v575_v53 = vmax.f32 %v567_v43, 0.0  ;;  %v576_v54 = vmax.f32 %v568_v44, 0.0 }
  0x3b   : > { %580 = vst [vmem:[#allocation2 + $0x19] sm:$0xff] %v571_v45  ;;  %581 = vst [vmem:[#allocation2 + $0x21] sm:$0xff] %v572_v46  ;;  %v599_v55 = vmul.f32 %v598_v34, %v596_v47  ;;  %v600_v56 = vmul.f32 %v598_v34, %v597_v48  ;;  %v569_v57 = vadd.f32 %v561_v32, %v555_v35  ;;  %v2226_v35 = vld [vmem:[%s4187_s3 + $0x2a0] sm:$0xff]  ;;  %v642_v45 = vld [vmem:[%s4187_s3 + $0x28] sm:$0xff] }
  0x3c   : > { %v570_v58 = vadd.f32 %v561_v32, %v556_v36  ;;  %582 = vst [vmem:[#allocation2 + $0x31] sm:$0xff] %v573_v51  ;;  %583 = vst [vmem:[#allocation2 + $0x39] sm:$0xff] %v574_v52  ;;  %v609_v63 = vadd.f32 %v607_v59, %v561_v32  ;;  %v610_v0 = vadd.f32 %v608_v60, %v561_v32  ;;  %v2227_v36 = vld [vmem:[%s4187_s3 + $0x2a8] sm:$0xff]  ;;  %v2228_v51 = vld [vmem:[%s4187_s3 + $0x2b0] sm:$0xff] }
  0x3d   : > { %584 = vst [vmem:[#allocation2 + $0x49] sm:$0xff] %v575_v53  ;;  %585 = vst [vmem:[#allocation2 + $0x51] sm:$0xff] %v576_v54  ;;  %v577_v61 = vmax.f32 %v569_v57, 0.0  ;;  %v3068_v23 = vpack.c.bf16 %v2225_v7, %v2224_v6  ;;  %v2940_v34 = vpack.c.bf16 %v640_v17, %v639_v8  ;;  %v3072_v50 = vpack.c.bf16 %v2227_v36, %v2226_v35  ;;  %v2229_v52 = vld [vmem:[%s4187_s3 + $0x2b8] sm:$0xff]  ;;  %v646_v6 = vld [vmem:[%s4187_s3 + $0x48] sm:$0xff] }
  0x3e   : > { %601 = vst [vmem:[#allocation2 + $0x1] sm:$0xff] %v599_v55  ;;  %602 = vst [vmem:[#allocation2 + $0x9] sm:$0xff] %v600_v56  ;;  %v578_v62 = vmax.f32 %v570_v58, 0.0  ;;  %v611_v4 = vmax.f32 %v609_v63, 0.0  ;;  %v612_v5 = vmax.f32 %v610_v0, 0.0  ;;  %v2944_v53 = vpack.c.bf16 %v642_v45, %v641_v40  ;;  %v643_v56 = vld [vmem:[%s4187_s3 + $0x30] sm:$0xff] }
  0x3f   : > { %586 = vst [vmem:[#allocation2 + $0x61] sm:$0xff] %v577_v61  ;;  %v644_v57 = vld [vmem:[%s4187_s3 + $0x38] sm:$0xff]  ;;  %v3076_v60 = vpack.c.bf16 %v2229_v52, %v2228_v51  ;;  %v2230_v61 = vld [vmem:[%s4187_s3 + $0x2c0] sm:$0xff]  ;;  %v651_v36 = vld [vmem:[%s4187_s3 + $0x70] sm:$0xff] }
  0x40   : > { %587 = vst [vmem:[#allocation2 + $0x69] sm:$0xff] %v578_v62  ;;  %v614_v12 = vmul.f32 %v613_v2, %v611_v4  ;;  %v615_v13 = vmul.f32 %v613_v2, %v612_v5  ;;  %v2231_v62 = vld [vmem:[%s4187_s3 + $0x2c8] sm:$0xff]  ;;  %v2948_v63 = vpack.c.bf16 %v644_v57, %v643_v56  ;;  %v645_v5 = vld [vmem:[%s4187_s3 + $0x40] sm:$0xff]  ;;  %v648_v17 = vld [vmem:[%s4187_s3 + $0x58] sm:$0xff] }
  0x41   : > { %v3080_v8 = vpack.c.bf16 %v2231_v62, %v2230_v61  ;;  %v2238_v40 = vld [vmem:[%s4187_s3 + $0x300] sm:$0xff]  ;;  %v2176_v56 = vld [vmem:[%s4187_s3 + $0x110] sm:$0xff]  ;;  %v2177_v57 = vld [vmem:[%s4187_s3 + $0x118] sm:$0xff] }
  0x42   : > { %v3640_v9 = vld [vmem:[#allocation2 + $0x18] sm:$0xff]  ;;  %v3642_v10 = vld [vmem:[#allocation2 + $0x20] sm:$0xff]  ;;  %v3644_v11 = vld [vmem:[#allocation2 + $0x28] sm:$0x3]  ;;  %617 = vst [vmem:[#allocation2 + $0x79] sm:$0xff] %v614_v12 }
  0x43   : > { %v671_v14 = vrot.slane %v3640_v9, 1  ;;  %v672_v15 = vrot.slane %v3642_v10, 1  ;;  %v674_v16 = vrot.slane %v3644_v11, 1  ;;  %v3652_v18 = vld [vmem:[#allocation2 + $0x30] sm:$0xff]  ;;  %v3654_v19 = vld [vmem:[#allocation2 + $0x38] sm:$0xff]  ;;  %618 = vst [vmem:[#allocation2 + $0x81] sm:$0xff] %v615_v13 }
  0x44   : > { %v676_v24 = vrot.slane %v3652_v18, 1  ;;  %v677_v25 = vrot.slane %v3654_v19, 1  ;;  %v3668_v31 = vld [vmem:[#allocation2 + $0x40] sm:$0x3]  ;;  %v3670_v30 = vld [vmem:[#allocation2 + $0x48] sm:$0xff]  ;;  %v3672_v32 = vld [vmem:[#allocation2 + $0x50] sm:$0xff] }
  0x45   : > { %v3656_v20 = vld [vmem:[#allocation2] sm:$0xff]  ;;  %v3658_v21 = vld [vmem:[#allocation2 + $0x8] sm:$0xff]  ;;  %v3660_v22 = vld [vmem:[#allocation2 + $0x10] sm:$0x3]  ;;  %v673_v26 = vsel %vm665_vm0, %v671_v14, %v672_v15  ;;  %v675_v27 = vsel %vm665_vm0, %v672_v15, %v674_v16  ;;  %v679_v37 = vrot.slane %v3668_v31, 1  ;;  %v681_v42 = vrot.slane %v3670_v30, 1 }
  0x46   : > { %v666_v28 = vrot.slane %v3656_v20, 1  ;;  %v667_v29 = vrot.slane %v3658_v21, 1  ;;  %2716 = vmatprep.mubr.f32.mxu0 %v673_v26  ;;  %v669_v33 = vrot.slane %v3660_v22, 1  ;;  %v3682_v38 = vld [vmem:[#allocation2 + $0x58] sm:$0x3]  ;;  %v3689_v41 = vsel %vm665_vm0, %v676_v24, %v677_v25  ;;  %v3702_v48 = vld [vmem:[#allocation2 + $0x60] sm:$0xff] }
  0x47   : > { %2717 = vmatmul.mubr.f32.vlgmr.msra.gmra.mrb[0].mxu0 %v675_v27  ;;  %v682_v43 = vrot.slane %v3672_v32, 1  ;;  %v3699_v46 = vsel %vm665_vm0, %v677_v25, %v679_v37  ;;  %v684_v47 = vrot.slane %v3682_v38, 1  ;;  %v3704_v49 = vld [vmem:[#allocation2 + $0x68] sm:$0xff]  ;;  %v1213_v55 = vrot.slane %v3702_v48, 1  ;;  %v2232_v12 = vld [vmem:[%s4187_s3 + $0x2d0] sm:$0xff]  ;;  %v2233_v13 = vld [vmem:[%s4187_s3 + $0x2d8] sm:$0xff] }
  0x48   : > { %v668_v39 = vsel %vm665_vm0, %v666_v28, %v667_v29  ;;  %3067 = vmatpush3.bf16.msra.mxu0 %v3593_v1  ;;  %v670_v44 = vsel %vm665_vm0, %v667_v29, %v669_v33  ;;  %v3706_v1 = vld [vmem:[#allocation2 + $0x70] sm:$0x3]  ;;  %2719 = vmatprep.mubr.f32.mxu0 %v3689_v41  ;;  %v927_v2 = vrot.slane %v3640_v9, 2  ;;  %v928_v4 = vrot.slane %v3642_v10, 2  ;;  %v2234_v24 = vld [vmem:[%s4187_s3 + $0x2e0] sm:$0xff]  ;;  %v2235_v25 = vld [vmem:[%s4187_s3 + $0x2e8] sm:$0xff] }
  0x49   : > { %2540 = vmatprep.mubr.f32.mxu1 %v668_v39  ;;  %3069 = vmatprep.subr.bf16.mxu0 %v3068_v23  ;;  %v3718_v54 = vsel %vm665_vm0, %v681_v42, %v682_v43  ;;  %v3729_v58 = vsel %vm665_vm0, %v682_v43, %v684_v47  ;;  %v1216_v59 = vrot.slane %v3706_v1, 1  ;;  %v2952_v14 = vpack.c.bf16 %v646_v6, %v645_v5  ;;  %v647_v16 = vld [vmem:[%s4187_s3 + $0x50] sm:$0xff]  ;;  %v650_v28 = vld [vmem:[%s4187_s3 + $0x68] sm:$0xff]  ;;  %v652_v37 = vld [vmem:[%s4187_s3 + $0x78] sm:$0xff] }
  0x4a   : > { %2541 = vmatmul.mubr.f32.vlgmr.msra.gmra.mrb[0].mxu1 %v670_v44  ;;  %v3767_v15 = vsel %vm921_vm1, %v927_v2, %v928_v4  ;;  %v3088_v29 = vpack.c.bf16 %v2235_v25, %v2234_v24  ;;  %v2236_v33 = vld [vmem:[%s4187_s3 + $0x2f0] sm:$0xff]  ;;  %v2239_v42 = vld [vmem:[%s4187_s3 + $0x308] sm:$0xff]  ;;  %v2964_v43 = vpack.c.bf16 %v652_v37, %v651_v36  ;;  %v930_v44 = vrot.slane %v3644_v11, 2  ;;  %v2174_v45 = vld [vmem:[%s4187_s3 + $0x100] sm:$0xff] }
  0x4b   : > { %2939 = vmatpush3.bf16.msra.mxu1 %v3595_v3  ;;  %2720 = vmatmul.mubr.f32.gmra.mrb[2].mxu0 %v3699_v46  ;;  %v1214_v3 = vrot.slane %v3704_v49, 1  ;;  %v2175_v47 = vld [vmem:[%s4187_s3 + $0x108] sm:$0xff]  ;;  %v932_v51 = vrot.slane %v3652_v18, 2  ;;  %v933_v52 = vrot.slane %v3654_v19, 2  ;;  %v2240_v11 = vld [vmem:[%s4187_s3 + $0x310] sm:$0xff]  ;;  %v937_v62 = vrot.slane %v3670_v30, 2 }
  0x4c   : > { %2941 = vmatprep.subr.bf16.mxu1 %v2940_v34  ;;  %3071 = vmatpush3.bf16.msra.mxu0 %v3068_v23  ;;  %v3084_v23 = vpack.c.bf16 %v2233_v13, %v2232_v12  ;;  %v2242_v2 = vld [vmem:[%s4187_s3 + $0x320] sm:$0xff]  ;;  %v2179_v6 = vld [vmem:[%s4187_s3 + $0x128] sm:$0xff]  ;;  %v940_v12 = vrot.slane %v3682_v38, 2  ;;  %v2245_v38 = vld [vmem:[%s4187_s3 + $0x338] sm:$0xff]  ;;  %v922_v36 = vrot.slane %v3656_v20, 2  ;;  %v923_v37 = vrot.slane %v3658_v21, 2 }
  0x4d   : > { %2543 = vmatprep.mubr.f32.mxu1 %v673_v26  ;;  %3073 = vmatprep.subr.bf16.mxu0 %v3072_v50  ;;  %v3741_v0 = vsel %vm665_vm0, %v1213_v55, %v1214_v3  ;;  %v3753_v7 = vsel %vm665_vm0, %v1214_v3, %v1216_v59  ;;  %v2956_v26 = vpack.c.bf16 %v648_v17, %v647_v16  ;;  %v935_v59 = vrot.slane %v3668_v31, 2  ;;  %v2178_v5 = vld [vmem:[%s4187_s3 + $0x120] sm:$0xff]  ;;  %v2180_v25 = vld [vmem:[%s4187_s3 + $0x130] sm:$0xff] }
  0x4e   : > { %2544 = vmatmul.mubr.f32.gmra.mrb[2].mxu1 %v675_v27  ;;  %2722 = vmatprep.mubr.f32.mxu0 %v3718_v54  ;;  %v649_v27 = vld [vmem:[%s4187_s3 + $0x60] sm:$0xff]  ;;  %v2968_v55 = vpack.c.bf16 %v2175_v47, %v2174_v45  ;;  %v3827_v3 = vsel %vm921_vm1, %v928_v4, %v930_v44  ;;  %v3837_v61 = vsel %vm921_vm1, %v932_v51, %v933_v52  ;;  %v2243_v4 = vld [vmem:[%s4187_s3 + $0x328] sm:$0xff]  ;;  %v1350_v16 = vrot.slane %v3702_v48, 2  ;;  %v2249_v44 = vld [vmem:[%s4187_s3 + $0x358] sm:$0xff] }
  0x4f   : > { %2943 = vmatpush3.bf16.msra.mxu1 %v2940_v34  ;;  %2723 = vmatmul.mubr.f32.gmra.mrb[4].mxu0 %v3729_v58  ;;  %v2237_v34 = vld [vmem:[%s4187_s3 + $0x2f8] sm:$0xff]  ;;  %v2960_v35 = vpack.c.bf16 %v650_v28, %v649_v27  ;;  %v2972_v31 = vpack.c.bf16 %v2177_v57, %v2176_v56  ;;  %v3104_v13 = vpack.c.bf16 %v2243_v4, %v2242_v2  ;;  %v1351_v17 = vrot.slane %v3704_v49, 2  ;;  %v2186_v56 = vld [vmem:[%s4187_s3 + $0x160] sm:$0xff]  ;;  %v2187_v57 = vld [vmem:[%s4187_s3 + $0x168] sm:$0xff] }
  0x50   : > { %2945 = vmatprep.subr.bf16.mxu1 %v2944_v53  ;;  %3075 = vmatpush3.bf16.msra.mxu0 %v3072_v50  ;;  %v3092_v39 = vpack.c.bf16 %v2237_v34, %v2236_v33  ;;  %v3096_v50 = vpack.c.bf16 %v2239_v42, %v2238_v40  ;;  %v2976_v24 = vpack.c.bf16 %v2179_v6, %v2178_v5  ;;  %v1353_v28 = vrot.slane %v3706_v1, 2  ;;  %v2246_v34 = vld [vmem:[%s4187_s3 + $0x340] sm:$0xff]  ;;  %v2183_v40 = vld [vmem:[%s4187_s3 + $0x148] sm:$0xff]  ;;  %v2185_v51 = vld [vmem:[%s4187_s3 + $0x158] sm:$0xff] }
  0x51   : > { %2546 = vmatprep.mubr.f32.mxu1 %v3689_v41  ;;  %3077 = vmatprep.subr.bf16.mxu0 %v3076_v60  ;;  %v3886_v33 = vsel %vm921_vm1, %v1350_v16, %v1351_v17  ;;  %v924_v47 = vsel %vm921_vm1, %v922_v36, %v923_v37  ;;  %v2188_v2 = vld [vmem:[%s4187_s3 + $0x170] sm:$0xff]  ;;  %v2189_v4 = vld [vmem:[%s4187_s3 + $0x178] sm:$0xff]  ;;  %v2254_v5 = vld [vmem:[%s4187_s3 + $0x380] sm:$0xff] }
  0x52   : > { %2547 = vmatmul.mubr.f32.gmra.mrb[4].mxu1 %v3699_v46  ;;  %2725 = vmatprep.mubr.f32.mxu0 %v3741_v0  ;;  %v3906_v42 = vsel %vm921_vm1, %v1351_v17, %v1353_v28  ;;  %v2255_v6 = vld [vmem:[%s4187_s3 + $0x388] sm:$0xff]  ;;  %v2194_v36 = vld [vmem:[%s4187_s3 + $0x1a0] sm:$0xff] }
  0x53   : > { %2947 = vmatpush3.bf16.msra.mxu1 %v2944_v53  ;;  %2726 = vmatmul.mubr.f32.gmra.mrb[6].mxu0 %v3753_v7  ;;  %v2241_v53 = vld [vmem:[%s4187_s3 + $0x318] sm:$0xff]  ;;  %v2191_v16 = vld [vmem:[%s4187_s3 + $0x188] sm:$0xff]  ;;  %v3128_v17 = vpack.c.bf16 %v2255_v6, %v2254_v5  ;;  %v2268_v6 = vld [vmem:[%s4187_s3 + $0x3f0] sm:$0xff] }
  0x54   : > { %2949 = vmatprep.subr.bf16.mxu1 %v2948_v63  ;;  %3079 = vmatpush3.bf16.msra.mxu0 %v3076_v60  ;;  %v3100_v60 = vpack.c.bf16 %v2241_v53, %v2240_v11  ;;  %v2250_v11 = vld [vmem:[%s4187_s3 + $0x360] sm:$0xff]  ;;  %v2251_v53 = vld [vmem:[%s4187_s3 + $0x368] sm:$0xff] }
  0x55   : > { %2549 = vmatprep.mubr.f32.mxu1 %v3718_v54  ;;  %3081 = vmatprep.subr.bf16.mxu0 %v3080_v8 }
  0x56   : > { %2550 = vmatmul.mubr.f32.gmra.mrb[6].mxu1 %v3729_v58  ;;  %2760 = vmatprep.mubr.f32.mxu0 %v3767_v15 }
  0x57   : > { %2951 = vmatpush3.bf16.msra.mxu1 %v2948_v63  ;;  %2584 = vmatprep.mubr.f32.mxu1 %v3656_v20  ;;  %v938_v63 = vrot.slane %v3672_v32, 2  ;;  %v2248_v20 = vld [vmem:[%s4187_s3 + $0x350] sm:$0xff] }
  0x58   : > { %2953 = vmatprep.subr.bf16.mxu1 %v2952_v14  ;;  %3083 = vmatpush3.bf16.msra.mxu0 %v3080_v8  ;;  %v3856_v8 = vsel %vm921_vm1, %v933_v52, %v935_v59  ;;  %v3116_v52 = vpack.c.bf16 %v2249_v44, %v2248_v20  ;;  %v3120_v59 = vpack.c.bf16 %v2251_v53, %v2250_v11  ;;  %v2196_v20 = vld [vmem:[%s4187_s3 + $0x1b0] sm:$0xff]  ;;  %v2197_v44 = vld [vmem:[%s4187_s3 + $0x1b8] sm:$0xff]  ;;  %v4027_v11 = vld [vmem:[#allocation2 + $0x80] sm:$0xff] }
  0x59   : > { %3085 = vmatprep.subr.bf16.mxu0 %v3084_v23  ;;  %v3881_v27 = vsel %vm921_vm1, %v938_v63, %v940_v12  ;;  %v2996_v12 = vpack.c.bf16 %v2189_v4, %v2188_v2  ;;  %v2267_v2 = vld [vmem:[%s4187_s3 + $0x3e8] sm:$0xff] }
  0x5b   : > { %2955 = vmatpush3.bf16.msra.mxu1 %v2952_v14  ;;  %v3861_v14 = vsel %vm921_vm1, %v937_v62, %v938_v63  ;;  %v2253_v62 = vld [vmem:[%s4187_s3 + $0x378] sm:$0xff]  ;;  %v2992_v63 = vpack.c.bf16 %v2187_v57, %v2186_v56 }
  0x5c   : > { %2957 = vmatprep.subr.bf16.mxu1 %v2956_v26  ;;  %3087 = vmatpush3.bf16.msra.mxu0 %v3084_v23  ;;  %v2244_v23 = vld [vmem:[%s4187_s3 + $0x330] sm:$0xff]  ;;  %v2265_v56 = vld [vmem:[%s4187_s3 + $0x3d8] sm:$0xff] }
  0x5d   : > { %3089 = vmatprep.subr.bf16.mxu0 %v3088_v29 }
  0x5f   : > { %2959 = vmatpush3.bf16.msra.mxu1 %v2956_v26  ;;  %v2181_v26 = vld [vmem:[%s4187_s3 + $0x138] sm:$0xff] }
  0x60   : > { %2961 = vmatprep.subr.bf16.mxu1 %v2960_v35  ;;  %3091 = vmatpush3.bf16.msra.mxu0 %v3088_v29  ;;  %v3108_v29 = vpack.c.bf16 %v2245_v38, %v2244_v23  ;;  %v2980_v1 = vpack.c.bf16 %v2181_v26, %v2180_v25  ;;  %v925_v23 = vrot.slane %v3660_v22, 2  ;;  %v2256_v38 = vld [vmem:[%s4187_s3 + $0x390] sm:$0xff]  ;;  %v2193_v22 = vld [vmem:[%s4187_s3 + $0x198] sm:$0xff] }
  0x61   : > { %3093 = vmatprep.subr.bf16.mxu0 %v3092_v39  ;;  %v2192_v26 = vld [vmem:[%s4187_s3 + $0x190] sm:$0xff] }
  0x63   : > { %2963 = vmatpush3.bf16.msra.mxu1 %v2960_v35  ;;  %v2247_v35 = vld [vmem:[%s4187_s3 + $0x348] sm:$0xff] }
  0x64   : > { %2965 = vmatprep.subr.bf16.mxu1 %v2964_v43  ;;  %3095 = vmatpush3.bf16.msra.mxu0 %v3092_v39  ;;  %v2182_v39 = vld [vmem:[%s4187_s3 + $0x140] sm:$0xff] }
  0x65   : > { %3097 = vmatprep.subr.bf16.mxu0 %v3096_v50  ;;  %v2984_v45 = vpack.c.bf16 %v2183_v40, %v2182_v39  ;;  %v2260_v39 = vld [vmem:[%s4187_s3 + $0x3b0] sm:$0xff]  ;;  %v2261_v40 = vld [vmem:[%s4187_s3 + $0x3b8] sm:$0xff] }
  0x67   : > { %2967 = vmatpush3.bf16.msra.mxu1 %v2964_v43  ;;  %2761 = vmatmul.mubr.f32.vlgmr.msra.gmra.mrb[0].mxu0 %v3827_v3  ;;  %v3112_v43 = vpack.c.bf16 %v2247_v35, %v2246_v34  ;;  %v2258_v34 = vld [vmem:[%s4187_s3 + $0x3a0] sm:$0xff]  ;;  %v2259_v35 = vld [vmem:[%s4187_s3 + $0x3a8] sm:$0xff] }
  0x68   : > { %2969 = vmatprep.subr.bf16.mxu1 %v2968_v55  ;;  %3099 = vmatpush3.bf16.msra.mxu0 %v3096_v50  ;;  %v2184_v50 = vld [vmem:[%s4187_s3 + $0x150] sm:$0xff] }
  0x69   : > { %2763 = vmatprep.mubr.f32.mxu0 %v3837_v61  ;;  %3101 = vmatprep.subr.bf16.mxu0 %v3100_v60 }
  0x6a   : > { %2585 = vmatmul.mubr.f32.vlgmr.msra.gmra.mrb[0].mxu1 %v3658_v21  ;;  %v2195_v21 = vld [vmem:[%s4187_s3 + $0x1a8] sm:$0xff] }
  0x6b   : > { %2971 = vmatpush3.bf16.msra.mxu1 %v2968_v55  ;;  %2587 = vmatprep.mubr.f32.mxu1 %v3640_v9  ;;  %v2988_v55 = vpack.c.bf16 %v2185_v51, %v2184_v50  ;;  %v2263_v50 = vld [vmem:[%s4187_s3 + $0x3c8] sm:$0xff]  ;;  %v3012_v51 = vpack.c.bf16 %v2197_v44, %v2196_v20  ;;  %v1758_v44 = vrot.slane %v4027_v11, 2 }
  0x6c   : > { %2973 = vmatprep.subr.bf16.mxu1 %v2972_v31  ;;  %2764 = vmatmul.mubr.f32.gmra.mrb[2].mxu0 %v3856_v8 }
  0x6d   : > { %3103 = vmatpush3.bf16.msra.mxu0 %v3100_v60  ;;  %2766 = vmatprep.mubr.f32.mxu0 %v3861_v14  ;;  %v2252_v60 = vld [vmem:[%s4187_s3 + $0x370] sm:$0xff] }
  0x6e   : > { %3105 = vmatprep.subr.bf16.mxu0 %v3104_v13  ;;  %2588 = vmatmul.mubr.f32.gmra.mrb[2].mxu1 %v3642_v10 }
  0x6f   : > { %2975 = vmatpush3.bf16.msra.mxu1 %v2972_v31  ;;  %2590 = vmatprep.mubr.f32.mxu1 %v3652_v18  ;;  %v3124_v31 = vpack.c.bf16 %v2253_v62, %v2252_v60  ;;  %v2201_v60 = vld [vmem:[%s4187_s3 + $0x1d8] sm:$0xff] }
  0x70   : > { %2977 = vmatprep.subr.bf16.mxu1 %v2976_v24  ;;  %2767 = vmatmul.mubr.f32.gmra.mrb[4].mxu0 %v3881_v27 }
  0x71   : > { %3107 = vmatpush3.bf16.msra.mxu0 %v3104_v13  ;;  %2769 = vmatprep.mubr.f32.mxu0 %v3886_v33  ;;  %v2190_v13 = vld [vmem:[%s4187_s3 + $0x180] sm:$0xff] }
  0x72   : > { %3109 = vmatprep.subr.bf16.mxu0 %v3108_v29  ;;  %2591 = vmatmul.mubr.f32.gmra.mrb[4].mxu1 %v3654_v19  ;;  %v3000_v25 = vpack.c.bf16 %v2191_v16, %v2190_v13  ;;  %v2204_v13 = vld [vmem:[%s4187_s3 + $0x1f0] sm:$0xff]  ;;  %v2205_v16 = vld [vmem:[%s4187_s3 + $0x1f8] sm:$0xff] }
  0x73   : > { %2979 = vmatpush3.bf16.msra.mxu1 %v2976_v24  ;;  %2593 = vmatprep.mubr.f32.mxu1 %v3670_v30  ;;  %v2257_v24 = vld [vmem:[%s4187_s3 + $0x398] sm:$0xff] }
  0x74   : > { %2981 = vmatprep.subr.bf16.mxu1 %v2980_v1  ;;  %2770 = vmatmul.mubr.f32.gmra.mrb[6].mxu0 %v3906_v42  ;;  %v3132_v28 = vpack.c.bf16 %v2257_v24, %v2256_v38  ;;  %v2271_v38 = vld [vmem:[%s4187_s3 + $0x408] sm:$0xff]  ;;  %v3028_v24 = vpack.c.bf16 %v2205_v16, %v2204_v13 }
  0x75   : > { %3111 = vmatpush3.bf16.msra.mxu0 %v3108_v29  ;;  %2804 = vmatprep.mubr.f32.mxu0 %v3652_v18  ;;  %v926_v29 = vsel %vm921_vm1, %v923_v37, %v925_v23  ;;  %v3136_v37 = vpack.c.bf16 %v2259_v35, %v2258_v34  ;;  %v2270_v23 = vld [vmem:[%s4187_s3 + $0x400] sm:$0xff]  ;;  %v2275_v34 = vld [vmem:[%s4187_s3 + $0x428] sm:$0xff] }
  0x76   : > { %3113 = vmatprep.subr.bf16.mxu0 %v3112_v43  ;;  %2594 = vmatmul.mubr.f32.gmra.mrb[6].mxu1 %v3672_v32 }
  0x77   : > { %2983 = vmatpush3.bf16.msra.mxu1 %v2980_v1  ;;  %2628 = vmatprep.mubr.f32.mxu1 %v924_v47  ;;  %v3004_v1 = vpack.c.bf16 %v2193_v22, %v2192_v26  ;;  %v2262_v47 = vld [vmem:[%s4187_s3 + $0x3c0] sm:$0xff]  ;;  %v2272_v26 = vld [vmem:[%s4187_s3 + $0x410] sm:$0xff]  ;;  %v2273_v22 = vld [vmem:[%s4187_s3 + $0x418] sm:$0xff] }
  0x78   : > { %2985 = vmatprep.subr.bf16.mxu1 %v2984_v45  ;;  %v3144_v53 = vpack.c.bf16 %v2263_v50, %v2262_v47 }
  0x79   : > { %3115 = vmatpush3.bf16.msra.mxu0 %v3112_v43  ;;  %v3008_v43 = vpack.c.bf16 %v2195_v21, %v2194_v36  ;;  %v4094_v21 = vld [vmem:[#allocation2 + $0x88] sm:$0x3] }
  0x7a   : > { %3117 = vmatprep.subr.bf16.mxu0 %v3116_v52 }
  0x7b   : > { %2987 = vmatpush3.bf16.msra.mxu1 %v2984_v45  ;;  %v3140_v45 = vpack.c.bf16 %v2261_v40, %v2260_v39  ;;  %v2278_v39 = vld [vmem:[%s4187_s3 + $0x440] sm:$0xff]  ;;  %v2283_v40 = vld [vmem:[%s4187_s3 + $0x468] sm:$0xff] }
  0x7c   : > { %2989 = vmatprep.subr.bf16.mxu1 %v2988_v55 }
  0x7d   : > { %3119 = vmatpush3.bf16.msra.mxu0 %v3116_v52  ;;  %v2199_v52 = vld [vmem:[%s4187_s3 + $0x1c8] sm:$0xff] }
  0x7e   : > { %3121 = vmatprep.subr.bf16.mxu0 %v3120_v59 }
  0x7f   : > { %2991 = vmatpush3.bf16.msra.mxu1 %v2988_v55  ;;  %v2264_v55 = vld [vmem:[%s4187_s3 + $0x3d0] sm:$0xff] }
  0x80   : > { %2993 = vmatprep.subr.bf16.mxu1 %v2992_v63  ;;  %v3148_v62 = vpack.c.bf16 %v2265_v56, %v2264_v55 }
  0x81   : > { %3123 = vmatpush3.bf16.msra.mxu0 %v3120_v59  ;;  %v2200_v59 = vld [vmem:[%s4187_s3 + $0x1d0] sm:$0xff] }
  0x82   : > { %3125 = vmatprep.subr.bf16.mxu0 %v3124_v31  ;;  %v3020_v4 = vpack.c.bf16 %v2201_v60, %v2200_v59 }
  0x83   : > { %2995 = vmatpush3.bf16.msra.mxu1 %v2992_v63  ;;  %v2266_v63 = vld [vmem:[%s4187_s3 + $0x3e0] sm:$0xff] }
  0x84   : > { %2997 = vmatprep.subr.bf16.mxu1 %v2996_v12  ;;  %v3152_v5 = vpack.c.bf16 %v2267_v2, %v2266_v63 }
  0x85   : > { %3127 = vmatpush3.bf16.msra.mxu0 %v3124_v31  ;;  %v2203_v31 = vld [vmem:[%s4187_s3 + $0x1e8] sm:$0xff] }
  0x86   : > { %3129 = vmatprep.subr.bf16.mxu0 %v3128_v17 }
  0x87   : > { %2999 = vmatpush3.bf16.msra.mxu1 %v2996_v12 }
  0x88   : > { %2805 = vmatmul.mubr.f32.vlgmr.msra.gmra.mrb[0].mxu0 %v3654_v19  ;;  %3001 = vmatprep.subr.bf16.mxu1 %v3000_v25 }
  0x89   : > { %3131 = vmatpush3.bf16.msra.mxu0 %v3128_v17  ;;  %2807 = vmatprep.mubr.f32.mxu0 %v3670_v30 }
  0x8a   : > { %2629 = vmatmul.mubr.f32.vlgmr.msra.gmra.mrb[0].mxu1 %v926_v29  ;;  %3133 = vmatprep.subr.bf16.mxu0 %v3132_v28  ;;  %v2274_v29 = vld [vmem:[%s4187_s3 + $0x420] sm:$0xff] }
  0x8b   : > { %3003 = vmatpush3.bf16.msra.mxu1 %v3000_v25  ;;  %2631 = vmatprep.mubr.f32.mxu1 %v3767_v15  ;;  %v4010_v15 = vld [vmem:[#allocation2 + $0x78] sm:$0xff]  ;;  %v3160_v25 = vpack.c.bf16 %v2271_v38, %v2270_v23  ;;  %v3168_v36 = vpack.c.bf16 %v2275_v34, %v2274_v29 }
  0x8c   : > { %3005 = vmatprep.subr.bf16.mxu1 %v3004_v1  ;;  %2808 = vmatmul.mubr.f32.gmra.mrb[2].mxu0 %v3672_v32  ;;  %v1620_v35 = vrot.slane %v4010_v15, 1 }
  0x8d   : > { %3135 = vmatpush3.bf16.msra.mxu0 %v3132_v28  ;;  %2810 = vmatprep.mubr.f32.mxu0 %v3702_v48  ;;  %v3164_v28 = vpack.c.bf16 %v2273_v22, %v2272_v26 }
  0x8e   : > { %3137 = vmatprep.subr.bf16.mxu0 %v3136_v37  ;;  %2632 = vmatmul.mubr.f32.gmra.mrb[2].mxu1 %v3827_v3  ;;  %v2198_v3 = vld [vmem:[%s4187_s3 + $0x1c0] sm:$0xff] }
  0x8f   : > { %3007 = vmatpush3.bf16.msra.mxu1 %v3004_v1  ;;  %2634 = vmatprep.mubr.f32.mxu1 %v3837_v61  ;;  %v3016_v57 = vpack.c.bf16 %v2199_v52, %v2198_v3  ;;  %v1621_v1 = vrot.slane %v4027_v11, 1 }
  0x90   : > { %3009 = vmatprep.subr.bf16.mxu1 %v3008_v43  ;;  %2811 = vmatmul.mubr.f32.gmra.mrb[4].mxu0 %v3704_v49 }
  0x91   : > { %3139 = vmatpush3.bf16.msra.mxu0 %v3136_v37  ;;  %2813 = vmatprep.mubr.f32.mxu0 %v4010_v15 }
  0x92   : > { %3141 = vmatprep.subr.bf16.mxu0 %v3140_v45  ;;  %2635 = vmatmul.mubr.f32.gmra.mrb[4].mxu1 %v3856_v8 }
  0x93   : > { %3011 = vmatpush3.bf16.msra.mxu1 %v3008_v43  ;;  %2637 = vmatprep.mubr.f32.mxu1 %v3861_v14 }
  0x94   : > { %3013 = vmatprep.subr.bf16.mxu1 %v3012_v51  ;;  %2814 = vmatmul.mubr.f32.gmra.mrb[6].mxu0 %v4027_v11 }
  0x95   : > { %3143 = vmatpush3.bf16.msra.mxu0 %v3140_v45  ;;  %2848 = vmatprep.mubr.f32.mxu0 %v3689_v41  ;;  %v2202_v41 = vld [vmem:[%s4187_s3 + $0x1e0] sm:$0xff]  ;;  %v1760_v45 = vrot.slane %v4094_v21, 2 }
  0x96   : > { %3145 = vmatprep.subr.bf16.mxu0 %v3144_v53  ;;  %2638 = vmatmul.mubr.f32.gmra.mrb[6].mxu1 %v3881_v27  ;;  %v3024_v12 = vpack.c.bf16 %v2203_v31, %v2202_v41 }
  0x97   : > { %3015 = vmatpush3.bf16.msra.mxu1 %v3012_v51  ;;  %2672 = vmatprep.mubr.f32.mxu1 %v3640_v9  ;;  %v2269_v9 = vld [vmem:[%s4187_s3 + $0x3f8] sm:$0xff]  ;;  %v1761_v50 = vsel %vm921_vm1, %v1758_v44, %v1760_v45 }
  0x98   : > { %3017 = vmatprep.subr.bf16.mxu1 %v3016_v57  ;;  %v3156_v17 = vpack.c.bf16 %v2269_v9, %v2268_v6 }
  0x99   : > { %3147 = vmatpush3.bf16.msra.mxu0 %v3144_v53 }
  0x9a   : > { %3149 = vmatprep.subr.bf16.mxu0 %v3148_v62 }
  0x9b   : > { %3019 = vmatpush3.bf16.msra.mxu1 %v3016_v57 }
  0x9c   : > { %3021 = vmatprep.subr.bf16.mxu1 %v3020_v4 }
  0x9d   : > { %3151 = vmatpush3.bf16.msra.mxu0 %v3148_v62 }
  0x9e   : > { %3153 = vmatprep.subr.bf16.mxu0 %v3152_v5 }
  0x9f   : > { %3023 = vmatpush3.bf16.msra.mxu1 %v3020_v4 }
  0xa0   : > { %3025 = vmatprep.subr.bf16.mxu1 %v3024_v12 }
  0xa1   : > { %3155 = vmatpush3.bf16.msra.mxu0 %v3152_v5 }
  0xa2   : > { %3157 = vmatprep.subr.bf16.mxu0 %v3156_v17 }
  0xa3   : > { %3027 = vmatpush3.bf16.msra.mxu1 %v3024_v12 }
  0xa4   : > { %3029 = vmatprep.subr.bf16.mxu1 %v3028_v24 }
  0xa5   : > { %3159 = vmatpush3.bf16.msra.mxu0 %v3156_v17 }
  0xa6   : > { %3161 = vmatprep.subr.bf16.mxu0 %v3160_v25 }
  0xa7   : > { %3031 = vmatpush3.bf16.msra.mxu1 %v3028_v24 }
  0xa8   : > { %2849 = vmatmul.mubr.f32.vlgmr.msra.gmra.mrb[0].mxu0 %v3699_v46  ;;  %3192 = vmatprep.subr.bf16.mxu1 %v3160_v25  ;;  %v2276_v46 = vld [vmem:[%s4187_s3 + $0x430] sm:$0xff] }
  0xa9   : > { %3163 = vmatpush3.bf16.msra.mxu0 %v3160_v25  ;;  %2851 = vmatprep.mubr.f32.mxu0 %v3718_v54  ;;  %v2277_v54 = vld [vmem:[%s4187_s3 + $0x438] sm:$0xff] }
  0xaa   : > { %2673 = vmatmul.mubr.f32.vlgmr.msra.gmra.mrb[0].mxu1 %v3642_v10  ;;  %3165 = vmatprep.subr.bf16.mxu0 %v3164_v28  ;;  %v1623_v10 = vrot.slane %v4094_v21, 1  ;;  %v3172_v37 = vpack.c.bf16 %v2277_v54, %v2276_v46 }
  0xab   : > { %3200 = vmatpush3.bf16.msra.mxu1 %v3160_v25  ;;  %2675 = vmatprep.mubr.f32.mxu1 %v3652_v18  ;;  %v1622_v18 = vsel %vm665_vm0, %v1620_v35, %v1621_v1 }
  0xac   : > { %2852 = vmatmul.mubr.f32.gmra.mrb[2].mxu0 %v3729_v58  ;;  %3193 = vmatprep.subr.bf16.mxu1 %v3164_v28  ;;  %v2279_v58 = vld [vmem:[%s4187_s3 + $0x448] sm:$0xff] }
  0xad   : > { %3167 = vmatpush3.bf16.msra.mxu0 %v3164_v28  ;;  %2854 = vmatprep.mubr.f32.mxu0 %v3741_v0  ;;  %v3176_v0 = vpack.c.bf16 %v2279_v58, %v2278_v39 }
  0xae   : > { %2676 = vmatmul.mubr.f32.gmra.mrb[2].mxu1 %v3654_v19  ;;  %3169 = vmatprep.subr.bf16.mxu0 %v3168_v36  ;;  %v1624_v19 = vsel %vm665_vm0, %v1621_v1, %v1623_v10 }
  0xaf   : > { %3201 = vmatpush3.bf16.msra.mxu1 %v3164_v28  ;;  %2678 = vmatprep.mubr.f32.mxu1 %v3670_v30  ;;  %v2280_v30 = vld [vmem:[%s4187_s3 + $0x450] sm:$0xff] }
  0xb0   : > { %2855 = vmatmul.mubr.f32.gmra.mrb[4].mxu0 %v3753_v7  ;;  %3194 = vmatprep.subr.bf16.mxu1 %v3168_v36  ;;  %v2281_v7 = vld [vmem:[%s4187_s3 + $0x458] sm:$0xff] }
  0xb1   : > { %3171 = vmatpush3.bf16.msra.mxu0 %v3168_v36  ;;  %2857 = vmatprep.mubr.f32.mxu0 %v1622_v18 }
  0xb2   : > { %2679 = vmatmul.mubr.f32.gmra.mrb[4].mxu1 %v3672_v32  ;;  %3173 = vmatprep.subr.bf16.mxu0 %v3172_v37  ;;  %v3180_v32 = vpack.c.bf16 %v2281_v7, %v2280_v30 }
  0xb3   : > { %3202 = vmatpush3.bf16.msra.mxu1 %v3168_v36  ;;  %2681 = vmatprep.mubr.f32.mxu1 %v3702_v48  ;;  %v2282_v48 = vld [vmem:[%s4187_s3 + $0x460] sm:$0xff] }
  0xb4   : > { %2858 = vmatmul.mubr.f32.gmra.mrb[6].mxu0 %v1624_v19  ;;  %3195 = vmatprep.subr.bf16.mxu1 %v3172_v37  ;;  %v3184_v43 = vpack.c.bf16 %v2283_v40, %v2282_v48 }
  0xb5   : > { %3175 = vmatpush3.bf16.msra.mxu0 %v3172_v37  ;;  %2892 = vmatprep.mubr.f32.mxu0 %v3837_v61  ;;  %v2285_v61 = vld [vmem:[%s4187_s3 + $0x478] sm:$0xff] }
  0xb6   : > { %2682 = vmatmul.mubr.f32.gmra.mrb[6].mxu1 %v3704_v49  ;;  %3177 = vmatprep.subr.bf16.mxu0 %v3176_v0  ;;  %v2284_v49 = vld [vmem:[%s4187_s3 + $0x470] sm:$0xff] }
  0xb7   : > { %3203 = vmatpush3.bf16.msra.mxu1 %v3172_v37  ;;  %2898 = vmatprep.mubr.f32.mxu1 %v3886_v33  ;;  %v3188_v20 = vpack.c.bf16 %v2285_v61, %v2284_v49  ;;  %v1757_v33 = vrot.slane %v4010_v15, 2 }
  0xb8   : > { %3196 = vmatprep.subr.bf16.mxu1 %v3176_v0 }
  0xb9   : > { %3179 = vmatpush3.bf16.msra.mxu0 %v3176_v0  ;;  %v1759_v47 = vsel %vm921_vm1, %v1757_v33, %v1758_v44 }
  0xba   : > { %3181 = vmatprep.subr.bf16.mxu0 %v3180_v32 }
  0xbb   : > { %3204 = vmatpush3.bf16.msra.mxu1 %v3176_v0 }
  0xbc   : > { %3197 = vmatprep.subr.bf16.mxu1 %v3180_v32 }
  0xbd   : > { %3183 = vmatpush3.bf16.msra.mxu0 %v3180_v32 }
  0xbe   : > { %3185 = vmatprep.subr.bf16.mxu0 %v3184_v43 }
  0xbf   : > { %3205 = vmatpush3.bf16.msra.mxu1 %v3180_v32 }
  0xc0   : > { %3198 = vmatprep.subr.bf16.mxu1 %v3184_v43 }
  0xc1   : > { %3187 = vmatpush3.bf16.msra.mxu0 %v3184_v43 }
  0xc2   : > { %3189 = vmatprep.subr.bf16.mxu0 %v3188_v20 }
  0xc3   : > { %3206 = vmatpush3.bf16.msra.mxu1 %v3184_v43 }
  0xc4   : > { %3199 = vmatprep.subr.bf16.mxu1 %v3188_v20 }
  0xc5   : > { %3191 = vmatpush3.bf16.msra.mxu0 %v3188_v20 }
  0xc7   : > { %3207 = vmatpush3.bf16.msra.mxu1 %v3188_v20 }
  0xc8   : > { %2893 = vmatmul.mubr.f32.vlgmr.msra.gmra.mrb[0].mxu0 %v3856_v8 }
  0xc9   : > { %2895 = vmatprep.mubr.f32.mxu0 %v3861_v14 }
  0xca   : > { %2899 = vmatmul.mubr.f32.vlgmr.msra.gmra.mrb[8].mxu1 %v3906_v42 }
  0xcb   : > { %2901 = vmatprep.mubr.f32.mxu1 %v1759_v47 }
  0xcc   : > { %2896 = vmatmul.mubr.f32.gmra.mrb[2].mxu0 %v3881_v27 }
  0xce   : > { %2902 = vmatmul.mubr.f32.gmra.mrb[10].mxu1 %v1761_v50 }
 0x17d   : > { %v2674_v15 = vpop.f32.mrb[0].mxu1 }
 0x17e   : > { %v1163_v51 = vpop.f32.mrb[1].mxu1 }
 0x181   : > { %v2677_v3 = vpop.f32.mrb[2].mxu1 }
 0x182   : > { %v1173_v52 = vpop.f32.mrb[3].mxu1 }
 0x183   : > { %v2856_v11 = vpop.f32.mrb[4].mxu0 }
 0x184   : > { %v1730_v53 = vpop.f32.mrb[5].mxu0 }
 0x185   : > { %v2680_v8 = vpop.f32.mrb[4].mxu1 }
 0x186   : > { %v3212_v55 = vadd.f32 %v2856_v11, %v2680_v8  ;;  %v1183_v56 = vpop.f32.mrb[5].mxu1 }
 0x187   : > { %v3214_v57 = vadd.f32 %v1730_v53, %v1183_v56  ;;  %v2859_v14 = vpop.f32.mrb[6].mxu0 }
 0x188   : > { %v1740_v59 = vpop.f32.mrb[7].mxu0 }
 0x189   : > { %v2683_v42 = vpop.f32.mrb[6].mxu1 }
 0x18a   : > { %v3216_v60 = vadd.f32 %v2859_v14, %v2683_v42  ;;  %v1193_v62 = vpop.f32.mrb[7].mxu1 }
 0x18b   : > { %v3218_v63 = vadd.f32 %v1740_v59, %v1193_v62 }
 0x19b   : > { %v2894_v27 = vpop.f32.mrb[0].mxu0 }
 0x19c   : > { %v3208_v2 = vadd.f32 %v2894_v27, %v2674_v15  ;;  %v1847_v4 = vpop.f32.mrb[1].mxu0 }
 0x19d   : > { %v3209_v41 = vadd.f32 %v1847_v4, %v1163_v51  ;;  %v2900_v31 = vpop.f32.mrb[8].mxu1 }
 0x19e   : > { %1895 = vst [vmem:[%s4154_s25 + $0x8] sm:$0xff] %v3208_v2  ;;  %v1916_v5 = vmul.f32 %v3208_v2, %v3208_v2  ;;  %v3213_v6 = vadd.f32 %v3212_v55, %v2900_v31  ;;  %v1867_v9 = vpop.f32.mrb[9].mxu1 }
 0x19f   : > { %1894 = vst [vmem:[%s4154_s25] sm:$0xff] %v3209_v41  ;;  %v1902_v12 = vadd.f32 %v3209_v41, %v3208_v2  ;;  %v1915_v13 = vmul.f32 %v3209_v41, %v3209_v41  ;;  %v3215_v16 = vadd.f32 %v3214_v57, %v1867_v9  ;;  %v2897_v17 = vpop.f32.mrb[2].mxu0 }
 0x1a0   : > { %1899 = vst [vmem:[%s4154_s25 + $0x28] sm:$0xff] %v3213_v6  ;;  %v3210_v23 = vadd.f32 %v2897_v17, %v2677_v3  ;;  %v1857_v38 = vpop.f32.mrb[3].mxu0  ;;  %v1920_v18 = vmul.f32 %v3213_v6, %v3213_v6 }
 0x1a1   : > { %v1923_v24 = vadd.f32 %v1916_v5, %v1915_v13  ;;  %1898 = vst [vmem:[%s4154_s25 + $0x20] sm:$0xff] %v3215_v16  ;;  %v3211_v25 = vadd.f32 %v1857_v38, %v1173_v52  ;;  %v2903_v26 = vpop.f32.mrb[10].mxu1  ;;  %v1919_v46 = vmul.f32 %v3215_v16, %v3215_v16 }
 0x1a2   : > { %1897 = vst [vmem:[%s4154_s25 + $0x18] sm:$0xff] %v3210_v23  ;;  %v3217_v22 = vadd.f32 %v3216_v60, %v2903_v26  ;;  %v1877_v28 = vpop.f32.mrb[11].mxu1  ;;  %v1918_v1 = vmul.f32 %v3210_v23, %v3210_v23 }
 0x1a3   : > { %1896 = vst [vmem:[%s4154_s25 + $0x10] sm:$0xff] %v3211_v25  ;;  %v1903_v29 = vadd.f32 %v3211_v25, %v1902_v12  ;;  %v1917_v34 = vmul.f32 %v3211_v25, %v3211_v25  ;;  %v3219_v35 = vadd.f32 %v3218_v63, %v1877_v28 }
 0x1a4   : > { %1901 = vst [vmem:[%s4154_s25 + $0x38] sm:$0xff] %v3217_v22  ;;  %v1922_v30 = vmul.f32 %v3217_v22, %v3217_v22 }
 0x1a5   : > { %v1904_v36 = vadd.f32 %v3210_v23, %v1903_v29  ;;  %v1924_v21 = vadd.f32 %v1923_v24, %v1917_v34  ;;  %1900 = vst [vmem:[%s4154_s25 + $0x30] sm:$0xff] %v3219_v35  ;;  %v1921_v19 = vmul.f32 %v3219_v35, %v3219_v35 }
 0x1a7   : > { %v1925_v54 = vadd.f32 %v1924_v21, %v1918_v1  ;;  %v1905_v10 = vadd.f32 %v3215_v16, %v1904_v36 }
 0x1a9   : > { %v1906_v37 = vadd.f32 %v3213_v6, %v1905_v10  ;;  %v1926_v39 = vadd.f32 %v1925_v54, %v1919_v46 }
 0x1ab   : > { %v1907_v58 = vadd.f32 %v3219_v35, %v1906_v37  ;;  %v1927_v0 = vadd.f32 %v1926_v39, %v1920_v18 }
 0x1ad   : > { %v1908_v7 = vadd.f32 %v3217_v22, %v1907_v58  ;;  %v1928_v32 = vadd.f32 %v1927_v0, %v1921_v19 }
 0x1af   : > { %v1909_v48 = vrot.slane %v1908_v7, 4  ;;  %v1929_v40 = vadd.f32 %v1928_v32, %v1922_v30 }
 0x1b1   : > { %v1910_v43 = vadd.f32 %v1909_v48, %v1908_v7  ;;  %v1930_v49 = vrot.slane %v1929_v40, 4 }
 0x1b3   : > { %v1911_v61 = vrot.slane %v1910_v43, 2  ;;  %v1931_v20 = vadd.f32 %v1930_v49, %v1929_v40 }
 0x1b5   : > { %v1912_v33 = vadd.f32 %v1911_v61, %v1910_v43  ;;  %v1932_v44 = vrot.slane %v1931_v20, 2 }
 0x1b7   : > { %v1913_v45 = vrot.slane %v1912_v33, 1  ;;  %v1933_v47 = vadd.f32 %v1932_v44, %v1931_v20  ;;  %1941 = sbr.rel (%p2286_p12) target bundleno = 447 (0x1bf), region = 52 }
 0x1b9   : > { %v1934_v50 = vrot.slane %v1933_v47, 1  ;;  %v1914_v15 = vadd.f32 %v1913_v45, %v1912_v33 }
 0x1bb   : > { %v1935_v51 = vadd.f32 %v1934_v50, %v1933_v47 }
 0x1bd   : > { %v1937_v3 = vsel %vm1936_vm2, %v1914_v15, %v1935_v51 }
 0x1be   : > { %1942 = vst [vmem:[%s3483_s24] sm:$0x3] %v1937_v3 }
 0x1bf PF: > { %p2287_p13 = scmp.le.s32.totalorder %s3338_s27, 0 }
 0x1c1   : > { %1945 = sbr.rel (%p2287_p13) target bundleno = 457 (0x1c9), region = 56 }
 0x1c5   : > { %v1946_v52 = vld [vmem:[%s3483_s24] sm:$0x3] (!%p2287_p13) }
 0x1c6   : > { %v1947_v11 = vadd.f32 (!%p2287_p13), %v1946_v52, %v1937_v3 }
 0x1c8   : > { %1948 = vst [vmem:[%s3483_s24] sm:$0x3] %v1947_v11 }
 0x1c9 PF: > { %s19_s9 = sadd.s32 1, %s3354_s9   ;;  %s4196_s27 = smov %s3346_s29 }
 0x1ca   : > { %p16_p0 = scmp.ge.s32.totalorder %s19_s9, 10   ;;  %s4197_s28 = smov %s3350_s30 }
 0x1cb   : > { %s4198_s29 = smov %s4201_s10  ;;  %s4199_s30 = smov %s4205_s11 }
 0x1cc   :  { %18 = sbr.rel (!%p16_p0) target bundleno = 3 (0x3), region = 114 }

</bundles_post_ra>
